<compile_context>
chip_gen: v7x
topology: tpu7x:2x2x1
jax: 0.10.0
libtpu: 0.0.40
codegen_flags: <defaults>
</compile_context>

<pallas_src>
import functools

import numpy as np

import jax
import jax.numpy as jnp
from jax.experimental import pallas as pl
from jax.experimental.pallas import tpu as pltpu


_LN_EPS = 1e-5  # PyTorch nn.LayerNorm default


def _min_grid_steps():
    """>=2 grid steps only on parts with 2 TensorCores per chip."""
    try:
        kind = jax.devices()[0].device_kind.lower()
    except Exception:
        return 1
    return 2 if any(s in kind for s in ("v7", "v4", "v5p")) else 1


def _choose_ho_tile(n_bdho, wo, k, ep, in_bytes, out_bytes, min_steps):
    """Rows-of-Ho per tile: as large as a conservative VMEM budget allows
    (target ~1024 output rows/tile), but keep >= min_steps grid steps."""
    per_row = (2 * k * in_bytes            # double-buffered input stream (both halves)
               + 2 * ep * out_bytes        # double-buffered output stream
               + int(2.5 * k) * 4          # f32 LayerNorm temporaries
               + ep * 4)                   # f32 accumulator
    budget = 10 * 1024 * 1024              # fits v5e's 16 MiB default scoped VMEM
    rows_cap = max(wo, min(1024, budget // max(per_row, 1)))
    t = max(1, min(n_bdho, rows_cap // wo))
    while t > 1 and pl.cdiv(n_bdho, t) < min_steps:
        t = max(1, t // 2)
    return t


def _patch_merging_kernel(a_ref, b_ref, wa_ref, wb_ref, bias_ref, o_ref, *,
                          inv_k, eps):
    """Fused LayerNorm(4C) + Linear(4C -> E) on one row tile.

    a_ref: (t, 1, Wo, 2C)  hp=0 half of each 2x2 window  ([x0 | x2] channels)
    b_ref: (t, 1, Wo, 2C)  hp=1 half                     ([x1 | x3] channels)
    wa_ref, wb_ref: (2C, Ep) bf16, gamma already folded in, rows permuted to
                    match the in-kernel channel order.
    bias_ref: (1, Ep) f32  == beta @ W.T
    o_ref: (t, Wo, Ep)
    """
    t, _, wo, kc = a_ref.shape
    rows = t * wo
    a = a_ref[...].reshape(rows, kc).astype(jnp.float32)
    b = b_ref[...].reshape(rows, kc).astype(jnp.float32)

    # LayerNorm statistics over the full 4C channel set (split across a/b).
    mean = (jnp.sum(a, axis=-1, keepdims=True)
            + jnp.sum(b, axis=-1, keepdims=True)) * inv_k
    ac = a - mean
    bc = b - mean
    var = (jnp.sum(ac * ac, axis=-1, keepdims=True)
           + jnp.sum(bc * bc, axis=-1, keepdims=True)) * inv_k
    inv = jax.lax.rsqrt(var + eps)

    na = (ac * inv).astype(jnp.bfloat16)
    nb = (bc * inv).astype(jnp.bfloat16)

    # bf16 MXU matmuls with f32 accumulation; gamma is inside the weights,
    # beta is the precomputed output bias.
    acc = jnp.dot(na, wa_ref[...], preferred_element_type=jnp.float32)
    acc = acc + jnp.dot(nb, wb_ref[...], preferred_element_type=jnp.float32)
    acc = acc + bias_ref[...]

    o_ref[...] = acc.reshape(t, wo, -1).astype(o_ref.dtype)


def patch_merging(x, reduction_weight, norm_gamma, norm_beta, *,
                  eps=_LN_EPS, out_dtype=None):
    """PatchMerging forward.

    x:                (B, D, H, W, C)
    reduction_weight: (2C, 4C)  -- nn.Linear(4C, 2C, bias=False).weight
    norm_gamma:       (4C,)
    norm_beta:        (4C,)
    returns           (B, D, ceil(H/2), ceil(W/2), 2C), dtype = out_dtype or x.dtype
    """
    B, D, H, W, C = x.shape
    out_dtype = x.dtype if out_dtype is None else out_dtype

    # Pad H/W up to even (same as F.pad(..., (0,0, 0,W%2, 0,H%2))).  This is
    # the only pre-kernel copy and only happens for odd H/W.
    if (H % 2) or (W % 2):
        x = jnp.pad(x, ((0, 0), (0, 0), (0, H % 2), (0, W % 2), (0, 0)))
    Ho, Wo = x.shape[2] // 2, x.shape[3] // 2
    K = 4 * C
    E = reduction_weight.shape[0]          # 2C

    # Free reshape (no data movement): (B*D*Ho, hp, Wo, wp*C).  The kernel's
    # two input BlockSpecs pick hp=0 / hp=1, so the 2x2 gather happens in the
    # input DMA itself and x is read from HBM exactly once.
    x_r = x.reshape(B * D * Ho, 2, Wo, 2 * C)

    # --- parameter prep (trace-time, tiny) -----------------------------------
    # Fold gamma into the weight and beta into an output-side bias so the
    # kernel epilogue is just (x - mean) * rsqrt(var + eps).
    w_t = reduction_weight.astype(jnp.float32).T               # (K, E)
    wg = norm_gamma.astype(jnp.float32)[:, None] * w_t          # (K, E)
    bias = (norm_beta.astype(jnp.float32) @ w_t)[None, :]       # (1, E)
    # Module channel order is [x0 | x1 | x2 | x3] (g = hp + 2*wp); the kernel's
    # hp=0 chunk carries [x0 | x2] and hp=1 carries [x1 | x3] (wp-major), so
    # permute the weight rows accordingly.
    wg4 = wg.reshape(4, C, E)
    wa = jnp.concatenate([wg4[0], wg4[2]], axis=0).astype(jnp.bfloat16)  # (2C, E)
    wb = jnp.concatenate([wg4[1], wg4[3]], axis=0).astype(jnp.bfloat16)  # (2C, E)

    # Lane-dense output: pad E up to 128 for tiny models, slice afterwards.
    Ep = E if E >= 128 else 128
    if Ep != E:
        wa = jnp.pad(wa, ((0, 0), (0, Ep - E)))
        wb = jnp.pad(wb, ((0, 0), (0, Ep - E)))
        bias = jnp.pad(bias, ((0, 0), (0, Ep - E)))

    # --- tiling ---------------------------------------------------------------
    n_bdho = B * D * Ho
    out_itemsize = np.dtype(out_dtype).itemsize
    t = _choose_ho_tile(n_bdho, Wo, K, Ep,
                        in_bytes=x.dtype.itemsize,
                        out_bytes=out_itemsize,
                        min_steps=_min_grid_steps())
    grid = (pl.cdiv(n_bdho, t),)   # no M-pad; Pallas masks the trailing block

    kernel = functools.partial(_patch_merging_kernel, inv_k=1.0 / K, eps=eps)

    cost = pl.CostEstimate(
        flops=2 * n_bdho * Wo * K * Ep,
        transcendentals=0,
        bytes_accessed=(n_bdho * Wo * K * x.dtype.itemsize   # read x once
                        + 2 * (2 * C) * Ep * 2               # bf16 weights
                        + n_bdho * Wo * Ep * out_itemsize))  # output

    out = pl.pallas_call(
        kernel,
        out_shape=jax.ShapeDtypeStruct((n_bdho, Wo, Ep), out_dtype),
        grid=grid,
        in_specs=[
            pl.BlockSpec((t, 1, Wo, 2 * C), lambda i: (i, 0, 0, 0)),  # hp=0 rows
            pl.BlockSpec((t, 1, Wo, 2 * C), lambda i: (i, 1, 0, 0)),  # hp=1 rows
            pl.BlockSpec((2 * C, Ep), lambda i: (0, 0)),              # resident Wa
            pl.BlockSpec((2 * C, Ep), lambda i: (0, 0)),              # resident Wb
            pl.BlockSpec((1, Ep), lambda i: (0, 0)),                  # resident bias
        ],
        out_specs=pl.BlockSpec((t, Wo, Ep), lambda i: (i, 0, 0)),
        compiler_params=pltpu.CompilerParams(
            dimension_semantics=("parallel",),
            vmem_limit_bytes=48 * 1024 * 1024,
            # Only relevant when the even-pad copy exists; harmless otherwise.
            allow_input_fusion=[True, True, False, False, False],
        ),
        cost_estimate=cost,
    )(x_r, x_r, wa, wb, bias)

    out = out.reshape(B, D, Ho, Wo, Ep)
    if Ep != E:
        out = out[..., :E]
    return out


def _reference(x, reduction_weight, gamma, beta, eps=_LN_EPS):
    """Pure-JAX reference mirroring the PyTorch forward (f32 throughout)."""
    B, D, H, W, C = x.shape
    x = jnp.pad(x, ((0, 0), (0, 0), (0, H % 2), (0, W % 2), (0, 0)))
    x0 = x[:, :, 0::2, 0::2, :]
    x1 = x[:, :, 1::2, 0::2, :]
    x2 = x[:, :, 0::2, 1::2, :]
    x3 = x[:, :, 1::2, 1::2, :]
    xc = jnp.concatenate([x0, x1, x2, x3], axis=-1)
    mean = jnp.mean(xc, axis=-1, keepdims=True)
    var = jnp.mean(jnp.square(xc - mean), axis=-1, keepdims=True)
    xn = (xc - mean) / jnp.sqrt(var + eps) * gamma + beta
    return xn @ reduction_weight.T


if __name__ == "__main__":
    dim = 64                      # C; 4C = 256 contraction, 2C = 128 lane-dense out
    B, D, H, W = 2, 4, 15, 16     # odd H exercises the even-pad branch

    key = jax.random.PRNGKey(0)
    kx, kw, kg, kb = jax.random.split(key, 4)

    x = jax.random.normal(kx, (B, D, H, W, dim), dtype=jnp.float32)
    reduction_weight = 0.02 * jax.random.normal(
        kw, (2 * dim, 4 * dim), dtype=jnp.float32)
    gamma = 1.0 + 0.1 * jax.random.normal(kg, (4 * dim,), dtype=jnp.float32)
    beta = 0.05 * jax.random.normal(kb, (4 * dim,), dtype=jnp.float32)

    out = jax.block_until_ready(patch_merging(x, reduction_weight, gamma, beta))
    ref = jax.block_until_ready(_reference(x, reduction_weight, gamma, beta))

    assert out.shape == ref.shape, (out.shape, ref.shape)
    err = float(jnp.max(jnp.abs(out - ref)))
    # bf16 MXU matmul (with gamma folded into the bf16 weight) vs f32 reference.
    assert err < 2e-2, err
    print("KERNEL_OK")
</pallas_src>

<mosaic_0001>
module attributes {stable_mosaic.version = 11 : i64} {
  func.func @_patch_merging_kernel(%arg0: i32, %arg1: memref<64x1x8x128xf32, #tpu.memory_space<vmem>>, %arg2: memref<64x1x8x128xf32, #tpu.memory_space<vmem>>, %arg3: memref<128x128xbf16, #tpu.memory_space<vmem>>, %arg4: memref<128x128xbf16, #tpu.memory_space<vmem>>, %arg5: memref<1x128xf32, #tpu.memory_space<vmem>>, %arg6: memref<64x8x128xf32, #tpu.memory_space<vmem>>) attributes {dimension_semantics = [#tpu.dimension_semantics<parallel>], iteration_bounds = array<i64: 1>, scalar_prefetch = 0 : i64, scratch_operands = 0 : i64, tpu.core_type = #tpu.core_type<tc>, window_params = [{transform_indices = @transform_0, window_bounds = array<i64: 64, 1, 8, 128>}, {transform_indices = @transform_1, window_bounds = array<i64: 64, 1, 8, 128>}, {pipeline_mode = #tpu.pipeline_mode<synchronous>, transform_indices = @transform_2, window_bounds = array<i64: 128, 128>}, {pipeline_mode = #tpu.pipeline_mode<synchronous>, transform_indices = @transform_3, window_bounds = array<i64: 128, 128>}, {pipeline_mode = #tpu.pipeline_mode<synchronous>, transform_indices = @transform_4, window_bounds = array<i64: 1, 128>}, {transform_indices = @transform_5, window_bounds = array<i64: 64, 8, 128>}]} {
    %c0 = arith.constant 0 : index
    %c0_0 = arith.constant 0 : index
    %c0_1 = arith.constant 0 : index
    %c0_2 = arith.constant 0 : index
    %0 = vector.load %arg1[%c0, %c0_0, %c0_1, %c0_2] : memref<64x1x8x128xf32, #tpu.memory_space<vmem>>, vector<64x1x8x128xf32>
    %1 = vector.shape_cast %0 : vector<64x1x8x128xf32> to vector<512x128xf32>
    %c0_3 = arith.constant 0 : index
    %c0_4 = arith.constant 0 : index
    %c0_5 = arith.constant 0 : index
    %c0_6 = arith.constant 0 : index
    %2 = vector.load %arg2[%c0_3, %c0_4, %c0_5, %c0_6] : memref<64x1x8x128xf32, #tpu.memory_space<vmem>>, vector<64x1x8x128xf32>
    %3 = vector.shape_cast %2 : vector<64x1x8x128xf32> to vector<512x128xf32>
    %cst = arith.constant dense<0.000000e+00> : vector<512xf32>
    %4 = vector.multi_reduction <add>, %1, %cst [1] : vector<512x128xf32> to vector<512xf32>
    %5 = vector.shape_cast %4 : vector<512xf32> to vector<512x1xf32>
    %cst_7 = arith.constant dense<0.000000e+00> : vector<512xf32>
    %6 = vector.multi_reduction <add>, %3, %cst_7 [1] : vector<512x128xf32> to vector<512xf32>
    %7 = vector.shape_cast %6 : vector<512xf32> to vector<512x1xf32>
    %8 = arith.addf %5, %7 : vector<512x1xf32>
    %cst_8 = arith.constant 3.906250e-03 : f32
    %9 = vector.broadcast %cst_8 : f32 to vector<512x1xf32>
    %10 = arith.mulf %8, %9 : vector<512x1xf32>
    %11 = vector.broadcast %10 : vector<512x1xf32> to vector<512x128xf32>
    %12 = arith.subf %1, %11 : vector<512x128xf32>
    %13 = vector.broadcast %10 : vector<512x1xf32> to vector<512x128xf32>
    %14 = arith.subf %3, %13 : vector<512x128xf32>
    %15 = arith.mulf %12, %12 : vector<512x128xf32>
    %cst_9 = arith.constant dense<0.000000e+00> : vector<512xf32>
    %16 = vector.multi_reduction <add>, %15, %cst_9 [1] : vector<512x128xf32> to vector<512xf32>
    %17 = vector.shape_cast %16 : vector<512xf32> to vector<512x1xf32>
    %18 = arith.mulf %14, %14 : vector<512x128xf32>
    %cst_10 = arith.constant dense<0.000000e+00> : vector<512xf32>
    %19 = vector.multi_reduction <add>, %18, %cst_10 [1] : vector<512x128xf32> to vector<512xf32>
    %20 = vector.shape_cast %19 : vector<512xf32> to vector<512x1xf32>
    %21 = arith.addf %17, %20 : vector<512x1xf32>
    %cst_11 = arith.constant 3.906250e-03 : f32
    %22 = vector.broadcast %cst_11 : f32 to vector<512x1xf32>
    %23 = arith.mulf %21, %22 : vector<512x1xf32>
    %cst_12 = arith.constant 9.99999974E-6 : f32
    %24 = vector.broadcast %cst_12 : f32 to vector<512x1xf32>
    %25 = arith.addf %23, %24 : vector<512x1xf32>
    %26 = math.rsqrt %25 : vector<512x1xf32>
    %27 = vector.broadcast %26 : vector<512x1xf32> to vector<512x128xf32>
    %28 = arith.mulf %12, %27 : vector<512x128xf32>
    %29 = arith.truncf %28 : vector<512x128xf32> to vector<512x128xbf16>
    %30 = vector.broadcast %26 : vector<512x1xf32> to vector<512x128xf32>
    %31 = arith.mulf %14, %30 : vector<512x128xf32>
    %32 = arith.truncf %31 : vector<512x128xf32> to vector<512x128xbf16>
    %c0_13 = arith.constant 0 : index
    %c0_14 = arith.constant 0 : index
    %33 = vector.load %arg3[%c0_13, %c0_14] : memref<128x128xbf16, #tpu.memory_space<vmem>>, vector<128x128xbf16>
    %cst_15 = arith.constant dense<0.000000e+00> : vector<512x128xf32>
    %34 = tpu.matmul %29, %33, %cst_15 {dimension_numbers = #tpu.dot_dimension_numbers<[1], [0], [0], [1], [0, 0, 1, 1], [], []>} : vector<512x128xbf16>, vector<128x128xbf16>, vector<512x128xf32> -> vector<512x128xf32>
    %c0_16 = arith.constant 0 : index
    %c0_17 = arith.constant 0 : index
    %35 = vector.load %arg4[%c0_16, %c0_17] : memref<128x128xbf16, #tpu.memory_space<vmem>>, vector<128x128xbf16>
    %cst_18 = arith.constant dense<0.000000e+00> : vector<512x128xf32>
    %36 = tpu.matmul %32, %35, %cst_18 {dimension_numbers = #tpu.dot_dimension_numbers<[1], [0], [0], [1], [0, 0, 1, 1], [], []>} : vector<512x128xbf16>, vector<128x128xbf16>, vector<512x128xf32> -> vector<512x128xf32>
    %37 = arith.addf %34, %36 : vector<512x128xf32>
    %c0_19 = arith.constant 0 : index
    %c0_20 = arith.constant 0 : index
    %38 = vector.load %arg5[%c0_19, %c0_20] : memref<1x128xf32, #tpu.memory_space<vmem>>, vector<1x128xf32>
    %39 = vector.broadcast %38 : vector<1x128xf32> to vector<512x128xf32>
    %40 = arith.addf %37, %39 : vector<512x128xf32>
    %41 = vector.shape_cast %40 : vector<512x128xf32> to vector<64x8x128xf32>
    %c0_21 = arith.constant 0 : index
    %c0_22 = arith.constant 0 : index
    %c0_23 = arith.constant 0 : index
    %42 = vector.load %arg6[%c0_21, %c0_22, %c0_23] : memref<64x8x128xf32, #tpu.memory_space<vmem>>, vector<64x8x128xf32>
    tpu.vector_store %arg6[%c0_21, %c0_22, %c0_23], %41 {strides = array<i32>} : memref<64x8x128xf32, #tpu.memory_space<vmem>>, vector<64x8x128xf32>,
    return
  }
  func.func @transform_0(%arg0: i32) -> (i32, i32, i32, i32) {
    %c0_i32 = arith.constant 0 : i32
    %c0_i32_0 = arith.constant 0 : i32
    %c0_i32_1 = arith.constant 0 : i32
    %c0_i32_2 = arith.constant 0 : i32
    return %arg0, %c0_i32, %c0_i32_0, %c0_i32_1 : i32, i32, i32, i32
  }
  func.func @transform_1(%arg0: i32) -> (i32, i32, i32, i32) {
    %c1_i32 = arith.constant 1 : i32
    %c0_i32 = arith.constant 0 : i32
    %c0_i32_0 = arith.constant 0 : i32
    %c0_i32_1 = arith.constant 0 : i32
    return %arg0, %c1_i32, %c0_i32, %c0_i32_0 : i32, i32, i32, i32
  }
  func.func @transform_2(%arg0: i32) -> (i32, i32) {
    %c0_i32 = arith.constant 0 : i32
    %c0_i32_0 = arith.constant 0 : i32
    %c0_i32_1 = arith.constant 0 : i32
    return %c0_i32, %c0_i32_0 : i32, i32
  }
  func.func @transform_3(%arg0: i32) -> (i32, i32) {
    %c0_i32 = arith.constant 0 : i32
    %c0_i32_0 = arith.constant 0 : i32
    %c0_i32_1 = arith.constant 0 : i32
    return %c0_i32, %c0_i32_0 : i32, i32
  }
  func.func @transform_4(%arg0: i32) -> (i32, i32) {
    %c0_i32 = arith.constant 0 : i32
    %c0_i32_0 = arith.constant 0 : i32
    %c0_i32_1 = arith.constant 0 : i32
    return %c0_i32, %c0_i32_0 : i32, i32
  }
  func.func @transform_5(%arg0: i32) -> (i32, i32, i32) {
    %c0_i32 = arith.constant 0 : i32
    %c0_i32_0 = arith.constant 0 : i32
    %c0_i32_1 = arith.constant 0 : i32
    return %arg0, %c0_i32, %c0_i32_0 : i32, i32, i32
  }
}

</mosaic_0001>

<bundles_post_ra>
// kernel: tpu_custom_call.1
= control target key start
LH: loop header
LB: loop body
LE: loop exit
PB: predicated region body
PF: predicated region fallthrough
CT: control target
= control target key end

     0   :  { %10 = vsyncpa [#allocation3], 0  ;;  %s4332_s0 = inlined_call_operand.hbm [shape: f32[64,2,8,128], index: 0, kind: input, shape index: {}]   ;;  %s4333_s1 = inlined_call_operand.hbm [shape: f32[64,2,8,128], index: 1, kind: input, shape index: {}]   ;;  %s4334_s2 = inlined_call_operand.hbm [shape: bf16[128,128], index: 2, kind: input, shape index: {}]   ;;  %s4335_s3 = inlined_call_operand.hbm [shape: bf16[128,128], index: 3, kind: input, shape index: {}]   ;;  %s4336_s4 = inlined_call_operand.vmem [shape: f32[1,128], index: 4, kind: input, shape index: {}]   ;;  %s4337_s5 = inlined_call_operand.hbm [shape: f32[64,8,128], index: 5, kind: output, shape index: {}]  }
   0x1   :  { %11 = vsyncpa [#allocation6], 0 }
   0x2   :  { %12 = vsyncpa [#allocation9], 0 }
   0x3   :  { %13 = vsyncpa [#allocation4], 0  ;;  %s3134_s20 = scalar_lea.hbm %s4333_s1, 128  ;;  %s3091_s21 = smov [#allocation5]  }
   0x4   :  { %s32_s22 = sshll.u32 %s3091_s21, 4  ;;  %s3092_s23 = smov [#allocation2]   ;;  %s33_s22 = int_to_ptr.vmem [resolvable:$true] %s32_s22 }
   0x5   :  { %s19_s24 = sshll.u32 %s3092_s23, 4  ;;  %s2994_s27 = scalar_lea.hbm %s4333_s1, 8320  ;;  %s3136_s24 = int_to_ptr.vmem [resolvable:$true] %s19_s24 }
   0x6   :  { %p2971_p0 = scmp.ne.s32.totalorder %s3134_s20, %s2994_s27  ;;  %s2972_s30 = scalar_lea.hbm %s4333_s1, 16384 }
   0x7   :  { %p2973_p1 = scmp.lt.u32.totalorder %s3134_s20, %s4333_s1  ;;  %p2974_p2 = scmp.lt.u32.totalorder %s2972_s30, %s2994_s27 }
   0x8   :  { %p2976_p4 = scmp.lt.u32.totalorder %s2994_s27, %s3134_s20 }
   0x9   :  { %p2975_p3 = por %p2974_p2, %p2973_p1 }
   0xb   :  { %p2977_p5 = por %p2976_p4, %p2975_p3 }
   0xd   :  { %p2978_p6 = pnand %p2977_p5, %p2971_p0 }
   0xf   :  { %2981 = shalt.err (!%p2978_p6)
}
  0x10   :  { %s2982_s8 = scalar_lea.vmem %s33_s22, 8192  ;;  %p2987_p8 = scmp.lt.s32.totalorder %s33_s22, %s33_s22 }
  0x11   :  { %p2983_p7 = scmp.ne.s32.totalorder %s33_s22, %s2982_s8  ;;  %p2988_p9 = scmp.lt.s32.totalorder %s2982_s8, %s2982_s8 }
  0x13   :  { %p2989_p10 = por %p2988_p9, %p2987_p8 }
  0x15   :  { %p2990_p11 = pnand %p2989_p10, %p2983_p7 }
  0x17   :  { %2993 = shalt.err (!%p2990_p11)
}
  0x18   :  { %s3093_s9 = smov 256   ;;  %s3094_s10 = smov 128  }
  0x19   :  { %s3095_s11 = smov 8   ;;  %s2995_s13 = scalar_lea.hbm %s4332_s0, 8192 }
  0x1a   :  { %38 = dma.hbm_to_vmem [thread:$0]  %s3134_s20, 8192, %s33_s22, [#allocation6], %s3093_s9, %s3094_s10, %s3095_s11  }
  0x1b   :  { %p2996_p12 = scmp.ne.s32.totalorder %s4332_s0, %s2995_s13  ;;  %s2997_s18 = scalar_lea.hbm %s4332_s0, 16384 }
  0x1c   :  { %p2998_p13 = scmp.lt.u32.totalorder %s2997_s18, %s2995_s13  ;;  %p2999_p0 = scmp.lt.u32.totalorder %s2995_s13, %s4332_s0 }
  0x1e   :  { %p3000_p1 = por %p2999_p0, %p2998_p13 }
  0x20   :  { %p3001_p2 = pnand %p3000_p1, %p2996_p12 }
  0x22   :  { %3004 = shalt.err (!%p3001_p2)
}
  0x23   :  { %s3005_s20 = scalar_lea.vmem %s3136_s24, 8192  ;;  %p3010_p4 = scmp.lt.s32.totalorder %s3136_s24, %s3136_s24 }
  0x24   :  { %p3006_p3 = scmp.ne.s32.totalorder %s3136_s24, %s3005_s20  ;;  %p3011_p5 = scmp.lt.s32.totalorder %s3005_s20, %s3005_s20 }
  0x26   :  { %p3012_p6 = por %p3011_p5, %p3010_p4 }
  0x28   :  { %p3013_p7 = pnand %p3012_p6, %p3006_p3 }
  0x2a   :  { %3016 = shalt.err (!%p3013_p7)
}
  0x2b   :  { %25 = dma.hbm_to_vmem [thread:$0]  %s4332_s0, 8192, %s3136_s24, [#allocation3], %s3093_s9, %s3094_s10, %s3095_s11  }
  0x2c   :  { %s3096_s25 = smov [#allocation7]   ;;  %s3017_s29 = scalar_lea.hbm %s4334_s2, 1024 }
  0x2d   :  { %s44_s26 = sshll.u32 %s3096_s25, 4  ;;  %p3018_p8 = scmp.ne.s32.totalorder %s4334_s2, %s3017_s29  ;;  %s45_s26 = int_to_ptr.vmem [resolvable:$true] %s44_s26 }
  0x2e   :  { %p3021_p9 = scmp.lt.u32.totalorder %s3017_s29, %s4334_s2 }
  0x30   :  { %p3023_p10 = pnand %p3021_p9, %p3018_p8 }
  0x32   :  { %3026 = shalt.err (!%p3023_p10)
}
  0x33   :  { %s3027_s1 = scalar_lea.vmem %s45_s26, 1024  ;;  %p3032_p12 = scmp.lt.s32.totalorder %s45_s26, %s45_s26 }
  0x34   :  { %p3028_p11 = scmp.ne.s32.totalorder %s45_s26, %s3027_s1  ;;  %p3033_p13 = scmp.lt.s32.totalorder %s3027_s1, %s3027_s1 }
  0x36   :  { %p3034_p0 = por %p3033_p13, %p3032_p12 }
  0x38   :  { %p3035_p1 = pnand %p3034_p0, %p3028_p11 }
  0x3a   :  { %3038 = shalt.err (!%p3035_p1)
}
  0x3b   :  { %s3097_s0 = smov 64   ;;  %s3098_s24 = smov 4  }
  0x3c   :  { %50 = dma.hbm_to_vmem [thread:$0]  %s4334_s2, 1024, %s45_s26, [#allocation6], %s3097_s0, %s3097_s0, %s3098_s24  }
  0x3d   :  { %s3099_s13 = smov [#allocation8]   ;;  %s3039_s17 = scalar_lea.hbm %s4335_s3, 1024 }
  0x3e   :  { %s56_s14 = sshll.u32 %s3099_s13, 4  ;;  %p3040_p2 = scmp.ne.s32.totalorder %s4335_s3, %s3039_s17  ;;  %s57_s14 = int_to_ptr.vmem [resolvable:$true] %s56_s14 }
  0x3f   :  { %p3043_p3 = scmp.lt.u32.totalorder %s3039_s17, %s4335_s3 }
  0x41   :  { %p3045_p4 = pnand %p3043_p3, %p3040_p2 }
  0x43   :  { %3048 = shalt.err (!%p3045_p4)
}
  0x44   :  { %s3049_s22 = scalar_lea.vmem %s57_s14, 1024  ;;  %p3054_p6 = scmp.lt.s32.totalorder %s57_s14, %s57_s14 }
  0x45   :  { %p3050_p5 = scmp.ne.s32.totalorder %s57_s14, %s3049_s22  ;;  %p3055_p7 = scmp.lt.s32.totalorder %s3049_s22, %s3049_s22 }
  0x47   :  { %p3056_p8 = por %p3055_p7, %p3054_p6 }
  0x49   :  { %p3057_p9 = pnand %p3056_p8, %p3050_p5 }
  0x4b   :  { %3060 = shalt.err (!%p3057_p9)
}
  0x4c   :  { %62 = dma.hbm_to_vmem [thread:$0]  %s4335_s3, 1024, %s57_s14, [#allocation9], %s3097_s0, %s3097_s0, %s3098_s24  }
  0x4d   :  { %3083 = dma.done.wait [#allocation3], 8192  }
  0x4e   :  { %3084 = vsyncadd [#allocation3], 4294959104 }
  0x4f   :  { %3085 = dma.done.wait [#allocation6], 9216  }
  0x50   :  { %3086 = vsyncadd [#allocation6], 4294958080 }
  0x51   :  { %3087 = dma.done.wait [#allocation9], 1024  }
  0x52   :  { %3088 = vsyncadd [#allocation9], 4294966272  ;;  %v3199_v0 = vld [vmem:[#allocation5] sm:$0xff]  ;;  %v3205_v2 = vld [vmem:[#allocation5 + $0x8] sm:$0xff] }
  0x53   :  { %v3201_v1 = vld [vmem:[#allocation2] sm:$0xff]  ;;  %334 = vadd.xlane.f32.xlu1 %v3199_v0  ;;  %v3207_v3 = vld [vmem:[#allocation2 + $0x8] sm:$0xff]  ;;  %v3211_v4 = vld [vmem:[#allocation2 + $0x18] sm:$0xff] }
  0x54   :  { %206 = vadd.xlane.f32.xlu0 %v3201_v1  ;;  %v3213_v5 = vld [vmem:[#allocation2 + $0x10] sm:$0xff]  ;;  %v3217_v6 = vld [vmem:[#allocation5 + $0x18] sm:$0xff]  ;;  %v3223_v8 = vld [vmem:[#allocation2 + $0x28] sm:$0xff] }
  0x55   :  { %v3219_v7 = vld [vmem:[#allocation5 + $0x10] sm:$0xff]  ;;  %v3225_v9 = vld [vmem:[#allocation2 + $0x20] sm:$0xff]  ;;  %v3229_v10 = vld [vmem:[#allocation5 + $0x28] sm:$0xff] }
  0x56   :  { %v3231_v11 = vld [vmem:[#allocation5 + $0x20] sm:$0xff]  ;;  %v3235_v12 = vld [vmem:[#allocation2 + $0x38] sm:$0xff]  ;;  %v3237_v13 = vld [vmem:[#allocation2 + $0x30] sm:$0xff] }
  0x57   :  { %336 = vadd.xlane.f32.xlu1 %v3205_v2  ;;  %v3241_v14 = vld [vmem:[#allocation5 + $0x38] sm:$0xff]  ;;  %v3243_v15 = vld [vmem:[#allocation5 + $0x30] sm:$0xff]  ;;  %v3245_v16 = vld [vmem:[#allocation2 + $0x48] sm:$0xff] }
  0x58   :  { %208 = vadd.xlane.f32.xlu0 %v3207_v3  ;;  %v3249_v17 = vld [vmem:[#allocation2 + $0x40] sm:$0xff]  ;;  %v3251_v18 = vld [vmem:[#allocation5 + $0x48] sm:$0xff]  ;;  %v3257_v20 = vld [vmem:[#allocation2 + $0x58] sm:$0xff] }
  0x59   :  { %v3253_v19 = vld [vmem:[#allocation5 + $0x40] sm:$0xff]  ;;  %v3261_v21 = vld [vmem:[#allocation2 + $0x50] sm:$0xff]  ;;  %v3265_v22 = vld [vmem:[#allocation5 + $0x58] sm:$0xff] }
  0x5a   :  { %v3267_v23 = vld [vmem:[#allocation5 + $0x50] sm:$0xff]  ;;  %v3271_v24 = vld [vmem:[#allocation2 + $0x68] sm:$0xff]  ;;  %v3273_v25 = vld [vmem:[#allocation2 + $0x60] sm:$0xff] }
  0x5b   :  { %212 = vadd.xlane.f32.xlu1 %v3211_v4  ;;  %v3277_v26 = vld [vmem:[#allocation5 + $0x68] sm:$0xff]  ;;  %v3279_v27 = vld [vmem:[#allocation5 + $0x60] sm:$0xff]  ;;  %v3283_v28 = vld [vmem:[#allocation2 + $0x78] sm:$0xff] }
  0x5c   :  { %210 = vadd.xlane.f32.xlu0 %v3213_v5  ;;  %v3285_v29 = vld [vmem:[#allocation2 + $0x70] sm:$0xff]  ;;  %v3289_v30 = vld [vmem:[#allocation5 + $0x78] sm:$0xff]  ;;  %v3295_v32 = vld [vmem:[#allocation2 + $0x88] sm:$0xff] }
  0x5d   :  { %v3291_v31 = vld [vmem:[#allocation5 + $0x70] sm:$0xff]  ;;  %v3297_v33 = vld [vmem:[#allocation2 + $0x80] sm:$0xff]  ;;  %v3301_v34 = vld [vmem:[#allocation5 + $0x88] sm:$0xff] }
  0x5e   :  { %v3303_v35 = vld [vmem:[#allocation5 + $0x80] sm:$0xff]  ;;  %v3307_v36 = vld [vmem:[#allocation2 + $0x98] sm:$0xff]  ;;  %v3309_v37 = vld [vmem:[#allocation2 + $0x90] sm:$0xff] }
  0x5f   :  { %340 = vadd.xlane.f32.xlu1 %v3217_v6  ;;  %v3313_v38 = vld [vmem:[#allocation5 + $0x98] sm:$0xff]  ;;  %v3315_v39 = vld [vmem:[#allocation5 + $0x90] sm:$0xff]  ;;  %v3319_v40 = vld [vmem:[#allocation2 + $0xa8] sm:$0xff] }
  0x60   :  { %338 = vadd.xlane.f32.xlu0 %v3219_v7  ;;  %v3321_v41 = vld [vmem:[#allocation2 + $0xa0] sm:$0xff]  ;;  %v3325_v42 = vld [vmem:[#allocation5 + $0xa8] sm:$0xff]  ;;  %v101_v44 = vld [vmem:[#allocation2 + $0xb8] sm:$0xff] }
  0x61   :  { %4412 = vst [vmem:[#allocation15_spill] sm:$0xff] %v3321_v41  ;;  %4413 = vst [vmem:[#allocation16_spill] sm:$0xff] %v3325_v42  ;;  %v3327_v43 = vld [vmem:[#allocation5 + $0xa0] sm:$0xff]  ;;  %v100_v45 = vld [vmem:[#allocation2 + $0xb0] sm:$0xff] }
  0x62   :  { %4414 = vst [vmem:[#allocation17_spill] sm:$0xff] %v3327_v43  ;;  %v165_v46 = vld [vmem:[#allocation5 + $0xb8] sm:$0xff]  ;;  %v164_v47 = vld [vmem:[#allocation5 + $0xb0] sm:$0xff]  ;;  %v103_v48 = vld [vmem:[#allocation2 + $0xc8] sm:$0xff] }
  0x63   :  { %216 = vadd.xlane.f32.xlu1 %v3223_v8  ;;  %v102_v49 = vld [vmem:[#allocation2 + $0xc0] sm:$0xff]  ;;  %v167_v50 = vld [vmem:[#allocation5 + $0xc8] sm:$0xff]  ;;  %v105_v52 = vld [vmem:[#allocation2 + $0xd8] sm:$0xff] }
  0x64   :  { %214 = vadd.xlane.f32.xlu0 %v3225_v9  ;;  %v166_v51 = vld [vmem:[#allocation5 + $0xc0] sm:$0xff]  ;;  %v104_v53 = vld [vmem:[#allocation2 + $0xd0] sm:$0xff]  ;;  %v169_v54 = vld [vmem:[#allocation5 + $0xd8] sm:$0xff] }
  0x65   :  { %v168_v55 = vld [vmem:[#allocation5 + $0xd0] sm:$0xff]  ;;  %v107_v56 = vld [vmem:[#allocation2 + $0xe8] sm:$0xff]  ;;  %v106_v57 = vld [vmem:[#allocation2 + $0xe0] sm:$0xff] }
  0x66   :  { %v171_v58 = vld [vmem:[#allocation5 + $0xe8] sm:$0xff]  ;;  %v170_v59 = vld [vmem:[#allocation5 + $0xe0] sm:$0xff]  ;;  %v109_v60 = vld [vmem:[#allocation2 + $0xf8] sm:$0xff] }
  0x67   :  { %344 = vadd.xlane.f32.xlu1 %v3229_v10  ;;  %v108_v61 = vld [vmem:[#allocation2 + $0xf0] sm:$0xff]  ;;  %v173_v62 = vld [vmem:[#allocation5 + $0xf8] sm:$0xff] }
  0x68   :  { %342 = vadd.xlane.f32.xlu0 %v3231_v11  ;;  %v172_v63 = vld [vmem:[#allocation5 + $0xf0] sm:$0xff] }
  0x6b   :  { %220 = vadd.xlane.f32.xlu1 %v3235_v12 }
  0x6c   :  { %218 = vadd.xlane.f32.xlu0 %v3237_v13 }
  0x6f   :  { %348 = vadd.xlane.f32.xlu1 %v3241_v14 }
  0x70   :  { %346 = vadd.xlane.f32.xlu0 %v3243_v15 }
  0x73   :  { %224 = vadd.xlane.f32.xlu1 %v3245_v16 }
  0x74   :  { %222 = vadd.xlane.f32.xlu0 %v3249_v17 }
  0x77   :  { %352 = vadd.xlane.f32.xlu1 %v3251_v18 }
  0x78   :  { %350 = vadd.xlane.f32.xlu0 %v3253_v19 }
  0x7b   :  { %228 = vadd.xlane.f32.xlu1 %v3257_v20 }
  0x7c   :  { %226 = vadd.xlane.f32.xlu0 %v3261_v21 }
  0x7f   :  { %356 = vadd.xlane.f32.xlu1 %v3265_v22 }
  0x80   :  { %354 = vadd.xlane.f32.xlu0 %v3267_v23 }
  0x83   :  { %232 = vadd.xlane.f32.xlu1 %v3271_v24 }
  0x84   :  { %230 = vadd.xlane.f32.xlu0 %v3273_v25 }
  0x87   :  { %360 = vadd.xlane.f32.xlu1 %v3277_v26 }
  0x88   :  { %358 = vadd.xlane.f32.xlu0 %v3279_v27 }
  0x8b   :  { %236 = vadd.xlane.f32.xlu1 %v3283_v28 }
  0x8c   :  { %234 = vadd.xlane.f32.xlu0 %v3285_v29 }
  0x8f   :  { %364 = vadd.xlane.f32.xlu1 %v3289_v30 }
  0x90   :  { %362 = vadd.xlane.f32.xlu0 %v3291_v31 }
  0x93   :  { %240 = vadd.xlane.f32.xlu1 %v3295_v32 }
  0x94   :  { %238 = vadd.xlane.f32.xlu0 %v3297_v33 }
  0x97   :  { %368 = vadd.xlane.f32.xlu1 %v3301_v34 }
  0x98   :  { %366 = vadd.xlane.f32.xlu0 %v3303_v35 }
  0x9b   :  { %244 = vadd.xlane.f32.xlu1 %v3307_v36 }
  0x9c   :  { %242 = vadd.xlane.f32.xlu0 %v3309_v37 }
  0x9f   :  { %372 = vadd.xlane.f32.xlu1 %v3313_v38 }
  0xa0   :  { %370 = vadd.xlane.f32.xlu0 %v3315_v39 }
  0xa3   :  { %248 = vadd.xlane.f32.xlu1 %v3319_v40 }
  0xa4   :  { %246 = vadd.xlane.f32.xlu0 %v3321_v41 }
  0xa7   :  { %376 = vadd.xlane.f32.xlu1 %v3325_v42 }
  0xa8   :  { %374 = vadd.xlane.f32.xlu0 %v3327_v43 }
  0xab   :  { %252 = vadd.xlane.f32.xlu1 %v101_v44  ;;  %v111_v44 = vld [vmem:[#allocation2 + $0x108] sm:$0xff] }
  0xac   :  { %250 = vadd.xlane.f32.xlu0 %v100_v45  ;;  %v110_v45 = vld [vmem:[#allocation2 + $0x100] sm:$0xff] }
  0xaf   :  { %380 = vadd.xlane.f32.xlu1 %v165_v46  ;;  %v175_v46 = vld [vmem:[#allocation5 + $0x108] sm:$0xff] }
  0xb0   :  { %378 = vadd.xlane.f32.xlu0 %v164_v47  ;;  %v174_v47 = vld [vmem:[#allocation5 + $0x100] sm:$0xff] }
  0xb3   :  { %256 = vadd.xlane.f32.xlu1 %v103_v48  ;;  %v113_v48 = vld [vmem:[#allocation2 + $0x118] sm:$0xff] }
  0xb4   :  { %254 = vadd.xlane.f32.xlu0 %v102_v49  ;;  %v112_v49 = vld [vmem:[#allocation2 + $0x110] sm:$0xff] }
  0xb7   :  { %384 = vadd.xlane.f32.xlu1 %v167_v50  ;;  %v177_v50 = vld [vmem:[#allocation5 + $0x118] sm:$0xff] }
  0xb8   :  { %382 = vadd.xlane.f32.xlu0 %v166_v51  ;;  %v176_v51 = vld [vmem:[#allocation5 + $0x110] sm:$0xff] }
  0xbb   :  { %260 = vadd.xlane.f32.xlu1 %v105_v52 }
  0xbc   :  { %258 = vadd.xlane.f32.xlu0 %v104_v53 }
  0xbf   :  { %388 = vadd.xlane.f32.xlu1 %v169_v54  ;;  %v115_v54 = vld [vmem:[#allocation2 + $0x128] sm:$0xff] }
  0xc0   :  { %386 = vadd.xlane.f32.xlu0 %v168_v55  ;;  %v114_v55 = vld [vmem:[#allocation2 + $0x120] sm:$0xff] }
  0xc3   :  { %264 = vadd.xlane.f32.xlu1 %v107_v56 }
  0xc4   :  { %262 = vadd.xlane.f32.xlu0 %v106_v57 }
  0xc7   :  { %392 = vadd.xlane.f32.xlu1 %v171_v58  ;;  %v179_v58 = vld [vmem:[#allocation5 + $0x128] sm:$0xff] }
  0xc8   :  { %390 = vadd.xlane.f32.xlu0 %v170_v59  ;;  %v178_v59 = vld [vmem:[#allocation5 + $0x120] sm:$0xff] }
  0xcb   :  { %268 = vadd.xlane.f32.xlu1 %v109_v60 }
  0xcc   :  { %266 = vadd.xlane.f32.xlu0 %v108_v61 }
  0xcf   :  { %396 = vadd.xlane.f32.xlu1 %v173_v62  ;;  %v117_v62 = vld [vmem:[#allocation2 + $0x138] sm:$0xff] }
  0xd0   :  { %394 = vadd.xlane.f32.xlu0 %v172_v63  ;;  %v116_v63 = vld [vmem:[#allocation2 + $0x130] sm:$0xff] }
  0xd3   :  { %272 = vadd.xlane.f32.xlu1 %v111_v44 }
  0xd4   :  { %270 = vadd.xlane.f32.xlu0 %v110_v45 }
  0xd7   :  { %400 = vadd.xlane.f32.xlu1 %v175_v46  ;;  %v181_v46 = vld [vmem:[#allocation5 + $0x138] sm:$0xff] }
  0xd8   :  { %398 = vadd.xlane.f32.xlu0 %v174_v47  ;;  %v180_v47 = vld [vmem:[#allocation5 + $0x130] sm:$0xff] }
  0xdb   :  { %276 = vadd.xlane.f32.xlu1 %v113_v48 }
  0xdc   :  { %274 = vadd.xlane.f32.xlu0 %v112_v49 }
  0xdf   :  { %404 = vadd.xlane.f32.xlu1 %v177_v50 }
  0xe0   :  { %402 = vadd.xlane.f32.xlu0 %v176_v51  ;;  %v335_v52 = vpop.xlane.xlu1 %334 }
  0xe1   :  { %v207_v53 = vpop.xlane.xlu0 %206 }
  0xe2   :  { %v462_v48 = vadd.f32 %v335_v52, %v207_v53 }
  0xe3   :  { %280 = vadd.xlane.f32.xlu1 %v115_v54  ;;  %v119_v54 = vld [vmem:[#allocation2 + $0x148] sm:$0xff] }
  0xe4   :  { %278 = vadd.xlane.f32.xlu0 %v114_v55  ;;  %v337_v56 = vpop.xlane.xlu1 %336  ;;  %v118_v55 = vld [vmem:[#allocation2 + $0x140] sm:$0xff] }
  0xe5   :  { %v209_v57 = vpop.xlane.xlu0 %208 }
  0xe6   :  { %v463_v49 = vadd.f32 %v337_v56, %v209_v57 }
  0xe7   :  { %408 = vadd.xlane.f32.xlu1 %v179_v58  ;;  %v526_v58 = vmul.f32 0.00390625, %v462_v48 }
  0xe8   :  { %406 = vadd.xlane.f32.xlu0 %v178_v59  ;;  %v213_v60 = vpop.xlane.xlu1 %212  ;;  %v527_v59 = vmul.f32 0.00390625, %v463_v49 }
  0xe9   :  { %v211_v61 = vpop.xlane.xlu0 %210  ;;  %v3332_v41 = vsub.f32 %v3201_v1, %v526_v58 }
  0xea   :  { %v3335_v52 = vsub.f32 %v3207_v3, %v527_v59  ;;  %v3349_v1 = vsub.f32 %v3205_v2, %v527_v59  ;;  %v121_v59 = vld [vmem:[#allocation2 + $0x158] sm:$0xff] }
  0xeb   :  { %284 = vadd.xlane.f32.xlu1 %v117_v62  ;;  %v183_v62 = vld [vmem:[#allocation5 + $0x148] sm:$0xff]  ;;  %4415 = vst [vmem:[#allocation18_spill] sm:$0xff] %v3332_v41  ;;  %v718_v57 = vmul.f32 %v3332_v41, %v3332_v41 }
  0xec   :  { %282 = vadd.xlane.f32.xlu0 %v116_v63  ;;  %v341_v44 = vpop.xlane.xlu1 %340  ;;  %v182_v63 = vld [vmem:[#allocation5 + $0x140] sm:$0xff]  ;;  %4416 = vst [vmem:[#allocation19_spill] sm:$0xff] %v3335_v52 }
  0xed   :  { %v339_v45 = vpop.xlane.xlu0 %338  ;;  %v465_v49 = vadd.f32 %v341_v44, %v213_v60  ;;  %v184_v44 = vld [vmem:[#allocation5 + $0x150] sm:$0xff] }
  0xef   :  { %412 = vadd.xlane.f32.xlu1 %v181_v46  ;;  %v719_v46 = vmul.f32 %v3335_v52, %v3335_v52  ;;  %v2742_v52 = vld [vmem:[#allocation7] sm:$0xff]  }
  0xf0   :  { %410 = vadd.xlane.f32.xlu0 %v180_v47  ;;  %v217_v50 = vpop.xlane.xlu1 %216  ;;  %v3346_v47 = vsub.f32 %v3199_v0, %v526_v58  ;;  %v120_v58 = vld [vmem:[#allocation2 + $0x150] sm:$0xff]  ;;  %2587 = vmatprep.subr.bf16.mxu0 %v2742_v52 }
  0xf1   :  { %v215_v51 = vpop.xlane.xlu0 %214  ;;  %2588 = vmatpush3.bf16.msra.mxu0 %v2742_v52  ;;  %v2745_v52 = vld [vmem:[#allocation8 + $0x10] sm:$0xff]  }
  0xf2   :  { %4417 = vst [vmem:[#allocation20_spill] sm:$0xff] %v3346_v47 }
  0xf3   :  { %288 = vadd.xlane.f32.xlu1 %v119_v54  ;;  %v464_v54 = vadd.f32 %v339_v45, %v211_v61  ;;  %v185_v45 = vld [vmem:[#allocation5 + $0x158] sm:$0xff] }
  0xf4   :  { %286 = vadd.xlane.f32.xlu0 %v118_v55  ;;  %v345_v43 = vpop.xlane.xlu1 %344  ;;  %v910_v55 = vmul.f32 %v3346_v47, %v3346_v47  ;;  %v2741_v47 = vld [vmem:[#allocation8] sm:$0xff]  }
  0xf5   :  { %v343_v42 = vpop.xlane.xlu0 %342  ;;  %2507 = vmatprep.subr.bf16.mxu1 %v2741_v47 }
  0xf6   :  { %v466_v41 = vadd.f32 %v343_v42, %v215_v51  ;;  %v186_v51 = vld [vmem:[#allocation5 + $0x160] sm:$0xff]  ;;  %2508 = vmatpush3.bf16.msra.mxu1 %v2741_v47  ;;  %v2746_v47 = vld [vmem:[#allocation7 + $0x10] sm:$0xff]  }
  0xf7   :  { %416 = vadd.xlane.f32.xlu1 %v183_v62  ;;  %v911_v62 = vmul.f32 %v3349_v1, %v3349_v1 }
  0xf8   :  { %414 = vadd.xlane.f32.xlu0 %v182_v63  ;;  %v3337_v53 = vpop.xlane.xlu1 %220  ;;  %v529_v63 = vmul.f32 0.00390625, %v465_v49 }
  0xf9   :  { %v3339_v56 = vpop.xlane.xlu0 %218 }
  0xfb   :  { %784 = vadd.xlane.f32.xlu1 %v719_v46  ;;  %v3368_v46 = vsub.f32 %v3211_v4, %v529_v63 }
  0xfc   :  { %782 = vadd.xlane.f32.xlu0 %v718_v57  ;;  %v3351_v3 = vpop.xlane.xlu1 %348  ;;  %v528_v57 = vmul.f32 0.00390625, %v464_v54 }
  0xfd   :  { %v3353_v48 = vpop.xlane.xlu0 %346  ;;  %4418 = vst [vmem:[#allocation21_spill] sm:$0xff] %v3368_v46  ;;  %v721_v54 = vmul.f32 %v3368_v46, %v3368_v46 }
  0xfe   :  { %v3385_v4 = vsub.f32 %v3219_v7, %v528_v57 }
  0xff   :  { %976 = vadd.xlane.f32.xlu1 %v911_v62 }
 0x100   :  { %974 = vadd.xlane.f32.xlu0 %v910_v55  ;;  %v3359_v0 = vpop.xlane.xlu1 %224  ;;  %v3371_v55 = vsub.f32 %v3213_v5, %v528_v57  ;;  %4421 = vst [vmem:[#allocation24_spill] sm:$0xff] %v3385_v4  ;;  %v122_v57 = vld [vmem:[#allocation2 + $0x160] sm:$0xff] }
 0x101   :  { %v3361_v2 = vpop.xlane.xlu0 %222 }
 0x102   :  { %4419 = vst [vmem:[#allocation22_spill] sm:$0xff] %v3371_v55 }
 0x103   :  { %292 = vadd.xlane.f32.xlu1 %v121_v59  ;;  %v3382_v59 = vsub.f32 %v3217_v6, %v529_v63  ;;  %v123_v63 = vld [vmem:[#allocation2 + $0x168] sm:$0xff] }
 0x104   :  { %290 = vadd.xlane.f32.xlu0 %v120_v58  ;;  %v3363_v60 = vpop.xlane.xlu1 %352  ;;  %v720_v58 = vmul.f32 %v3371_v55, %v3371_v55  ;;  %v912_v55 = vmul.f32 %v3385_v4, %v3385_v4 }
 0x105   :  { %v3365_v61 = vpop.xlane.xlu0 %350  ;;  %4420 = vst [vmem:[#allocation23_spill] sm:$0xff] %v3382_v59  ;;  %v913_v46 = vmul.f32 %v3382_v59, %v3382_v59 }
 0x107   :  { %420 = vadd.xlane.f32.xlu1 %v185_v45  ;;  %v467_v45 = vadd.f32 %v345_v43, %v217_v50  ;;  %v187_v50 = vld [vmem:[#allocation5 + $0x168] sm:$0xff] }
 0x108   :  { %418 = vadd.xlane.f32.xlu0 %v184_v44  ;;  %v3373_v62 = vpop.xlane.xlu1 %228 }
 0x109   :  { %v3375_v49 = vpop.xlane.xlu0 %226 }
 0x10b   :  { %788 = vadd.xlane.f32.xlu1 %v721_v54  ;;  %v531_v54 = vmul.f32 0.00390625, %v467_v45  ;;  %v2744_v45 = vld [vmem:[#allocation7 + $0x8] sm:$0xff]  }
 0x10c   :  { %786 = vadd.xlane.f32.xlu0 %v720_v58  ;;  %v3387_v5 = vpop.xlane.xlu1 %356  ;;  %v530_v58 = vmul.f32 0.00390625, %v466_v41  ;;  %v2743_v41 = vld [vmem:[#allocation8 + $0x8] sm:$0xff]   ;;  %2589 = vmatprep.subr.bf16.mxu0 %v2744_v45 }
 0x10d   :  { %v3389_v44 = vpop.xlane.xlu0 %354  ;;  %2509 = vmatprep.subr.bf16.mxu1 %v2743_v41  ;;  %2590 = vmatpush3.bf16.msra.mxu0 %v2744_v45 }
 0x10e   :  { %2510 = vmatpush3.bf16.msra.mxu1 %v2743_v41  ;;  %2591 = vmatprep.subr.bf16.mxu0 %v2746_v47 }
 0x10f   :  { %980 = vadd.xlane.f32.xlu1 %v913_v46  ;;  %v3404_v46 = vsub.f32 %v3223_v8, %v531_v54  ;;  %2511 = vmatprep.subr.bf16.mxu1 %v2745_v52 }
 0x110   :  { %978 = vadd.xlane.f32.xlu0 %v912_v55  ;;  %v3395_v6 = vpop.xlane.xlu1 %232  ;;  %v3407_v55 = vsub.f32 %v3225_v9, %v530_v58 }
 0x111   :  { %v3397_v7 = vpop.xlane.xlu0 %230  ;;  %4422 = vst [vmem:[#allocation25_spill] sm:$0xff] %v3404_v46  ;;  %v723_v8 = vmul.f32 %v3404_v46, %v3404_v46  ;;  %2592 = vmatpush3.bf16.msra.mxu0 %v2746_v47  ;;  %v125_v46 = vld [vmem:[#allocation2 + $0x178] sm:$0xff]  ;;  %v188_v47 = vld [vmem:[#allocation5 + $0x170] sm:$0xff] }
 0x112   :  { %4423 = vst [vmem:[#allocation26_spill] sm:$0xff] %v3407_v55  ;;  %v722_v9 = vmul.f32 %v3407_v55, %v3407_v55  ;;  %2512 = vmatpush3.bf16.msra.mxu1 %v2745_v52  ;;  %v189_v52 = vld [vmem:[#allocation5 + $0x178] sm:$0xff] }
 0x113   :  { %296 = vadd.xlane.f32.xlu1 %v123_v63  ;;  %v3410_v63 = vsub.f32 %v3229_v10, %v531_v54 }
 0x114   :  { %294 = vadd.xlane.f32.xlu0 %v122_v57  ;;  %v3399_v42 = vpop.xlane.xlu1 %360  ;;  %v3413_v57 = vsub.f32 %v3231_v11, %v530_v58 }
 0x115   :  { %v3401_v43 = vpop.xlane.xlu0 %358  ;;  %4424 = vst [vmem:[#allocation27_spill] sm:$0xff] %v3410_v63  ;;  %v915_v11 = vmul.f32 %v3410_v63, %v3410_v63  ;;  %v124_v63 = vld [vmem:[#allocation2 + $0x170] sm:$0xff] }
 0x116   :  { %4425 = vst [vmem:[#allocation28_spill] sm:$0xff] %v3413_v57  ;;  %v914_v58 = vmul.f32 %v3413_v57, %v3413_v57 }
 0x117   :  { %424 = vadd.xlane.f32.xlu1 %v187_v50  ;;  %v469_v50 = vadd.f32 %v3351_v3, %v3337_v53 }
 0x118   :  { %422 = vadd.xlane.f32.xlu0 %v186_v51  ;;  %v237_v4 = vpop.xlane.xlu1 %236  ;;  %v468_v51 = vadd.f32 %v3353_v48, %v3339_v56  ;;  %v2749_v56 = vld [vmem:[#allocation8 + $0x20] sm:$0xff]  }
 0x119   :  { %v235_v59 = vpop.xlane.xlu0 %234  ;;  %v533_v53 = vmul.f32 0.00390625, %v469_v50  ;;  %v2750_v48 = vld [vmem:[#allocation7 + $0x20] sm:$0xff]   ;;  %v2751_v50 = vld [vmem:[#allocation8 + $0x28] sm:$0xff]  }
 0x11a   :  { %v532_v3 = vmul.f32 0.00390625, %v468_v51 }
 0x11b   :  { %792 = vadd.xlane.f32.xlu1 %v723_v8  ;;  %v2747_v8 = vld [vmem:[#allocation8 + $0x18] sm:$0xff]  }
 0x11c   :  { %790 = vadd.xlane.f32.xlu0 %v722_v9  ;;  %v365_v10 = vpop.xlane.xlu1 %364  ;;  %v2748_v9 = vld [vmem:[#allocation7 + $0x18] sm:$0xff]   ;;  %2513 = vmatprep.subr.bf16.mxu1 %v2747_v8  ;;  %v3445_v51 = vsub.f32 %v3243_v15, %v532_v3 }
 0x11d   :  { %v363_v54 = vpop.xlane.xlu0 %362  ;;  %v3427_v41 = vadd.f32 %v365_v10, %v237_v4  ;;  %2593 = vmatprep.subr.bf16.mxu0 %v2748_v9  ;;  %2514 = vmatpush3.bf16.msra.mxu1 %v2747_v8  ;;  %v3432_v10 = vsub.f32 %v3235_v12, %v533_v53 }
 0x11e   :  { %v3429_v45 = vadd.f32 %v363_v54, %v235_v59  ;;  %2594 = vmatpush3.bf16.msra.mxu0 %v2748_v9  ;;  %2515 = vmatprep.subr.bf16.mxu1 %v2749_v56  ;;  %v3435_v54 = vsub.f32 %v3237_v13, %v532_v3  ;;  %v2754_v9 = vld [vmem:[#allocation7 + $0x30] sm:$0xff]   ;;  %v916_v3 = vmul.f32 %v3445_v51, %v3445_v51 }
 0x11f   :  { %984 = vadd.xlane.f32.xlu1 %v915_v11  ;;  %2595 = vmatprep.subr.bf16.mxu0 %v2750_v48  ;;  %v725_v13 = vmul.f32 %v3432_v10, %v3432_v10 }
 0x120   :  { %982 = vadd.xlane.f32.xlu0 %v914_v58  ;;  %v241_v55 = vpop.xlane.xlu1 %240 }
 0x121   :  { %v239_v57 = vpop.xlane.xlu0 %238  ;;  %2516 = vmatpush3.bf16.msra.mxu1 %v2749_v56  ;;  %v471_v56 = vadd.f32 %v3363_v60, %v3359_v0 }
 0x122   :  { %2596 = vmatpush3.bf16.msra.mxu0 %v2750_v48  ;;  %2517 = vmatprep.subr.bf16.mxu1 %v2751_v50  ;;  %v470_v48 = vadd.f32 %v3365_v61, %v3361_v2 }
 0x123   :  { %300 = vadd.xlane.f32.xlu1 %v125_v46  ;;  %v2752_v46 = vld [vmem:[#allocation7 + $0x28] sm:$0xff]   ;;  %v535_v0 = vmul.f32 0.00390625, %v471_v56 }
 0x124   :  { %298 = vadd.xlane.f32.xlu0 %v124_v63  ;;  %v369_v59 = vpop.xlane.xlu1 %368  ;;  %v3442_v63 = vsub.f32 %v3241_v14, %v533_v53  ;;  %2597 = vmatprep.subr.bf16.mxu0 %v2752_v46  ;;  %v534_v60 = vmul.f32 0.00390625, %v470_v48 }
 0x125   :  { %v367_v4 = vpop.xlane.xlu0 %366  ;;  %v3437_v11 = vadd.f32 %v369_v59, %v241_v55  ;;  %v724_v55 = vmul.f32 %v3435_v54, %v3435_v54  ;;  %2518 = vmatpush3.bf16.msra.mxu1 %v2751_v50 }
 0x126   :  { %v3439_v58 = vadd.f32 %v367_v4, %v239_v57  ;;  %v2753_v57 = vld [vmem:[#allocation8 + $0x30] sm:$0xff]   ;;  %2598 = vmatpush3.bf16.msra.mxu0 %v2752_v46  ;;  %v917_v15 = vmul.f32 %v3442_v63, %v3442_v63 }
 0x127   :  { %428 = vadd.xlane.f32.xlu1 %v189_v52  ;;  %2519 = vmatprep.subr.bf16.mxu1 %v2753_v57  ;;  %v2755_v52 = vld [vmem:[#allocation8 + $0x38] sm:$0xff]  }
 0x128   :  { %426 = vadd.xlane.f32.xlu0 %v188_v47  ;;  %v245_v12 = vpop.xlane.xlu1 %244  ;;  %2599 = vmatprep.subr.bf16.mxu0 %v2754_v9  ;;  %v2756_v47 = vld [vmem:[#allocation7 + $0x38] sm:$0xff]  }
 0x129   :  { %v243_v8 = vpop.xlane.xlu0 %242  ;;  %2520 = vmatpush3.bf16.msra.mxu1 %v2753_v57  ;;  %v3464_v57 = vsub.f32 %v3245_v16, %v535_v0 }
 0x12a   :  { %2600 = vmatpush3.bf16.msra.mxu0 %v2754_v9  ;;  %2521 = vmatprep.subr.bf16.mxu1 %v2755_v52  ;;  %v3467_v9 = vsub.f32 %v3249_v17, %v534_v60 }
 0x12b   :  { %796 = vadd.xlane.f32.xlu1 %v725_v13  ;;  %v127_v13 = vld [vmem:[#allocation2 + $0x188] sm:$0xff]  ;;  %2601 = vmatprep.subr.bf16.mxu0 %v2756_v47  ;;  %v727_v16 = vmul.f32 %v3464_v57, %v3464_v57 }
 0x12c   :  { %794 = vadd.xlane.f32.xlu0 %v724_v55  ;;  %v373_v14 = vpop.xlane.xlu1 %372  ;;  %v126_v55 = vld [vmem:[#allocation2 + $0x180] sm:$0xff]  ;;  %v726_v17 = vmul.f32 %v3467_v9, %v3467_v9 }
 0x12d   :  { %v371_v53 = vpop.xlane.xlu0 %370  ;;  %v3459_v59 = vadd.f32 %v373_v14, %v245_v12  ;;  %2522 = vmatpush3.bf16.msra.mxu1 %v2755_v52  ;;  %v191_v12 = vld [vmem:[#allocation5 + $0x188] sm:$0xff] }
 0x12e   :  { %v3461_v4 = vadd.f32 %v371_v53, %v243_v8  ;;  %2602 = vmatpush3.bf16.msra.mxu0 %v2756_v47  ;;  %v190_v8 = vld [vmem:[#allocation5 + $0x180] sm:$0xff] }
 0x12f   :  { %988 = vadd.xlane.f32.xlu1 %v917_v15  ;;  %v3474_v15 = vsub.f32 %v3251_v18, %v535_v0 }
 0x130   :  { %986 = vadd.xlane.f32.xlu0 %v916_v3  ;;  %v249_v50 = vpop.xlane.xlu1 %248  ;;  %v3477_v3 = vsub.f32 %v3253_v19, %v534_v60  ;;  %v473_v19 = vadd.f32 %v3387_v5, %v3373_v62  ;;  %v193_v62 = vld [vmem:[#allocation5 + $0x198] sm:$0xff]  ;;  %v192_v5 = vld [vmem:[#allocation5 + $0x190] sm:$0xff] }
 0x131   :  { %v247_v46 = vpop.xlane.xlu0 %246 }
 0x132   :  { %v918_v18 = vmul.f32 %v3477_v3, %v3477_v3 }
 0x133   :  { %304 = vadd.xlane.f32.xlu1 %v127_v13 }
 0x134   :  { %302 = vadd.xlane.f32.xlu0 %v126_v55  ;;  %v377_v2 = vpop.xlane.xlu1 %376 }
 0x135   :  { %v375_v61 = vpop.xlane.xlu0 %374  ;;  %v3469_v14 = vadd.f32 %v377_v2, %v249_v50  ;;  %v919_v50 = vmul.f32 %v3474_v15, %v3474_v15  ;;  %v129_v2 = vld [vmem:[#allocation2 + $0x198] sm:$0xff] }
 0x136   :  { %v3471_v53 = vadd.f32 %v375_v61, %v247_v46  ;;  %v472_v46 = vadd.f32 %v3389_v44, %v3375_v49  ;;  %v128_v61 = vld [vmem:[#allocation2 + $0x190] sm:$0xff] }
 0x137   :  { %432 = vadd.xlane.f32.xlu1 %v191_v12  ;;  %v537_v12 = vmul.f32 0.00390625, %v473_v19 }
 0x138   :  { %430 = vadd.xlane.f32.xlu0 %v190_v8  ;;  %v253_v56 = vpop.xlane.xlu1 %252  ;;  %v536_v8 = vmul.f32 0.00390625, %v472_v46 }
 0x139   :  { %v251_v48 = vpop.xlane.xlu0 %250  ;;  %v3496_v49 = vsub.f32 %v3257_v20, %v537_v12 }
 0x13a   :  { %v3499_v44 = vsub.f32 %v3261_v21, %v536_v8 }
 0x13b   :  { %800 = vadd.xlane.f32.xlu1 %v727_v16  ;;  %v729_v20 = vmul.f32 %v3496_v49, %v3496_v49 }
 0x13c   :  { %798 = vadd.xlane.f32.xlu0 %v726_v17  ;;  %v381_v52 = vpop.xlane.xlu1 %380  ;;  %v728_v21 = vmul.f32 %v3499_v44, %v3499_v44 }
 0x13d   :  { %v379_v47 = vpop.xlane.xlu0 %378  ;;  %v3491_v13 = vadd.f32 %v381_v52, %v253_v56  ;;  %v3506_v52 = vsub.f32 %v3265_v22, %v537_v12 }
 0x13e   :  { %v3493_v55 = vadd.f32 %v379_v47, %v251_v48  ;;  %v3509_v47 = vsub.f32 %v3267_v23, %v536_v8  ;;  %v475_v23 = vadd.f32 %v3399_v42, %v3395_v6  ;;  %v195_v6 = vld [vmem:[#allocation5 + $0x1a8] sm:$0xff]  ;;  %v194_v42 = vld [vmem:[#allocation5 + $0x1a0] sm:$0xff] }
 0x13f   :  { %992 = vadd.xlane.f32.xlu1 %v919_v50 }
 0x140   :  { %990 = vadd.xlane.f32.xlu0 %v918_v18  ;;  %v257_v0 = vpop.xlane.xlu1 %256  ;;  %v920_v22 = vmul.f32 %v3509_v47, %v3509_v47 }
 0x141   :  { %v255_v60 = vpop.xlane.xlu0 %254 }
 0x143   :  { %308 = vadd.xlane.f32.xlu1 %v129_v2 }
 0x144   :  { %306 = vadd.xlane.f32.xlu0 %v128_v61  ;;  %v385_v16 = vpop.xlane.xlu1 %384 }
 0x145   :  { %v383_v17 = vpop.xlane.xlu0 %382  ;;  %v3501_v56 = vadd.f32 %v385_v16, %v257_v0  ;;  %v921_v0 = vmul.f32 %v3506_v52, %v3506_v52  ;;  %v131_v16 = vld [vmem:[#allocation2 + $0x1a8] sm:$0xff] }
 0x146   :  { %v3503_v48 = vadd.f32 %v383_v17, %v255_v60  ;;  %v474_v60 = vadd.f32 %v3401_v43, %v3397_v7  ;;  %v130_v17 = vld [vmem:[#allocation2 + $0x1a0] sm:$0xff] }
 0x147   :  { %436 = vadd.xlane.f32.xlu1 %v193_v62  ;;  %v539_v62 = vmul.f32 0.00390625, %v475_v23 }
 0x148   :  { %434 = vadd.xlane.f32.xlu0 %v192_v5  ;;  %v261_v50 = vpop.xlane.xlu1 %260  ;;  %v538_v5 = vmul.f32 0.00390625, %v474_v60 }
 0x149   :  { %v259_v18 = vpop.xlane.xlu0 %258  ;;  %v3528_v7 = vsub.f32 %v3271_v24, %v539_v62 }
 0x14a   :  { %v3531_v43 = vsub.f32 %v3273_v25, %v538_v5 }
 0x14b   :  { %804 = vadd.xlane.f32.xlu1 %v729_v20  ;;  %v731_v24 = vmul.f32 %v3528_v7, %v3528_v7 }
 0x14c   :  { %802 = vadd.xlane.f32.xlu0 %v728_v21  ;;  %v389_v19 = vpop.xlane.xlu1 %388  ;;  %v730_v25 = vmul.f32 %v3531_v43, %v3531_v43 }
 0x14d   :  { %v387_v46 = vpop.xlane.xlu0 %386  ;;  %v3523_v2 = vadd.f32 %v389_v19, %v261_v50 }
 0x14e   :  { %v3525_v61 = vadd.f32 %v387_v46, %v259_v18 }
 0x14f   :  { %996 = vadd.xlane.f32.xlu1 %v921_v0  ;;  %v3538_v0 = vsub.f32 %v3277_v26, %v539_v62  ;;  %v133_v62 = vld [vmem:[#allocation2 + $0x1b8] sm:$0xff] }
 0x150   :  { %994 = vadd.xlane.f32.xlu0 %v920_v22  ;;  %v265_v12 = vpop.xlane.xlu1 %264  ;;  %v3541_v22 = vsub.f32 %v3279_v27, %v538_v5  ;;  %v132_v5 = vld [vmem:[#allocation2 + $0x1b0] sm:$0xff] }
 0x151   :  { %v263_v8 = vpop.xlane.xlu0 %262  ;;  %v923_v26 = vmul.f32 %v3538_v0, %v3538_v0 }
 0x152   :  { %v922_v27 = vmul.f32 %v3541_v22, %v3541_v22 }
 0x153   :  { %312 = vadd.xlane.f32.xlu1 %v131_v16 }
 0x154   :  { %310 = vadd.xlane.f32.xlu0 %v130_v17  ;;  %v393_v20 = vpop.xlane.xlu1 %392 }
 0x155   :  { %v391_v21 = vpop.xlane.xlu0 %390  ;;  %v3533_v50 = vadd.f32 %v393_v20, %v265_v12  ;;  %v541_v20 = vmul.f32 0.00390625, %v3427_v41 }
 0x156   :  { %v3535_v18 = vadd.f32 %v391_v21, %v263_v8  ;;  %v540_v21 = vmul.f32 0.00390625, %v3429_v45 }
 0x157   :  { %440 = vadd.xlane.f32.xlu1 %v195_v6 }
 0x158   :  { %438 = vadd.xlane.f32.xlu0 %v194_v42  ;;  %v269_v19 = vpop.xlane.xlu1 %268 }
 0x159   :  { %v267_v46 = vpop.xlane.xlu0 %266 }
 0x15b   :  { %808 = vadd.xlane.f32.xlu1 %v731_v24  ;;  %v3558_v24 = vsub.f32 %v3283_v28, %v541_v20 }
 0x15c   :  { %806 = vadd.xlane.f32.xlu0 %v730_v25  ;;  %v397_v23 = vpop.xlane.xlu1 %396  ;;  %v3561_v25 = vsub.f32 %v3285_v29, %v540_v21 }
 0x15d   :  { %v395_v60 = vpop.xlane.xlu0 %394  ;;  %v3547_v12 = vadd.f32 %v397_v23, %v269_v19  ;;  %v197_v19 = vld [vmem:[#allocation5 + $0x1b8] sm:$0xff]  ;;  %4426 = vst [vmem:[#allocation29_spill] sm:$0xff] %v3558_v24  ;;  %v733_v28 = vmul.f32 %v3558_v24, %v3558_v24 }
 0x15e   :  { %v3549_v8 = vadd.f32 %v395_v60, %v267_v46  ;;  %v196_v46 = vld [vmem:[#allocation5 + $0x1b0] sm:$0xff]  ;;  %4427 = vst [vmem:[#allocation30_spill] sm:$0xff] %v3561_v25  ;;  %v732_v29 = vmul.f32 %v3561_v25, %v3561_v25 }
 0x15f   :  { %1000 = vadd.xlane.f32.xlu1 %v923_v26  ;;  %v3568_v26 = vsub.f32 %v3289_v30, %v541_v20 }
 0x160   :  { %998 = vadd.xlane.f32.xlu0 %v922_v27  ;;  %v273_v16 = vpop.xlane.xlu1 %272  ;;  %v3571_v27 = vsub.f32 %v3291_v31, %v540_v21 }
 0x161   :  { %v271_v17 = vpop.xlane.xlu0 %270  ;;  %4428 = vst [vmem:[#allocation31_spill] sm:$0xff] %v3568_v26  ;;  %v925_v30 = vmul.f32 %v3568_v26, %v3568_v26 }
 0x162   :  { %4429 = vst [vmem:[#allocation32_spill] sm:$0xff] %v3571_v27  ;;  %v924_v31 = vmul.f32 %v3571_v27, %v3571_v27  ;;  %v140_v27 = vld [vmem:[#allocation2 + $0x1f0] sm:$0xff] }
 0x163   :  { %316 = vadd.xlane.f32.xlu1 %v133_v62 }
 0x164   :  { %314 = vadd.xlane.f32.xlu0 %v132_v5  ;;  %v401_v6 = vpop.xlane.xlu1 %400 }
 0x165   :  { %v399_v42 = vpop.xlane.xlu0 %398  ;;  %v3563_v23 = vadd.f32 %v401_v6, %v273_v16  ;;  %v135_v6 = vld [vmem:[#allocation2 + $0x1c8] sm:$0xff] }
 0x166   :  { %v3565_v60 = vadd.f32 %v399_v42, %v271_v17  ;;  %v134_v42 = vld [vmem:[#allocation2 + $0x1c0] sm:$0xff] }
 0x167   :  { %444 = vadd.xlane.f32.xlu1 %v197_v19  ;;  %v543_v19 = vmul.f32 0.00390625, %v3437_v11 }
 0x168   :  { %442 = vadd.xlane.f32.xlu0 %v196_v46  ;;  %v277_v41 = vpop.xlane.xlu1 %276  ;;  %v542_v46 = vmul.f32 0.00390625, %v3439_v58 }
 0x169   :  { %v275_v45 = vpop.xlane.xlu0 %274 }
 0x16b   :  { %812 = vadd.xlane.f32.xlu1 %v733_v28  ;;  %v199_v28 = vld [vmem:[#allocation5 + $0x1c8] sm:$0xff] }
 0x16c   :  { %810 = vadd.xlane.f32.xlu0 %v732_v29  ;;  %v405_v16 = vpop.xlane.xlu1 %404  ;;  %v198_v29 = vld [vmem:[#allocation5 + $0x1c0] sm:$0xff] }
 0x16d   :  { %v403_v17 = vpop.xlane.xlu0 %402  ;;  %v3577_v62 = vadd.f32 %v405_v16, %v277_v41  ;;  %v3588_v16 = vsub.f32 %v3295_v32, %v543_v19 }
 0x16e   :  { %v3579_v5 = vadd.f32 %v403_v17, %v275_v45  ;;  %v3591_v17 = vsub.f32 %v3297_v33, %v542_v46 }
 0x16f   :  { %1004 = vadd.xlane.f32.xlu1 %v925_v30  ;;  %4430 = vst [vmem:[#allocation33_spill] sm:$0xff] %v3588_v16  ;;  %v735_v32 = vmul.f32 %v3588_v16, %v3588_v16  ;;  %v4447_v16 = vld [vmem:[#allocation18_spill] sm:$0xff] }
 0x170   :  { %1002 = vadd.xlane.f32.xlu0 %v924_v31  ;;  %v281_v20 = vpop.xlane.xlu1 %280  ;;  %4431 = vst [vmem:[#allocation34_spill] sm:$0xff] %v3591_v17  ;;  %v734_v33 = vmul.f32 %v3591_v17, %v3591_v17 }
 0x171   :  { %v279_v21 = vpop.xlane.xlu0 %278 }
 0x173   :  { %320 = vadd.xlane.f32.xlu1 %v135_v6  ;;  %v3598_v6 = vsub.f32 %v3301_v34, %v543_v19 }
 0x174   :  { %318 = vadd.xlane.f32.xlu0 %v134_v42  ;;  %v409_v41 = vpop.xlane.xlu1 %408  ;;  %v3601_v42 = vsub.f32 %v3303_v35, %v542_v46 }
 0x175   :  { %v407_v45 = vpop.xlane.xlu0 %406  ;;  %v3593_v30 = vadd.f32 %v409_v41, %v281_v20  ;;  %4432 = vst [vmem:[#allocation35_spill] sm:$0xff] %v3598_v6  ;;  %v927_v34 = vmul.f32 %v3598_v6, %v3598_v6 }
 0x176   :  { %v3595_v31 = vadd.f32 %v407_v45, %v279_v21  ;;  %4433 = vst [vmem:[#allocation36_spill] sm:$0xff] %v3601_v42  ;;  %v926_v35 = vmul.f32 %v3601_v42, %v3601_v42 }
 0x177   :  { %448 = vadd.xlane.f32.xlu1 %v199_v28  ;;  %v137_v28 = vld [vmem:[#allocation2 + $0x1d8] sm:$0xff] }
 0x178   :  { %446 = vadd.xlane.f32.xlu0 %v198_v29  ;;  %v285_v11 = vpop.xlane.xlu1 %284  ;;  %v136_v29 = vld [vmem:[#allocation2 + $0x1d0] sm:$0xff] }
 0x179   :  { %v283_v58 = vpop.xlane.xlu0 %282 }
 0x17b   :  { %816 = vadd.xlane.f32.xlu1 %v735_v32  ;;  %v545_v32 = vmul.f32 0.00390625, %v3459_v59 }
 0x17c   :  { %814 = vadd.xlane.f32.xlu0 %v734_v33  ;;  %v413_v20 = vpop.xlane.xlu1 %412  ;;  %v544_v33 = vmul.f32 0.00390625, %v3461_v4 }
 0x17d   :  { %v411_v21 = vpop.xlane.xlu0 %410  ;;  %v3607_v41 = vadd.f32 %v413_v20, %v285_v11  ;;  %v201_v20 = vld [vmem:[#allocation5 + $0x1d8] sm:$0xff]  ;;  %v3618_v17 = vsub.f32 %v3307_v36, %v545_v32 }
 0x17e   :  { %v3609_v45 = vadd.f32 %v411_v21, %v283_v58  ;;  %v200_v21 = vld [vmem:[#allocation5 + $0x1d0] sm:$0xff] }
 0x17f   :  { %1008 = vadd.xlane.f32.xlu1 %v927_v34  ;;  %4434 = vst [vmem:[#allocation37_spill] sm:$0xff] %v3618_v17  ;;  %v3621_v34 = vsub.f32 %v3309_v37, %v544_v33  ;;  %v737_v36 = vmul.f32 %v3618_v17, %v3618_v17  ;;  %v139_v17 = vld [vmem:[#allocation2 + $0x1e8] sm:$0xff] }
 0x180   :  { %1006 = vadd.xlane.f32.xlu0 %v926_v35  ;;  %v289_v19 = vpop.xlane.xlu1 %288 }
 0x181   :  { %v287_v46 = vpop.xlane.xlu0 %286  ;;  %4435 = vst [vmem:[#allocation38_spill] sm:$0xff] %v3621_v34  ;;  %v736_v37 = vmul.f32 %v3621_v34, %v3621_v34  ;;  %v138_v34 = vld [vmem:[#allocation2 + $0x1e0] sm:$0xff] }
 0x183   :  { %324 = vadd.xlane.f32.xlu1 %v137_v28  ;;  %v3628_v28 = vsub.f32 %v3313_v38, %v545_v32 }
 0x184   :  { %322 = vadd.xlane.f32.xlu0 %v136_v29  ;;  %v417_v11 = vpop.xlane.xlu1 %416  ;;  %v3631_v29 = vsub.f32 %v3315_v39, %v544_v33 }
 0x185   :  { %v415_v58 = vpop.xlane.xlu0 %414  ;;  %v3623_v35 = vadd.f32 %v417_v11, %v289_v19  ;;  %4436 = vst [vmem:[#allocation39_spill] sm:$0xff] %v3628_v28 }
 0x186   :  { %v3625_v42 = vadd.f32 %v415_v58, %v287_v46  ;;  %4437 = vst [vmem:[#allocation40_spill] sm:$0xff] %v3631_v29  ;;  %v928_v38 = vmul.f32 %v3631_v29, %v3631_v29 }
 0x187   :  { %452 = vadd.xlane.f32.xlu1 %v201_v20  ;;  %v929_v20 = vmul.f32 %v3628_v28, %v3628_v28 }
 0x188   :  { %450 = vadd.xlane.f32.xlu0 %v200_v21  ;;  %v785_v59 = vpop.xlane.xlu1 %784 }
 0x189   :  { %v783_v4 = vpop.xlane.xlu0 %782 }
 0x18b   :  { %820 = vadd.xlane.f32.xlu1 %v737_v36  ;;  %v547_v36 = vmul.f32 0.00390625, %v3469_v14 }
 0x18c   :  { %818 = vadd.xlane.f32.xlu0 %v736_v37  ;;  %v977_v19 = vpop.xlane.xlu1 %976  ;;  %v546_v37 = vmul.f32 0.00390625, %v3471_v53 }
 0x18d   :  { %v975_v46 = vpop.xlane.xlu0 %974  ;;  %v1103_v11 = vadd.f32 %v977_v19, %v785_v59 }
 0x18e   :  { %v1102_v58 = vadd.f32 %v975_v46, %v783_v4 }
 0x18f   :  { %v1167_v39 = vmul.f32 0.00390625, %v1103_v11  ;;  %1012 = vadd.xlane.f32.xlu1 %v929_v20  ;;  %v203_v11 = vld [vmem:[#allocation5 + $0x1e8] sm:$0xff]  ;;  %v3644_v20 = vsub.f32 %v3319_v40, %v547_v36 }
 0x190   :  { %v1166_v32 = vmul.f32 0.00390625, %v1102_v58  ;;  %1010 = vadd.xlane.f32.xlu0 %v928_v38  ;;  %v293_v33 = vpop.xlane.xlu1 %292  ;;  %v202_v58 = vld [vmem:[#allocation5 + $0x1e0] sm:$0xff] }
 0x191   :  { %v291_v21 = vpop.xlane.xlu0 %290  ;;  %v1231_v59 = vadd.f32 1e-05, %v1167_v39  ;;  %4438 = vst [vmem:[#allocation41_spill] sm:$0xff] %v3644_v20  ;;  %v4439_v38 = vld [vmem:[#allocation15_spill] sm:$0xff]  ;;  %v739_v40 = vmul.f32 %v3644_v20, %v3644_v20 }
 0x192   :  { %v1230_v4 = vadd.f32 1e-05, %v1166_v32  ;;  %v3647_v29 = vsub.f32 %v4439_v38, %v546_v37  ;;  %v4443_v32 = vld [vmem:[#allocation17_spill] sm:$0xff] }
 0x193   :  { %2757 = vrsqrt.f32 %v1231_v59  ;;  %328 = vadd.xlane.f32.xlu1 %v139_v17  ;;  %v3657_v59 = vsub.f32 %v4443_v32, %v546_v37 }
 0x194   :  { %326 = vadd.xlane.f32.xlu0 %v138_v34  ;;  %2759 = vrsqrt.f32 %v1230_v4  ;;  %v421_v19 = vpop.xlane.xlu1 %420  ;;  %4440 = vst [vmem:[#allocation15_spill] sm:$0xff] %v3647_v29  ;;  %v4441_v34 = vld [vmem:[#allocation16_spill] sm:$0xff]  ;;  %v738_v4 = vmul.f32 %v3647_v29, %v3647_v29 }
 0x195   :  { %v419_v46 = vpop.xlane.xlu0 %418  ;;  %v3649_v28 = vadd.f32 %v421_v19, %v293_v33  ;;  %v3654_v39 = vsub.f32 %v4441_v34, %v547_v36  ;;  %4444 = vst [vmem:[#allocation17_spill] sm:$0xff] %v3657_v59  ;;  %v930_v37 = vmul.f32 %v3657_v59, %v3657_v59  ;;  %v4445_v34 = vld [vmem:[#allocation19_spill] sm:$0xff]  ;;  %v141_v59 = vld [vmem:[#allocation2 + $0x1f8] sm:$0xff] }
 0x196   :  { %v3651_v14 = vadd.f32 %v419_v46, %v291_v21 }
 0x197   :  { %456 = vadd.xlane.f32.xlu1 %v203_v11  ;;  %4442 = vst [vmem:[#allocation16_spill] sm:$0xff] %v3654_v39  ;;  %v931_v36 = vmul.f32 %v3654_v39, %v3654_v39 }
 0x198   :  { %454 = vadd.xlane.f32.xlu0 %v202_v58  ;;  %v789_v53 = vpop.xlane.xlu1 %788 }
 0x199   :  { %v787_v17 = vpop.xlane.xlu0 %786 }
 0x19b   :  { %824 = vadd.xlane.f32.xlu1 %v739_v40  ;;  %v4446_v40 = vld [vmem:[#allocation20_spill] sm:$0xff] }
 0x19c   :  { %822 = vadd.xlane.f32.xlu0 %v738_v4  ;;  %v981_v33 = vpop.xlane.xlu1 %980 }
 0x19d   :  { %v979_v21 = vpop.xlane.xlu0 %978  ;;  %v2758_v19 = vpop.eup %2757  ;;  %v1105_v46 = vadd.f32 %v981_v33, %v789_v53 }
 0x19e   :  { %v1104_v11 = vadd.f32 %v979_v21, %v787_v17  ;;  %v2760_v58 = vpop.eup %2759  ;;  %v1455_v38 = vmul.f32 %v2758_v19, %v3349_v1  ;;  %v1359_v32 = vmul.f32 %v2758_v19, %v4445_v34  ;;  %v549_v1 = vmul.f32 0.00390625, %v3491_v13  ;;  %v2886_v13 = vld [vmem:[#allocation2 + $0xb0] sm:$0xff] }
 0x19f   :  { %v1169_v20 = vmul.f32 0.00390625, %v1105_v46  ;;  %1016 = vadd.xlane.f32.xlu1 %v931_v36  ;;  %v1454_v4 = vmul.f32 %v2760_v58, %v4446_v40  ;;  %v1358_v53 = vmul.f32 %v2760_v58, %v4447_v16  ;;  %v548_v19 = vmul.f32 0.00390625, %v3493_v55  ;;  %v204_v36 = vld [vmem:[#allocation5 + $0x1f0] sm:$0xff] }
 0x1a0   :  { %v1168_v29 = vmul.f32 0.00390625, %v1104_v11  ;;  %1014 = vadd.xlane.f32.xlu0 %v930_v37  ;;  %v297_v17 = vpop.xlane.xlu1 %296  ;;  %v2885_v37 = vld [vmem:[#allocation2 + $0xb8] sm:$0xff]  ;;  %v551_v34 = vmul.f32 0.00390625, %v3501_v56 }
 0x1a1   :  { %v295_v33 = vpop.xlane.xlu0 %294  ;;  %v1233_v21 = vadd.f32 1e-05, %v1169_v20  ;;  %v1518_v6 = vpack.c.bf16 %v1455_v38, %v1454_v4  ;;  %v1422_v25 = vpack.c.bf16 %v1359_v32, %v1358_v53  ;;  %v3677_v58 = vsub.f32 %v2885_v37, %v549_v1  ;;  %v4453_v37 = vld [vmem:[#allocation23_spill] sm:$0xff] }
 0x1a2   :  { %v1232_v39 = vadd.f32 1e-05, %v1168_v29  ;;  %v205_v29 = vld [vmem:[#allocation5 + $0x1f8] sm:$0xff]  ;;  %v3679_v38 = vsub.f32 %v2886_v13, %v548_v19  ;;  %v550_v32 = vmul.f32 0.00390625, %v3503_v48 }
 0x1a3   :  { %2761 = vrsqrt.f32 %v1233_v21  ;;  %2523 = vmatprep.mubr.bf16.mxu1 %v1518_v6  ;;  %2603 = vmatprep.mubr.bf16.mxu0 %v1422_v25  ;;  %4448 = vst [vmem:[#allocation19_spill] sm:$0xff] %v3677_v58  ;;  %v2887_v6 = vld [vmem:[#allocation5 + $0xb8] sm:$0xff]  ;;  %v741_v40 = vmul.f32 %v3677_v58, %v3677_v58 }
 0x1a4   :  { %2763 = vrsqrt.f32 %v1232_v39  ;;  %332 = vadd.xlane.f32.xlu1 %v141_v59  ;;  %330 = vadd.xlane.f32.xlu0 %v140_v27  ;;  %v425_v46 = vpop.xlane.xlu1 %424  ;;  %4449 = vst [vmem:[#allocation20_spill] sm:$0xff] %v3679_v38  ;;  %v3681_v27 = vsub.f32 %v2887_v6, %v549_v1  ;;  %v2888_v39 = vld [vmem:[#allocation5 + $0xb0] sm:$0xff]  ;;  %v740_v4 = vmul.f32 %v3679_v38, %v3679_v38  ;;  %v2891_v38 = vld [vmem:[#allocation5 + $0xc8] sm:$0xff] }
 0x1a5   :  { %v423_v16 = vpop.xlane.xlu0 %422  ;;  %v3673_v11 = vadd.f32 %v425_v46, %v297_v17  ;;  %v3683_v59 = vsub.f32 %v2888_v39, %v548_v19  ;;  %v2889_v46 = vld [vmem:[#allocation2 + $0xc8] sm:$0xff]  ;;  %v4454_v6 = vld [vmem:[#allocation21_spill] sm:$0xff]  ;;  %v3703_v58 = vsub.f32 %v2891_v38, %v551_v34 }
 0x1a6   :  { %v3675_v20 = vadd.f32 %v423_v16, %v295_v33  ;;  %4450 = vst [vmem:[#allocation18_spill] sm:$0xff] %v3681_v27  ;;  %v933_v19 = vmul.f32 %v3681_v27, %v3681_v27  ;;  %v3695_v16 = vsub.f32 %v2889_v46, %v551_v34 }
 0x1a7   :  { %4451 = vst [vmem:[#allocation42_spill] sm:$0xff] %v3683_v59  ;;  %v932_v56 = vmul.f32 %v3683_v59, %v3683_v59  ;;  %v2892_v59 = vld [vmem:[#allocation5 + $0xc0] sm:$0xff] }
 0x1a8   :  { %460 = vadd.xlane.f32.xlu1 %v205_v29  ;;  %458 = vadd.xlane.f32.xlu0 %v204_v36  ;;  %v793_v55 = vpop.xlane.xlu1 %792  ;;  %v2890_v29 = vld [vmem:[#allocation2 + $0xc0] sm:$0xff]  ;;  %v3705_v27 = vsub.f32 %v2892_v59, %v550_v32 }
 0x1a9   :  { %v791_v25 = vpop.xlane.xlu0 %790  ;;  %v3697_v36 = vsub.f32 %v2890_v29, %v550_v32 }
 0x1aa   :  { %4457 = vst [vmem:[#allocation23_spill] sm:$0xff] %v3705_v27 }
 0x1ab   :  { %4452 = vst [vmem:[#allocation43_spill] sm:$0xff] %v3697_v36  ;;  %v742_v38 = vmul.f32 %v3697_v36, %v3697_v36 }
 0x1ac   :  { %828 = vadd.xlane.f32.xlu1 %v741_v40  ;;  %826 = vadd.xlane.f32.xlu0 %v740_v4  ;;  %v985_v53 = vpop.xlane.xlu1 %984 }
 0x1ad   :  { %v983_v17 = vpop.xlane.xlu0 %982  ;;  %v2762_v33 = vpop.eup %2761  ;;  %v1107_v21 = vadd.f32 %v985_v53, %v793_v55  ;;  %v4456_v53 = vld [vmem:[#allocation22_spill] sm:$0xff] }
 0x1ae   :  { %v1106_v1 = vadd.f32 %v983_v17, %v791_v25  ;;  %v2764_v48 = vpop.eup %2763  ;;  %v1457_v13 = vmul.f32 %v2762_v33, %v4453_v37  ;;  %v1361_v39 = vmul.f32 %v2762_v33, %v4454_v6  ;;  %v4455_v25 = vld [vmem:[#allocation24_spill] sm:$0xff] }
 0x1af   :  { %v1171_v40 = vmul.f32 0.00390625, %v1107_v21  ;;  %v1456_v4 = vmul.f32 %v2764_v48, %v4455_v25  ;;  %v1360_v17 = vmul.f32 %v2764_v48, %v4456_v53  ;;  %v553_v21 = vmul.f32 0.00390625, %v3523_v2  ;;  %v2893_v2 = vld [vmem:[#allocation2 + $0xd8] sm:$0xff]  ;;  %v2896_v25 = vld [vmem:[#allocation5 + $0xd0] sm:$0xff] }
 0x1b0   :  { %v1170_v55 = vmul.f32 0.00390625, %v1106_v1  ;;  %1020 = vadd.xlane.f32.xlu1 %v933_v19  ;;  %1018 = vadd.xlane.f32.xlu0 %v932_v56  ;;  %v301_v46 = vpop.xlane.xlu1 %300  ;;  %v552_v1 = vmul.f32 0.00390625, %v3525_v61  ;;  %v743_v48 = vmul.f32 %v3695_v16, %v3695_v16  ;;  %v2894_v56 = vld [vmem:[#allocation2 + $0xd0] sm:$0xff]  ;;  %v555_v53 = vmul.f32 0.00390625, %v3533_v50 }
 0x1b1   :  { %v299_v29 = vpop.xlane.xlu0 %298  ;;  %v1235_v24 = vadd.f32 1e-05, %v1171_v40  ;;  %v1519_v26 = vpack.c.bf16 %v1457_v13, %v1456_v4  ;;  %v1423_v33 = vpack.c.bf16 %v1361_v39, %v1360_v17  ;;  %v3717_v61 = vsub.f32 %v2893_v2, %v553_v21  ;;  %v2895_v40 = vld [vmem:[#allocation5 + $0xd8] sm:$0xff]  ;;  %v2898_v2 = vld [vmem:[#allocation2 + $0xe0] sm:$0xff] }
 0x1b2   :  { %v1234_v37 = vadd.f32 1e-05, %v1170_v55  ;;  %v3719_v13 = vsub.f32 %v2894_v56, %v552_v1  ;;  %v3725_v55 = vsub.f32 %v2895_v40, %v553_v21  ;;  %v3727_v4 = vsub.f32 %v2896_v25, %v552_v1  ;;  %v4463_v40 = vld [vmem:[#allocation25_spill] sm:$0xff] }
 0x1b3   :  { %2765 = vrsqrt.f32 %v1235_v24  ;;  %2524 = vmatmul.mubr.bf16.vlgmr.msra.gmra.mrb[0].mxu1 %v1519_v26  ;;  %2604 = vmatmul.mubr.bf16.vlgmr.msra.gmra.mrb[0].mxu0 %v1423_v33  ;;  %4458 = vst [vmem:[#allocation21_spill] sm:$0xff] %v3717_v61  ;;  %v935_v24 = vmul.f32 %v3703_v58, %v3703_v58  ;;  %v934_v26 = vmul.f32 %v3705_v27, %v3705_v27  ;;  %v554_v17 = vmul.f32 0.00390625, %v3535_v18 }
 0x1b4   :  { %2767 = vrsqrt.f32 %v1234_v37  ;;  %832 = vadd.xlane.f32.xlu1 %v743_v48  ;;  %830 = vadd.xlane.f32.xlu0 %v742_v38  ;;  %v429_v59 = vpop.xlane.xlu1 %428  ;;  %4459 = vst [vmem:[#allocation24_spill] sm:$0xff] %v3719_v13  ;;  %4460 = vst [vmem:[#allocation22_spill] sm:$0xff] %v3725_v55  ;;  %v937_v1 = vmul.f32 %v3725_v55, %v3725_v55  ;;  %v936_v50 = vmul.f32 %v3727_v4, %v3727_v4 }
 0x1b5   :  { %v427_v34 = vpop.xlane.xlu0 %426  ;;  %v3713_v32 = vadd.f32 %v429_v59, %v301_v46  ;;  %4461 = vst [vmem:[#allocation44_spill] sm:$0xff] %v3727_v4  ;;  %v745_v46 = vmul.f32 %v3717_v61, %v3717_v61  ;;  %v2897_v59 = vld [vmem:[#allocation2 + $0xe8] sm:$0xff]  ;;  %v3741_v56 = vsub.f32 %v2898_v2, %v554_v17  ;;  %v2900_v4 = vld [vmem:[#allocation5 + $0xe0] sm:$0xff] }
 0x1b6   :  { %v3715_v19 = vadd.f32 %v427_v34, %v299_v29  ;;  %v744_v29 = vmul.f32 %v3719_v13, %v3719_v13  ;;  %v3739_v34 = vsub.f32 %v2897_v59, %v555_v53  ;;  %v2899_v13 = vld [vmem:[#allocation5 + $0xe8] sm:$0xff]  ;;  %v3749_v55 = vsub.f32 %v2900_v4, %v554_v17 }
 0x1b7   :  { %v3747_v61 = vsub.f32 %v2899_v13, %v555_v53  ;;  %v746_v13 = vmul.f32 %v3741_v56, %v3741_v56 }
 0x1b8   :  { %1024 = vadd.xlane.f32.xlu1 %v935_v24  ;;  %1022 = vadd.xlane.f32.xlu0 %v934_v26  ;;  %v797_v6 = vpop.xlane.xlu1 %796  ;;  %v4462_v24 = vld [vmem:[#allocation27_spill] sm:$0xff] }
 0x1b9   :  { %v795_v39 = vpop.xlane.xlu0 %794 }
 0x1bc   :  { %836 = vadd.xlane.f32.xlu1 %v745_v46  ;;  %834 = vadd.xlane.f32.xlu0 %v744_v29  ;;  %v989_v37 = vpop.xlane.xlu1 %988 }
 0x1bd   :  { %v987_v33 = vpop.xlane.xlu0 %986  ;;  %v2766_v48 = vpop.eup %2765  ;;  %v1109_v21 = vadd.f32 %v989_v37, %v797_v6  ;;  %v4465_v37 = vld [vmem:[#allocation26_spill] sm:$0xff] }
 0x1be   :  { %v1108_v38 = vadd.f32 %v987_v33, %v795_v39  ;;  %v2768_v18 = vpop.eup %2767  ;;  %v1459_v26 = vmul.f32 %v2766_v48, %v4462_v24  ;;  %v1363_v25 = vmul.f32 %v2766_v48, %v4463_v40  ;;  %v4464_v39 = vld [vmem:[#allocation28_spill] sm:$0xff] }
 0x1bf   :  { %v1173_v46 = vmul.f32 0.00390625, %v1109_v21  ;;  %v1458_v29 = vmul.f32 %v2768_v18, %v4464_v39  ;;  %v1362_v33 = vmul.f32 %v2768_v18, %v4465_v37  ;;  %v557_v21 = vmul.f32 0.00390625, %v3547_v12  ;;  %v2901_v12 = vld [vmem:[#allocation2 + $0xf8] sm:$0xff]  ;;  %v2904_v39 = vld [vmem:[#allocation5 + $0xf0] sm:$0xff] }
 0x1c0   :  { %v1172_v6 = vmul.f32 0.00390625, %v1108_v38  ;;  %1028 = vadd.xlane.f32.xlu1 %v937_v1  ;;  %1026 = vadd.xlane.f32.xlu0 %v936_v50  ;;  %v305_v59 = vpop.xlane.xlu1 %304  ;;  %v556_v38 = vmul.f32 0.00390625, %v3549_v8  ;;  %v747_v18 = vmul.f32 %v3739_v34, %v3739_v34  ;;  %v2902_v50 = vld [vmem:[#allocation2 + $0xf0] sm:$0xff]  ;;  %v559_v37 = vmul.f32 0.00390625, %v3563_v23 }
 0x1c1   :  { %v303_v2 = vpop.xlane.xlu0 %302  ;;  %v1237_v36 = vadd.f32 1e-05, %v1173_v46  ;;  %v1520_v27 = vpack.c.bf16 %v1459_v26, %v1458_v29  ;;  %v1424_v48 = vpack.c.bf16 %v1363_v25, %v1362_v33  ;;  %v3761_v8 = vsub.f32 %v2901_v12, %v557_v21  ;;  %v2903_v46 = vld [vmem:[#allocation5 + $0xf8] sm:$0xff]  ;;  %v2906_v12 = vld [vmem:[#allocation2 + $0x100] sm:$0xff] }
 0x1c2   :  { %v1236_v24 = vadd.f32 1e-05, %v1172_v6  ;;  %v3763_v26 = vsub.f32 %v2902_v50, %v556_v38  ;;  %v3769_v6 = vsub.f32 %v2903_v46, %v557_v21  ;;  %v3771_v29 = vsub.f32 %v2904_v39, %v556_v38 }
 0x1c3   :  { %2769 = vrsqrt.f32 %v1237_v36  ;;  %2527 = vmatprep.mubr.bf16.mxu1 %v1520_v27  ;;  %2607 = vmatprep.mubr.bf16.mxu0 %v1424_v48  ;;  %v939_v36 = vmul.f32 %v3747_v61, %v3747_v61  ;;  %v938_v27 = vmul.f32 %v3749_v55, %v3749_v55  ;;  %v558_v33 = vmul.f32 0.00390625, %v3565_v60 }
 0x1c4   :  { %2771 = vrsqrt.f32 %v1236_v24  ;;  %840 = vadd.xlane.f32.xlu1 %v747_v18  ;;  %838 = vadd.xlane.f32.xlu0 %v746_v13  ;;  %v433_v4 = vpop.xlane.xlu1 %432  ;;  %v941_v38 = vmul.f32 %v3769_v6, %v3769_v6  ;;  %v940_v23 = vmul.f32 %v3771_v29, %v3771_v29 }
 0x1c5   :  { %v431_v53 = vpop.xlane.xlu0 %430  ;;  %v3757_v17 = vadd.f32 %v433_v4, %v305_v59  ;;  %v749_v59 = vmul.f32 %v3761_v8, %v3761_v8  ;;  %v2905_v4 = vld [vmem:[#allocation2 + $0x108] sm:$0xff]  ;;  %v3785_v50 = vsub.f32 %v2906_v12, %v558_v33 }
 0x1c6   :  { %v3759_v1 = vadd.f32 %v431_v53, %v303_v2  ;;  %v748_v2 = vmul.f32 %v3763_v26, %v3763_v26  ;;  %v3783_v53 = vsub.f32 %v2905_v4, %v559_v37 }
 0x1c8   :  { %1032 = vadd.xlane.f32.xlu1 %v939_v36  ;;  %1030 = vadd.xlane.f32.xlu0 %v938_v27  ;;  %v801_v40 = vpop.xlane.xlu1 %800 }
 0x1c9   :  { %v799_v25 = vpop.xlane.xlu0 %798 }
 0x1cc   :  { %844 = vadd.xlane.f32.xlu1 %v749_v59  ;;  %842 = vadd.xlane.f32.xlu0 %v748_v2  ;;  %v993_v24 = vpop.xlane.xlu1 %992  ;;  %v2907_v59 = vld [vmem:[#allocation5 + $0x108] sm:$0xff] }
 0x1cd   :  { %v991_v48 = vpop.xlane.xlu0 %990  ;;  %v2770_v18 = vpop.eup %2769  ;;  %v1111_v21 = vadd.f32 %v993_v24, %v801_v40  ;;  %v3791_v2 = vsub.f32 %v2907_v59, %v559_v37  ;;  %v2908_v24 = vld [vmem:[#allocation5 + $0x100] sm:$0xff]  ;;  %v751_v37 = vmul.f32 %v3783_v53, %v3783_v53  ;;  %v2912_v59 = vld [vmem:[#allocation5 + $0x110] sm:$0xff] }
 0x1ce   :  { %v1110_v13 = vadd.f32 %v991_v48, %v799_v25  ;;  %v2772_v60 = vpop.eup %2771  ;;  %v1461_v36 = vmul.f32 %v2770_v18, %v3442_v63  ;;  %v1365_v27 = vmul.f32 %v2770_v18, %v3432_v10  ;;  %v3793_v48 = vsub.f32 %v2908_v24, %v558_v33 }
 0x1cf   :  { %v1175_v46 = vmul.f32 0.00390625, %v1111_v21  ;;  %v1460_v25 = vmul.f32 %v2772_v60, %v3445_v51  ;;  %v1364_v39 = vmul.f32 %v2772_v60, %v3435_v54  ;;  %v561_v51 = vmul.f32 0.00390625, %v3577_v62 }
 0x1d0   :  { %v1174_v40 = vmul.f32 0.00390625, %v1110_v13  ;;  %1036 = vadd.xlane.f32.xlu1 %v941_v38  ;;  %1034 = vadd.xlane.f32.xlu0 %v940_v23  ;;  %v3795_v4 = vpop.xlane.xlu1 %308  ;;  %v560_v54 = vmul.f32 0.00390625, %v3579_v5  ;;  %v750_v33 = vmul.f32 %v3785_v50, %v3785_v50  ;;  %v2909_v23 = vld [vmem:[#allocation2 + $0x118] sm:$0xff]  ;;  %v2910_v5 = vld [vmem:[#allocation2 + $0x110] sm:$0xff] }
 0x1d1   :  { %v3797_v12 = vpop.xlane.xlu0 %306  ;;  %v1239_v63 = vadd.f32 1e-05, %v1175_v46  ;;  %v1521_v18 = vpack.c.bf16 %v1461_v36, %v1460_v25  ;;  %v1425_v21 = vpack.c.bf16 %v1365_v27, %v1364_v39  ;;  %v3809_v62 = vsub.f32 %v2909_v23, %v561_v51  ;;  %v2911_v25 = vld [vmem:[#allocation5 + $0x118] sm:$0xff] }
 0x1d2   :  { %v1238_v10 = vadd.f32 1e-05, %v1174_v40  ;;  %v3811_v60 = vsub.f32 %v2910_v5, %v560_v54  ;;  %v943_v36 = vmul.f32 %v3791_v2, %v3791_v2  ;;  %v942_v27 = vmul.f32 %v3793_v48, %v3793_v48 }
 0x1d3   :  { %2773 = vrsqrt.f32 %v1239_v63  ;;  %2528 = vmatmul.mubr.bf16.gmra.mrb[4].mxu1 %v1521_v18  ;;  %2608 = vmatmul.mubr.bf16.gmra.mrb[4].mxu0 %v1425_v21  ;;  %4466 = vst [vmem:[#allocation27_spill] sm:$0xff] %v3809_v62  ;;  %v3817_v39 = vsub.f32 %v2911_v25, %v561_v51  ;;  %v3819_v24 = vsub.f32 %v2912_v59, %v560_v54  ;;  %v563_v63 = vmul.f32 0.00390625, %v3593_v30  ;;  %v2914_v25 = vld [vmem:[#allocation2 + $0x120] sm:$0xff] }
 0x1d4   :  { %2775 = vrsqrt.f32 %v1238_v10  ;;  %848 = vadd.xlane.f32.xlu1 %v751_v37  ;;  %846 = vadd.xlane.f32.xlu0 %v750_v33  ;;  %v3805_v13 = vpop.xlane.xlu1 %436  ;;  %4467 = vst [vmem:[#allocation25_spill] sm:$0xff] %v3811_v60  ;;  %v562_v10 = vmul.f32 0.00390625, %v3595_v31  ;;  %v753_v18 = vmul.f32 %v3809_v62, %v3809_v62  ;;  %v752_v21 = vmul.f32 %v3811_v60, %v3811_v60 }
 0x1d5   :  { %v3807_v38 = vpop.xlane.xlu0 %434  ;;  %4468 = vst [vmem:[#allocation28_spill] sm:$0xff] %v3817_v39  ;;  %4469 = vst [vmem:[#allocation26_spill] sm:$0xff] %v3819_v24  ;;  %v945_v54 = vmul.f32 %v3817_v39, %v3817_v39  ;;  %v944_v30 = vmul.f32 %v3819_v24, %v3819_v24  ;;  %v2916_v24 = vld [vmem:[#allocation5 + $0x120] sm:$0xff] }
 0x1d6   :  { %v3833_v59 = vsub.f32 %v2914_v25, %v562_v10  ;;  %v3841_v39 = vsub.f32 %v2916_v24, %v562_v10 }
 0x1d8   :  { %1040 = vadd.xlane.f32.xlu1 %v943_v36  ;;  %1038 = vadd.xlane.f32.xlu0 %v942_v27  ;;  %v805_v46 = vpop.xlane.xlu1 %804  ;;  %v2913_v36 = vld [vmem:[#allocation2 + $0x128] sm:$0xff]  ;;  %v754_v24 = vmul.f32 %v3833_v59, %v3833_v59 }
 0x1d9   :  { %v803_v40 = vpop.xlane.xlu0 %802  ;;  %v3831_v27 = vsub.f32 %v2913_v36, %v563_v63 }
 0x1dc   :  { %852 = vadd.xlane.f32.xlu1 %v753_v18  ;;  %850 = vadd.xlane.f32.xlu0 %v752_v21  ;;  %v997_v37 = vpop.xlane.xlu1 %996 }
 0x1dd   :  { %v995_v33 = vpop.xlane.xlu0 %994  ;;  %v2774_v23 = vpop.eup %2773  ;;  %v1113_v51 = vadd.f32 %v997_v37, %v805_v46 }
 0x1de   :  { %v1112_v5 = vadd.f32 %v995_v33, %v803_v40  ;;  %v2776_v31 = vpop.eup %2775  ;;  %v1463_v18 = vmul.f32 %v2774_v23, %v3474_v15  ;;  %v1367_v21 = vmul.f32 %v2774_v23, %v3464_v57  ;;  %v2915_v33 = vld [vmem:[#allocation5 + $0x128] sm:$0xff] }
 0x1df   :  { %v1177_v60 = vmul.f32 0.00390625, %v1113_v51  ;;  %v1462_v40 = vmul.f32 %v2776_v31, %v3477_v3  ;;  %v1366_v37 = vmul.f32 %v2776_v31, %v3467_v9  ;;  %v3839_v62 = vsub.f32 %v2915_v33, %v563_v63 }
 0x1e0   :  { %v1176_v46 = vmul.f32 0.00390625, %v1112_v5  ;;  %1044 = vadd.xlane.f32.xlu1 %v945_v54  ;;  %1042 = vadd.xlane.f32.xlu0 %v944_v30  ;;  %v3843_v36 = vpop.xlane.xlu1 %312  ;;  %v565_v3 = vmul.f32 0.00390625, %v3607_v41  ;;  %v564_v9 = vmul.f32 0.00390625, %v3609_v45  ;;  %v755_v63 = vmul.f32 %v3831_v27, %v3831_v27  ;;  %v2917_v5 = vld [vmem:[#allocation2 + $0x138] sm:$0xff]  ;;  %v2918_v45 = vld [vmem:[#allocation2 + $0x130] sm:$0xff] }
 0x1e1   :  { %v3845_v25 = vpop.xlane.xlu0 %310  ;;  %v1241_v15 = vadd.f32 1e-05, %v1177_v60  ;;  %v1522_v23 = vpack.c.bf16 %v1463_v18, %v1462_v40  ;;  %v1426_v51 = vpack.c.bf16 %v1367_v21, %v1366_v37  ;;  %v947_v30 = vmul.f32 %v3839_v62, %v3839_v62  ;;  %v2920_v37 = vld [vmem:[#allocation5 + $0x130] sm:$0xff] }
 0x1e2   :  { %v1240_v57 = vadd.f32 1e-05, %v1176_v46  ;;  %v3857_v41 = vsub.f32 %v2917_v5, %v565_v3  ;;  %v3859_v54 = vsub.f32 %v2918_v45, %v564_v9  ;;  %v946_v31 = vmul.f32 %v3841_v39, %v3841_v39  ;;  %v2919_v46 = vld [vmem:[#allocation5 + $0x138] sm:$0xff] }
 0x1e3   :  { %2777 = vrsqrt.f32 %v1241_v15  ;;  %2531 = vmatprep.mubr.bf16.mxu1 %v1522_v23  ;;  %2611 = vmatprep.mubr.bf16.mxu0 %v1426_v51  ;;  %v3865_v40 = vsub.f32 %v2919_v46, %v565_v3  ;;  %v3867_v33 = vsub.f32 %v2920_v37, %v564_v9  ;;  %v567_v15 = vmul.f32 0.00390625, %v3623_v35  ;;  %v2922_v46 = vld [vmem:[#allocation2 + $0x140] sm:$0xff] }
 0x1e4   :  { %2779 = vrsqrt.f32 %v1240_v57  ;;  %856 = vadd.xlane.f32.xlu1 %v755_v63  ;;  %854 = vadd.xlane.f32.xlu0 %v754_v24  ;;  %v3853_v60 = vpop.xlane.xlu1 %440  ;;  %4470 = vst [vmem:[#allocation45_spill] sm:$0xff] %v3857_v41  ;;  %4471 = vst [vmem:[#allocation46_spill] sm:$0xff] %v3859_v54  ;;  %v566_v57 = vmul.f32 0.00390625, %v3625_v42  ;;  %v757_v23 = vmul.f32 %v3857_v41, %v3857_v41 }
 0x1e5   :  { %v3855_v10 = vpop.xlane.xlu0 %438  ;;  %4472 = vst [vmem:[#allocation47_spill] sm:$0xff] %v3865_v40  ;;  %4473 = vst [vmem:[#allocation48_spill] sm:$0xff] %v3867_v33  ;;  %v756_v51 = vmul.f32 %v3859_v54, %v3859_v54  ;;  %v949_v9 = vmul.f32 %v3865_v40, %v3865_v40  ;;  %v948_v35 = vmul.f32 %v3867_v33, %v3867_v33  ;;  %v2924_v33 = vld [vmem:[#allocation5 + $0x140] sm:$0xff] }
 0x1e6   :  { %v3881_v37 = vsub.f32 %v2922_v46, %v566_v57  ;;  %v3889_v40 = vsub.f32 %v2924_v33, %v566_v57 }
 0x1e8   :  { %1048 = vadd.xlane.f32.xlu1 %v947_v30  ;;  %1046 = vadd.xlane.f32.xlu0 %v946_v31  ;;  %v809_v18 = vpop.xlane.xlu1 %808  ;;  %v2921_v30 = vld [vmem:[#allocation2 + $0x148] sm:$0xff]  ;;  %4474 = vst [vmem:[#allocation49_spill] sm:$0xff] %v3881_v37  ;;  %v758_v33 = vmul.f32 %v3881_v37, %v3881_v37 }
 0x1e9   :  { %v807_v21 = vpop.xlane.xlu0 %806  ;;  %v3879_v31 = vsub.f32 %v2921_v30, %v567_v15  ;;  %v2939_v37 = vld [vmem:[#allocation5 + $0x188] sm:$0xff] }
 0x1ec   :  { %860 = vadd.xlane.f32.xlu1 %v757_v23  ;;  %858 = vadd.xlane.f32.xlu0 %v756_v51  ;;  %v1001_v63 = vpop.xlane.xlu1 %1000 }
 0x1ed   :  { %v999_v24 = vpop.xlane.xlu0 %998  ;;  %v2778_v5 = vpop.eup %2777  ;;  %v1115_v3 = vadd.f32 %v1001_v63, %v809_v18 }
 0x1ee   :  { %v1114_v45 = vadd.f32 %v999_v24, %v807_v21  ;;  %v2780_v42 = vpop.eup %2779  ;;  %v1465_v23 = vmul.f32 %v2778_v5, %v3506_v52  ;;  %v1369_v51 = vmul.f32 %v2778_v5, %v3496_v49  ;;  %v2923_v24 = vld [vmem:[#allocation5 + $0x148] sm:$0xff] }
 0x1ef   :  { %v1179_v54 = vmul.f32 0.00390625, %v1115_v3  ;;  %v1464_v21 = vmul.f32 %v2780_v42, %v3509_v47  ;;  %v1368_v63 = vmul.f32 %v2780_v42, %v3499_v44  ;;  %v3887_v41 = vsub.f32 %v2923_v24, %v567_v15 }
 0x1f0   :  { %v1178_v18 = vmul.f32 0.00390625, %v1114_v45  ;;  %1052 = vadd.xlane.f32.xlu1 %v949_v9  ;;  %1050 = vadd.xlane.f32.xlu0 %v948_v35  ;;  %v3891_v30 = vpop.xlane.xlu1 %316  ;;  %v569_v47 = vmul.f32 0.00390625, %v3649_v28  ;;  %v568_v44 = vmul.f32 0.00390625, %v3651_v14  ;;  %v759_v15 = vmul.f32 %v3879_v31, %v3879_v31  ;;  %v2925_v45 = vld [vmem:[#allocation2 + $0x158] sm:$0xff]  ;;  %v2926_v14 = vld [vmem:[#allocation2 + $0x150] sm:$0xff] }
 0x1f1   :  { %v3893_v46 = vpop.xlane.xlu0 %314  ;;  %v1243_v52 = vadd.f32 1e-05, %v1179_v54  ;;  %v1523_v5 = vpack.c.bf16 %v1465_v23, %v1464_v21  ;;  %v1427_v3 = vpack.c.bf16 %v1369_v51, %v1368_v63  ;;  %v951_v35 = vmul.f32 %v3887_v41, %v3887_v41  ;;  %v2928_v63 = vld [vmem:[#allocation5 + $0x150] sm:$0xff] }
 0x1f2   :  { %v1242_v49 = vadd.f32 1e-05, %v1178_v18  ;;  %v3905_v28 = vsub.f32 %v2925_v45, %v569_v47  ;;  %v3907_v9 = vsub.f32 %v2926_v14, %v568_v44  ;;  %v950_v42 = vmul.f32 %v3889_v40, %v3889_v40  ;;  %v2927_v18 = vld [vmem:[#allocation5 + $0x158] sm:$0xff] }
 0x1f3   :  { %2781 = vrsqrt.f32 %v1243_v52  ;;  %2532 = vmatmul.mubr.bf16.gmra.mrb[8].mxu1 %v1523_v5  ;;  %2612 = vmatmul.mubr.bf16.gmra.mrb[8].mxu0 %v1427_v3  ;;  %v3913_v21 = vsub.f32 %v2927_v18, %v569_v47  ;;  %v3915_v24 = vsub.f32 %v2928_v63, %v568_v44  ;;  %v571_v52 = vmul.f32 0.00390625, %v3673_v11  ;;  %v2930_v18 = vld [vmem:[#allocation2 + $0x160] sm:$0xff] }
 0x1f4   :  { %2783 = vrsqrt.f32 %v1242_v49  ;;  %864 = vadd.xlane.f32.xlu1 %v759_v15  ;;  %862 = vadd.xlane.f32.xlu0 %v758_v33  ;;  %v3901_v54 = vpop.xlane.xlu1 %444  ;;  %4475 = vst [vmem:[#allocation50_spill] sm:$0xff] %v3905_v28  ;;  %4476 = vst [vmem:[#allocation51_spill] sm:$0xff] %v3907_v9  ;;  %v570_v49 = vmul.f32 0.00390625, %v3675_v20  ;;  %v761_v5 = vmul.f32 %v3905_v28, %v3905_v28 }
 0x1f5   :  { %v3903_v57 = vpop.xlane.xlu0 %442  ;;  %4477 = vst [vmem:[#allocation52_spill] sm:$0xff] %v3913_v21  ;;  %4478 = vst [vmem:[#allocation53_spill] sm:$0xff] %v3915_v24  ;;  %v760_v3 = vmul.f32 %v3907_v9, %v3907_v9  ;;  %v953_v44 = vmul.f32 %v3913_v21, %v3913_v21  ;;  %v952_v11 = vmul.f32 %v3915_v24, %v3915_v24  ;;  %v2932_v24 = vld [vmem:[#allocation5 + $0x160] sm:$0xff] }
 0x1f6   :  { %v3929_v63 = vsub.f32 %v2930_v18, %v570_v49  ;;  %v3937_v21 = vsub.f32 %v2932_v24, %v570_v49 }
 0x1f8   :  { %1056 = vadd.xlane.f32.xlu1 %v951_v35  ;;  %1054 = vadd.xlane.f32.xlu0 %v950_v42  ;;  %v813_v23 = vpop.xlane.xlu1 %812  ;;  %v2929_v35 = vld [vmem:[#allocation2 + $0x168] sm:$0xff]  ;;  %4480 = vst [vmem:[#allocation55_spill] sm:$0xff] %v3929_v63  ;;  %4482 = vst [vmem:[#allocation57_spill] sm:$0xff] %v3937_v21  ;;  %v762_v24 = vmul.f32 %v3929_v63, %v3929_v63 }
 0x1f9   :  { %v811_v51 = vpop.xlane.xlu0 %810  ;;  %v3927_v42 = vsub.f32 %v2929_v35, %v571_v52 }
 0x1fb   :  { %4479 = vst [vmem:[#allocation54_spill] sm:$0xff] %v3927_v42 }
 0x1fc   :  { %868 = vadd.xlane.f32.xlu1 %v761_v5  ;;  %866 = vadd.xlane.f32.xlu0 %v760_v3  ;;  %v1005_v15 = vpop.xlane.xlu1 %1004 }
 0x1fd   :  { %v1003_v33 = vpop.xlane.xlu0 %1002  ;;  %v2782_v45 = vpop.eup %2781  ;;  %v1117_v47 = vadd.f32 %v1005_v15, %v813_v23 }
 0x1fe   :  { %v1116_v14 = vadd.f32 %v1003_v33, %v811_v51  ;;  %v2784_v20 = vpop.eup %2783  ;;  %v1467_v5 = vmul.f32 %v2782_v45, %v3538_v0  ;;  %v1371_v3 = vmul.f32 %v2782_v45, %v3528_v7  ;;  %v2931_v33 = vld [vmem:[#allocation5 + $0x168] sm:$0xff] }
 0x1ff   :  { %v1181_v9 = vmul.f32 0.00390625, %v1117_v47  ;;  %v1466_v51 = vmul.f32 %v2784_v20, %v3541_v22  ;;  %v1370_v15 = vmul.f32 %v2784_v20, %v3531_v43  ;;  %v3935_v28 = vsub.f32 %v2931_v33, %v571_v52 }
 0x200   :  { %v1180_v23 = vmul.f32 0.00390625, %v1116_v14  ;;  %1060 = vadd.xlane.f32.xlu1 %v953_v44  ;;  %1058 = vadd.xlane.f32.xlu0 %v952_v11  ;;  %v3939_v35 = vpop.xlane.xlu1 %320  ;;  %v573_v22 = vmul.f32 0.00390625, %v3713_v32  ;;  %v572_v43 = vmul.f32 0.00390625, %v3715_v19  ;;  %v763_v52 = vmul.f32 %v3927_v42, %v3927_v42  ;;  %v2933_v14 = vld [vmem:[#allocation2 + $0x178] sm:$0xff]  ;;  %v2934_v19 = vld [vmem:[#allocation2 + $0x170] sm:$0xff] }
 0x201   :  { %4481 = vst [vmem:[#allocation56_spill] sm:$0xff] %v3935_v28  ;;  %v3941_v18 = vpop.xlane.xlu0 %318  ;;  %v1245_v0 = vadd.f32 1e-05, %v1181_v9  ;;  %v1524_v45 = vpack.c.bf16 %v1467_v5, %v1466_v51  ;;  %v1428_v47 = vpack.c.bf16 %v1371_v3, %v1370_v15  ;;  %v955_v11 = vmul.f32 %v3935_v28, %v3935_v28  ;;  %v2935_v5 = vld [vmem:[#allocation5 + $0x178] sm:$0xff] }
 0x202   :  { %v1244_v7 = vadd.f32 1e-05, %v1180_v23  ;;  %v3953_v32 = vsub.f32 %v2933_v14, %v573_v22  ;;  %v3955_v44 = vsub.f32 %v2934_v19, %v572_v43  ;;  %v954_v20 = vmul.f32 %v3937_v21, %v3937_v21  ;;  %v2936_v23 = vld [vmem:[#allocation5 + $0x170] sm:$0xff]  ;;  %v4490_v28 = vld [vmem:[#allocation30_spill] sm:$0xff] }
 0x203   :  { %2785 = vrsqrt.f32 %v1245_v0  ;;  %2535 = vmatprep.mubr.bf16.mxu1 %v1524_v45  ;;  %2615 = vmatprep.mubr.bf16.mxu0 %v1428_v47  ;;  %v3961_v3 = vsub.f32 %v2935_v5, %v573_v22  ;;  %v3963_v51 = vsub.f32 %v2936_v23, %v572_v43  ;;  %v575_v0 = vmul.f32 0.00390625, %v3757_v17  ;;  %v2937_v17 = vld [vmem:[#allocation2 + $0x188] sm:$0xff] }
 0x204   :  { %2787 = vrsqrt.f32 %v1244_v7  ;;  %872 = vadd.xlane.f32.xlu1 %v763_v52  ;;  %870 = vadd.xlane.f32.xlu0 %v762_v24  ;;  %v3949_v9 = vpop.xlane.xlu1 %448  ;;  %4483 = vst [vmem:[#allocation58_spill] sm:$0xff] %v3953_v32  ;;  %4484 = vst [vmem:[#allocation59_spill] sm:$0xff] %v3955_v44  ;;  %v574_v7 = vmul.f32 0.00390625, %v3759_v1  ;;  %v765_v45 = vmul.f32 %v3953_v32, %v3953_v32  ;;  %v2938_v1 = vld [vmem:[#allocation2 + $0x180] sm:$0xff] }
 0x205   :  { %v3951_v49 = vpop.xlane.xlu0 %446  ;;  %4485 = vst [vmem:[#allocation60_spill] sm:$0xff] %v3961_v3  ;;  %4486 = vst [vmem:[#allocation61_spill] sm:$0xff] %v3963_v51  ;;  %v764_v47 = vmul.f32 %v3955_v44, %v3955_v44  ;;  %v957_v43 = vmul.f32 %v3961_v3, %v3961_v3  ;;  %v956_v24 = vmul.f32 %v3963_v51, %v3963_v51  ;;  %v4487_v44 = vld [vmem:[#allocation31_spill] sm:$0xff]  ;;  %v4488_v3 = vld [vmem:[#allocation29_spill] sm:$0xff] }
 0x206   :  { %v3975_v19 = vsub.f32 %v2937_v17, %v575_v0  ;;  %v4489_v17 = vld [vmem:[#allocation32_spill] sm:$0xff] }
 0x208   :  { %1064 = vadd.xlane.f32.xlu1 %v955_v11  ;;  %1062 = vadd.xlane.f32.xlu0 %v954_v20  ;;  %v817_v15 = vpop.xlane.xlu1 %816  ;;  %v3977_v11 = vsub.f32 %v2938_v1, %v574_v7 }
 0x209   :  { %v815_v33 = vpop.xlane.xlu0 %814 }
 0x20c   :  { %876 = vadd.xlane.f32.xlu1 %v765_v45  ;;  %874 = vadd.xlane.f32.xlu0 %v764_v47  ;;  %v1009_v22 = vpop.xlane.xlu1 %1008  ;;  %v513_v45 = vadd.f32 %v3805_v13, %v3795_v4  ;;  %v512_v47 = vadd.f32 %v3807_v38, %v3797_v12 }
 0x20d   :  { %v1007_v52 = vpop.xlane.xlu0 %1006  ;;  %v2786_v14 = vpop.eup %2785  ;;  %v1119_v20 = vadd.f32 %v1009_v22, %v817_v15  ;;  %v3987_v15 = vsub.f32 %v2939_v37, %v575_v0  ;;  %v766_v37 = vmul.f32 %v3977_v11, %v3977_v11 }
 0x20e   :  { %v1118_v5 = vadd.f32 %v1007_v52, %v815_v33  ;;  %v2788_v23 = vpop.eup %2787  ;;  %v1469_v32 = vmul.f32 %v2786_v14, %v4487_v44  ;;  %v1373_v51 = vmul.f32 %v2786_v14, %v4488_v3  ;;  %v2940_v33 = vld [vmem:[#allocation5 + $0x180] sm:$0xff]  ;;  %v577_v52 = vmul.f32 0.00390625, %v513_v45  ;;  %v2944_v45 = vld [vmem:[#allocation5 + $0x190] sm:$0xff] }
 0x20f   :  { %v1183_v63 = vmul.f32 0.00390625, %v1119_v20  ;;  %v1468_v42 = vmul.f32 %v2788_v23, %v4489_v17  ;;  %v1372_v1 = vmul.f32 %v2788_v23, %v4490_v28  ;;  %v3989_v22 = vsub.f32 %v2940_v33, %v574_v7  ;;  %v2942_v7 = vld [vmem:[#allocation2 + $0x190] sm:$0xff] }
 0x210   :  { %v1182_v21 = vmul.f32 0.00390625, %v1118_v5  ;;  %1068 = vadd.xlane.f32.xlu1 %v957_v43  ;;  %1066 = vadd.xlane.f32.xlu0 %v956_v24  ;;  %v3991_v4 = vpop.xlane.xlu1 %324  ;;  %v576_v14 = vmul.f32 0.00390625, %v512_v47  ;;  %v767_v28 = vmul.f32 %v3975_v19, %v3975_v19  ;;  %v959_v24 = vmul.f32 %v3987_v15, %v3987_v15  ;;  %v2943_v5 = vld [vmem:[#allocation5 + $0x198] sm:$0xff] }
 0x211   :  { %v3993_v12 = vpop.xlane.xlu0 %322  ;;  %v1247_v13 = vadd.f32 1e-05, %v1183_v63  ;;  %v1525_v44 = vpack.c.bf16 %v1469_v32, %v1468_v42  ;;  %v1429_v3 = vpack.c.bf16 %v1373_v51, %v1372_v1  ;;  %v514_v42 = vadd.f32 %v3855_v10, %v3845_v25  ;;  %v2941_v32 = vld [vmem:[#allocation2 + $0x198] sm:$0xff] }
 0x212   :  { %v1246_v38 = vadd.f32 1e-05, %v1182_v21  ;;  %v515_v21 = vadd.f32 %v3853_v60, %v3843_v36  ;;  %v4007_v51 = vsub.f32 %v2941_v32, %v577_v52  ;;  %v4009_v43 = vsub.f32 %v2942_v7, %v576_v14 }
 0x213   :  { %2789 = vrsqrt.f32 %v1247_v13  ;;  %2536 = vmatmul.mubr.bf16.gmra.mrb[12].mxu1 %v1525_v44  ;;  %2616 = vmatmul.mubr.bf16.gmra.mrb[12].mxu0 %v1429_v3  ;;  %v958_v20 = vmul.f32 %v3989_v22, %v3989_v22  ;;  %v4015_v23 = vsub.f32 %v2943_v5, %v577_v52  ;;  %v4017_v36 = vsub.f32 %v2944_v45, %v576_v14  ;;  %v2945_v52 = vld [vmem:[#allocation2 + $0x1a8] sm:$0xff]  ;;  %v4496_v45 = vld [vmem:[#allocation33_spill] sm:$0xff] }
 0x214   :  { %2791 = vrsqrt.f32 %v1246_v38  ;;  %880 = vadd.xlane.f32.xlu1 %v767_v28  ;;  %878 = vadd.xlane.f32.xlu0 %v766_v37  ;;  %v3999_v0 = vpop.xlane.xlu1 %452  ;;  %4491 = vst [vmem:[#allocation31_spill] sm:$0xff] %v4007_v51  ;;  %4492 = vst [vmem:[#allocation29_spill] sm:$0xff] %v4009_v43  ;;  %v579_v10 = vmul.f32 0.00390625, %v515_v21  ;;  %v578_v47 = vmul.f32 0.00390625, %v514_v42  ;;  %v769_v17 = vmul.f32 %v4007_v51, %v4007_v51  ;;  %v2946_v28 = vld [vmem:[#allocation2 + $0x1a0] sm:$0xff]  ;;  %v4498_v51 = vld [vmem:[#allocation34_spill] sm:$0xff] }
 0x215   :  { %v4001_v63 = vpop.xlane.xlu0 %450  ;;  %4493 = vst [vmem:[#allocation32_spill] sm:$0xff] %v4015_v23  ;;  %4494 = vst [vmem:[#allocation30_spill] sm:$0xff] %v4017_v36  ;;  %v768_v1 = vmul.f32 %v4009_v43, %v4009_v43  ;;  %v961_v38 = vmul.f32 %v4015_v23, %v4015_v23  ;;  %v960_v44 = vmul.f32 %v4017_v36, %v4017_v36  ;;  %v2947_v23 = vld [vmem:[#allocation5 + $0x1a8] sm:$0xff] }
 0x216   :  { %v4027_v14 = vsub.f32 %v2945_v52, %v579_v10  ;;  %v4029_v37 = vsub.f32 %v2946_v28, %v578_v47  ;;  %v517_v7 = vadd.f32 %v3901_v54, %v3891_v30  ;;  %v4497_v52 = vld [vmem:[#allocation36_spill] sm:$0xff] }
 0x218   :  { %1072 = vadd.xlane.f32.xlu1 %v959_v24  ;;  %1070 = vadd.xlane.f32.xlu0 %v958_v20  ;;  %v821_v25 = vpop.xlane.xlu1 %820  ;;  %v516_v24 = vadd.f32 %v3903_v57, %v3893_v46  ;;  %v4495_v20 = vld [vmem:[#allocation35_spill] sm:$0xff] }
 0x219   :  { %v819_v60 = vpop.xlane.xlu0 %818 }
 0x21c   :  { %884 = vadd.xlane.f32.xlu1 %v769_v17  ;;  %882 = vadd.xlane.f32.xlu0 %v768_v1  ;;  %v1013_v33 = vpop.xlane.xlu1 %1012 }
 0x21d   :  { %v1011_v13 = vpop.xlane.xlu0 %1010  ;;  %v2790_v3 = vpop.eup %2789  ;;  %v1121_v21 = vadd.f32 %v1013_v33, %v821_v25  ;;  %v4039_v25 = vsub.f32 %v2947_v23, %v579_v10  ;;  %v770_v23 = vmul.f32 %v4029_v37, %v4029_v37 }
 0x21e   :  { %v1120_v42 = vadd.f32 %v1011_v13, %v819_v60  ;;  %v2792_v32 = vpop.eup %2791  ;;  %v1471_v5 = vmul.f32 %v2790_v3, %v4495_v20  ;;  %v1375_v17 = vmul.f32 %v2790_v3, %v4496_v45  ;;  %v2948_v60 = vld [vmem:[#allocation5 + $0x1a0] sm:$0xff] }
 0x21f   :  { %v1185_v1 = vmul.f32 0.00390625, %v1121_v21  ;;  %v1470_v36 = vmul.f32 %v2792_v32, %v4497_v52  ;;  %v1374_v28 = vmul.f32 %v2792_v32, %v4498_v51  ;;  %v4041_v33 = vsub.f32 %v2948_v60, %v578_v47  ;;  %v2950_v32 = vld [vmem:[#allocation2 + $0x1b0] sm:$0xff] }
 0x220   :  { %v1184_v43 = vmul.f32 0.00390625, %v1120_v42  ;;  %1076 = vadd.xlane.f32.xlu1 %v961_v38  ;;  %1074 = vadd.xlane.f32.xlu0 %v960_v44  ;;  %v4043_v30 = vpop.xlane.xlu1 %328  ;;  %v581_v21 = vmul.f32 0.00390625, %v517_v7  ;;  %v580_v42 = vmul.f32 0.00390625, %v516_v24  ;;  %v771_v51 = vmul.f32 %v4027_v14, %v4027_v14  ;;  %v2949_v38 = vld [vmem:[#allocation2 + $0x1b8] sm:$0xff] }
 0x221   :  { %v4045_v46 = vpop.xlane.xlu0 %326  ;;  %v1249_v54 = vadd.f32 1e-05, %v1185_v1  ;;  %v1526_v13 = vpack.c.bf16 %v1471_v5, %v1470_v36  ;;  %v1430_v3 = vpack.c.bf16 %v1375_v17, %v1374_v28  ;;  %v518_v36 = vadd.f32 %v3951_v49, %v3941_v18  ;;  %v2951_v5 = vld [vmem:[#allocation5 + $0x1b8] sm:$0xff]  ;;  %v2952_v17 = vld [vmem:[#allocation5 + $0x1b0] sm:$0xff] }
 0x222   :  { %v1248_v57 = vadd.f32 1e-05, %v1184_v43  ;;  %v519_v43 = vadd.f32 %v3949_v9, %v3939_v35  ;;  %v4059_v44 = vsub.f32 %v2949_v38, %v581_v21  ;;  %v4061_v7 = vsub.f32 %v2950_v32, %v580_v42 }
 0x223   :  { %2793 = vrsqrt.f32 %v1249_v54  ;;  %2539 = vmatprep.mubr.bf16.mxu1 %v1526_v13  ;;  %2619 = vmatprep.mubr.bf16.mxu0 %v1430_v3  ;;  %v963_v24 = vmul.f32 %v4039_v25, %v4039_v25  ;;  %v962_v20 = vmul.f32 %v4041_v33, %v4041_v33  ;;  %v4067_v45 = vsub.f32 %v2951_v5, %v581_v21  ;;  %v2953_v21 = vld [vmem:[#allocation2 + $0x1c8] sm:$0xff] }
 0x224   :  { %2795 = vrsqrt.f32 %v1248_v57  ;;  %888 = vadd.xlane.f32.xlu1 %v771_v51  ;;  %886 = vadd.xlane.f32.xlu0 %v770_v23  ;;  %v4051_v10 = vpop.xlane.xlu1 %456  ;;  %4499 = vst [vmem:[#allocation35_spill] sm:$0xff] %v4059_v44  ;;  %4500 = vst [vmem:[#allocation33_spill] sm:$0xff] %v4061_v7  ;;  %v4069_v35 = vsub.f32 %v2952_v17, %v580_v42  ;;  %v583_v49 = vmul.f32 0.00390625, %v519_v43  ;;  %v582_v1 = vmul.f32 0.00390625, %v518_v36  ;;  %v2954_v51 = vld [vmem:[#allocation2 + $0x1c0] sm:$0xff]  ;;  %v4505_v17 = vld [vmem:[#allocation37_spill] sm:$0xff] }
 0x225   :  { %v4053_v47 = vpop.xlane.xlu0 %454  ;;  %4501 = vst [vmem:[#allocation36_spill] sm:$0xff] %v4067_v45  ;;  %v773_v52 = vmul.f32 %v4059_v44, %v4059_v44  ;;  %v772_v28 = vmul.f32 %v4061_v7, %v4061_v7  ;;  %v965_v57 = vmul.f32 %v4067_v45, %v4067_v45  ;;  %v521_v32 = vadd.f32 %v3999_v0, %v3991_v4  ;;  %v4507_v44 = vld [vmem:[#allocation38_spill] sm:$0xff]  ;;  %v2955_v45 = vld [vmem:[#allocation5 + $0x1c8] sm:$0xff] }
 0x226   :  { %4502 = vst [vmem:[#allocation34_spill] sm:$0xff] %v4069_v35  ;;  %v964_v13 = vmul.f32 %v4069_v35, %v4069_v35  ;;  %v4079_v42 = vsub.f32 %v2953_v21, %v583_v49  ;;  %v4081_v23 = vsub.f32 %v2954_v51, %v582_v1  ;;  %v4506_v21 = vld [vmem:[#allocation40_spill] sm:$0xff] }
 0x228   :  { %1080 = vadd.xlane.f32.xlu1 %v963_v24  ;;  %1078 = vadd.xlane.f32.xlu0 %v962_v20  ;;  %v825_v18 = vpop.xlane.xlu1 %824  ;;  %4503 = vst [vmem:[#allocation62_spill] sm:$0xff] %v4081_v23  ;;  %v520_v24 = vadd.f32 %v4001_v63, %v3993_v12  ;;  %v4504_v20 = vld [vmem:[#allocation39_spill] sm:$0xff] }
 0x229   :  { %v823_v9 = vpop.xlane.xlu0 %822 }
 0x22c   :  { %892 = vadd.xlane.f32.xlu1 %v773_v52  ;;  %890 = vadd.xlane.f32.xlu0 %v772_v28  ;;  %v1017_v60 = vpop.xlane.xlu1 %1016 }
 0x22d   :  { %v1015_v54 = vpop.xlane.xlu0 %1014  ;;  %v2794_v3 = vpop.eup %2793  ;;  %v1123_v43 = vadd.f32 %v1017_v60, %v825_v18  ;;  %v4091_v18 = vsub.f32 %v2955_v45, %v583_v49  ;;  %v522_v45 = vadd.f32 %v4053_v47, %v4045_v46 }
 0x22e   :  { %v1122_v36 = vadd.f32 %v1015_v54, %v823_v9  ;;  %v2796_v38 = vpop.eup %2795  ;;  %v1473_v5 = vmul.f32 %v2794_v3, %v4504_v20  ;;  %v1377_v52 = vmul.f32 %v2794_v3, %v4505_v17  ;;  %v2956_v9 = vld [vmem:[#allocation5 + $0x1c0] sm:$0xff]  ;;  %v775_v20 = vmul.f32 %v4079_v42, %v4079_v42 }
 0x22f   :  { %v1187_v28 = vmul.f32 0.00390625, %v1123_v43  ;;  %v1472_v35 = vmul.f32 %v2796_v38, %v4506_v21  ;;  %v1376_v51 = vmul.f32 %v2796_v38, %v4507_v44  ;;  %v4093_v60 = vsub.f32 %v2956_v9, %v582_v1  ;;  %v2957_v1 = vld [vmem:[#allocation2 + $0x1d8] sm:$0xff] }
 0x230   :  { %v1186_v7 = vmul.f32 0.00390625, %v1122_v36  ;;  %1084 = vadd.xlane.f32.xlu1 %v965_v57  ;;  %1082 = vadd.xlane.f32.xlu0 %v964_v13  ;;  %v585_v43 = vmul.f32 0.00390625, %v521_v32  ;;  %v584_v36 = vmul.f32 0.00390625, %v520_v24  ;;  %v774_v44 = vmul.f32 %v4081_v23, %v4081_v23  ;;  %v2958_v13 = vld [vmem:[#allocation2 + $0x1d0] sm:$0xff] }
 0x231   :  { %v1251_v4 = vadd.f32 1e-05, %v1187_v28  ;;  %v333_v0 = vpop.xlane.xlu1 %332  ;;  %v331_v63 = vpop.xlane.xlu0 %330  ;;  %v1527_v54 = vpack.c.bf16 %v1473_v5, %v1472_v35  ;;  %v1431_v3 = vpack.c.bf16 %v1377_v52, %v1376_v51  ;;  %v967_v32 = vmul.f32 %v4091_v18, %v4091_v18  ;;  %v2959_v5 = vld [vmem:[#allocation5 + $0x1d8] sm:$0xff] }
 0x232   :  { %v1250_v12 = vadd.f32 1e-05, %v1186_v7  ;;  %v523_v7 = vadd.f32 %v4051_v10, %v4043_v30  ;;  %v4103_v57 = vsub.f32 %v2957_v1, %v585_v43  ;;  %v4105_v38 = vsub.f32 %v2958_v13, %v584_v36  ;;  %v2960_v30 = vld [vmem:[#allocation5 + $0x1d0] sm:$0xff] }
 0x233   :  { %2797 = vrsqrt.f32 %v1251_v4  ;;  %2540 = vmatmul.mubr.bf16.gmra.mrb[16].mxu1 %v1527_v54  ;;  %2620 = vmatmul.mubr.bf16.gmra.mrb[16].mxu0 %v1431_v3  ;;  %v966_v24 = vmul.f32 %v4093_v60, %v4093_v60  ;;  %v4111_v17 = vsub.f32 %v2959_v5, %v585_v43  ;;  %v4113_v10 = vsub.f32 %v2960_v30, %v584_v36  ;;  %v2961_v54 = vld [vmem:[#allocation2 + $0x1e8] sm:$0xff]  ;;  %v2962_v43 = vld [vmem:[#allocation2 + $0x1e0] sm:$0xff]  ;;  %v4513_v30 = vld [vmem:[#allocation41_spill] sm:$0xff] }
 0x234   :  { %2799 = vrsqrt.f32 %v1250_v12  ;;  %896 = vadd.xlane.f32.xlu1 %v775_v20  ;;  %894 = vadd.xlane.f32.xlu0 %v774_v44  ;;  %4508 = vst [vmem:[#allocation39_spill] sm:$0xff] %v4103_v57  ;;  %4509 = vst [vmem:[#allocation37_spill] sm:$0xff] %v4105_v38  ;;  %v587_v46 = vmul.f32 0.00390625, %v523_v7  ;;  %v586_v47 = vmul.f32 0.00390625, %v522_v45  ;;  %v777_v21 = vmul.f32 %v4103_v57, %v4103_v57 }
 0x235   :  { %v461_v35 = vpop.xlane.xlu1 %460  ;;  %v459_v49 = vpop.xlane.xlu0 %458  ;;  %4510 = vst [vmem:[#allocation40_spill] sm:$0xff] %v4111_v17  ;;  %4511 = vst [vmem:[#allocation38_spill] sm:$0xff] %v4113_v10  ;;  %v776_v51 = vmul.f32 %v4105_v38, %v4105_v38  ;;  %v969_v9 = vmul.f32 %v4111_v17, %v4111_v17  ;;  %v968_v4 = vmul.f32 %v4113_v10, %v4113_v10  ;;  %v4515_v10 = vld [vmem:[#allocation15_spill] sm:$0xff] }
 0x236   :  { %v4123_v3 = vsub.f32 %v2961_v54, %v587_v46  ;;  %v4125_v36 = vsub.f32 %v2962_v43, %v586_v47  ;;  %v525_v20 = vadd.f32 %v461_v35, %v333_v0  ;;  %v524_v44 = vadd.f32 %v459_v49, %v331_v63  ;;  %v2963_v54 = vld [vmem:[#allocation5 + $0x1e8] sm:$0xff]  ;;  %v2964_v43 = vld [vmem:[#allocation5 + $0x1e0] sm:$0xff] }
 0x237   :  { %v4131_v17 = vsub.f32 %v2963_v54, %v587_v46  ;;  %v4133_v23 = vsub.f32 %v2964_v43, %v586_v47  ;;  %v2968_v54 = vld [vmem:[#allocation5 + $0x1f0] sm:$0xff] }
 0x238   :  { %1088 = vadd.xlane.f32.xlu1 %v967_v32  ;;  %1086 = vadd.xlane.f32.xlu0 %v966_v24  ;;  %v4512_v24 = vld [vmem:[#allocation16_spill] sm:$0xff]  ;;  %v588_v46 = vmul.f32 0.00390625, %v524_v44 }
 0x239   :  { %v829_v52 = vpop.xlane.xlu1 %828  ;;  %v827_v28 = vpop.xlane.xlu0 %826 }
 0x23a   :  { %v4149_v43 = vsub.f32 %v2968_v54, %v588_v46 }
 0x23c   :  { %900 = vadd.xlane.f32.xlu1 %v777_v21  ;;  %898 = vadd.xlane.f32.xlu0 %v776_v51  ;;  %v4514_v51 = vld [vmem:[#allocation17_spill] sm:$0xff] }
 0x23d   :  { %v2798_v12 = vpop.eup %2797  ;;  %v1021_v7 = vpop.xlane.xlu1 %1020 }
 0x23e   :  { %v1019_v45 = vpop.xlane.xlu0 %1018  ;;  %v2800_v1 = vpop.eup %2799  ;;  %v1125_v13 = vadd.f32 %v1021_v7, %v829_v52  ;;  %v1475_v5 = vmul.f32 %v2798_v12, %v4512_v24  ;;  %v1379_v21 = vmul.f32 %v2798_v12, %v4513_v30  ;;  %v779_v12 = vmul.f32 %v4123_v3, %v4123_v3 }
 0x23f   :  { %v1124_v32 = vadd.f32 %v1019_v45, %v827_v28  ;;  %v1474_v38 = vmul.f32 %v2800_v1, %v4514_v51  ;;  %v1378_v57 = vmul.f32 %v2800_v1, %v4515_v10  ;;  %v778_v10 = vmul.f32 %v4125_v36, %v4125_v36 }
 0x240   :  { %v1189_v0 = vmul.f32 0.00390625, %v1125_v13  ;;  %1092 = vadd.xlane.f32.xlu1 %v969_v9  ;;  %1090 = vadd.xlane.f32.xlu0 %v968_v4  ;;  %v589_v7 = vmul.f32 0.00390625, %v525_v20  ;;  %v2965_v4 = vld [vmem:[#allocation2 + $0x1f8] sm:$0xff]  ;;  %v2966_v20 = vld [vmem:[#allocation2 + $0x1f0] sm:$0xff] }
 0x241   :  { %v1188_v63 = vmul.f32 0.00390625, %v1124_v32  ;;  %v833_v35 = vpop.xlane.xlu1 %832  ;;  %v1528_v52 = vpack.c.bf16 %v1475_v5, %v1474_v38  ;;  %v1432_v28 = vpack.c.bf16 %v1379_v21, %v1378_v57  ;;  %v971_v57 = vmul.f32 %v4131_v17, %v4131_v17  ;;  %v2967_v21 = vld [vmem:[#allocation5 + $0x1f8] sm:$0xff] }
 0x242   :  { %v831_v49 = vpop.xlane.xlu0 %830  ;;  %v1253_v45 = vadd.f32 1e-05, %v1189_v0  ;;  %v970_v38 = vmul.f32 %v4133_v23, %v4133_v23  ;;  %v4143_v13 = vsub.f32 %v2965_v4, %v589_v7  ;;  %v4145_v44 = vsub.f32 %v2966_v20, %v588_v46  ;;  %v4517_v4 = vld [vmem:[#allocation19_spill] sm:$0xff] }
 0x243   :  { %v1252_v1 = vadd.f32 1e-05, %v1188_v63  ;;  %2543 = vmatprep.mubr.bf16.mxu1 %v1528_v52  ;;  %2623 = vmatprep.mubr.bf16.mxu0 %v1432_v28  ;;  %v4147_v51 = vsub.f32 %v2967_v21, %v589_v7  ;;  %v4519_v21 = vld [vmem:[#allocation20_spill] sm:$0xff] }
 0x244   :  { %2801 = vrsqrt.f32 %v1253_v45  ;;  %904 = vadd.xlane.f32.xlu1 %v779_v12  ;;  %902 = vadd.xlane.f32.xlu0 %v778_v10  ;;  %v781_v12 = vmul.f32 %v4143_v13, %v4143_v13 }
 0x245   :  { %2803 = vrsqrt.f32 %v1252_v1  ;;  %v1025_v47 = vpop.xlane.xlu1 %1024  ;;  %v973_v1 = vmul.f32 %v4147_v51, %v4147_v51 }
 0x246   :  { %v1023_v9 = vpop.xlane.xlu0 %1022  ;;  %v1127_v32 = vadd.f32 %v1025_v47, %v833_v35  ;;  %v780_v35 = vmul.f32 %v4145_v44, %v4145_v44  ;;  %v972_v47 = vmul.f32 %v4149_v43, %v4149_v43 }
 0x247   :  { %v1126_v24 = vadd.f32 %v1023_v9, %v831_v49 }
 0x248   :  { %v1191_v5 = vmul.f32 0.00390625, %v1127_v32  ;;  %1096 = vadd.xlane.f32.xlu1 %v971_v57  ;;  %1094 = vadd.xlane.f32.xlu0 %v970_v38  ;;  %v4516_v57 = vld [vmem:[#allocation18_spill] sm:$0xff] }
 0x249   :  { %v1190_v30 = vmul.f32 0.00390625, %v1126_v24  ;;  %v837_v0 = vpop.xlane.xlu1 %836 }
 0x24a   :  { %v835_v63 = vpop.xlane.xlu0 %834  ;;  %v1255_v52 = vadd.f32 1e-05, %v1191_v5  ;;  %v4518_v5 = vld [vmem:[#allocation42_spill] sm:$0xff] }
 0x24b   :  { %v1254_v28 = vadd.f32 1e-05, %v1190_v30 }
 0x24c   :  { %2805 = vrsqrt.f32 %v1255_v52  ;;  %908 = vadd.xlane.f32.xlu1 %v781_v12  ;;  %906 = vadd.xlane.f32.xlu0 %v780_v35 }
 0x24d   :  { %2807 = vrsqrt.f32 %v1254_v28  ;;  %v1029_v49 = vpop.xlane.xlu1 %1028 }
 0x24e   :  { %v1027_v10 = vpop.xlane.xlu0 %1026  ;;  %v2802_v7 = vpop.eup %2801  ;;  %v1129_v45 = vadd.f32 %v1029_v49, %v837_v0 }
 0x24f   :  { %v1128_v46 = vadd.f32 %v1027_v10, %v835_v63  ;;  %v2804_v9 = vpop.eup %2803  ;;  %v1477_v38 = vmul.f32 %v2802_v7, %v4516_v57  ;;  %v1381_v20 = vmul.f32 %v2802_v7, %v4517_v4 }
 0x250   :  { %v1193_v32 = vmul.f32 0.00390625, %v1129_v45  ;;  %1100 = vadd.xlane.f32.xlu1 %v973_v1  ;;  %1098 = vadd.xlane.f32.xlu0 %v972_v47  ;;  %v1476_v30 = vmul.f32 %v2804_v9, %v4518_v5  ;;  %v1380_v54 = vmul.f32 %v2804_v9, %v4519_v21 }
 0x251   :  { %v1192_v24 = vmul.f32 0.00390625, %v1128_v46  ;;  %v841_v0 = vpop.xlane.xlu1 %840 }
 0x252   :  { %v839_v63 = vpop.xlane.xlu0 %838  ;;  %v1257_v52 = vadd.f32 1e-05, %v1193_v32  ;;  %v1529_v12 = vpack.c.bf16 %v1477_v38, %v1476_v30  ;;  %v1433_v35 = vpack.c.bf16 %v1381_v20, %v1380_v54  ;;  %v4520_v32 = vld [vmem:[#allocation23_spill] sm:$0xff] }
 0x253   :  { %v1256_v28 = vadd.f32 1e-05, %v1192_v24  ;;  %v4521_v38 = vld [vmem:[#allocation43_spill] sm:$0xff] }
 0x254   :  { %2809 = vrsqrt.f32 %v1257_v52  ;;  %2544 = vmatmul.mubr.bf16.gmra.mrb[20].mxu1 %v1529_v12  ;;  %2624 = vmatmul.mubr.bf16.gmra.mrb[20].mxu0 %v1433_v35 }
 0x255   :  { %2811 = vrsqrt.f32 %v1256_v28  ;;  %v1033_v49 = vpop.xlane.xlu1 %1032 }
 0x256   :  { %v1031_v10 = vpop.xlane.xlu0 %1030  ;;  %v2806_v7 = vpop.eup %2805  ;;  %v1131_v45 = vadd.f32 %v1033_v49, %v841_v0  ;;  %v4522_v49 = vld [vmem:[#allocation22_spill] sm:$0xff] }
 0x257   :  { %v1130_v46 = vadd.f32 %v1031_v10, %v839_v63  ;;  %v2808_v1 = vpop.eup %2807  ;;  %v1479_v47 = vmul.f32 %v2806_v7, %v3703_v58  ;;  %v1383_v9 = vmul.f32 %v2806_v7, %v3695_v16  ;;  %v4523_v7 = vld [vmem:[#allocation21_spill] sm:$0xff] }
 0x258   :  { %v1195_v57 = vmul.f32 0.00390625, %v1131_v45  ;;  %v1478_v24 = vmul.f32 %v2808_v1, %v4520_v32  ;;  %v1382_v20 = vmul.f32 %v2808_v1, %v4521_v38 }
 0x259   :  { %v1194_v4 = vmul.f32 0.00390625, %v1130_v46  ;;  %v845_v5 = vpop.xlane.xlu1 %844 }
 0x25a   :  { %v843_v30 = vpop.xlane.xlu0 %842  ;;  %v1259_v21 = vadd.f32 1e-05, %v1195_v57  ;;  %v1530_v52 = vpack.c.bf16 %v1479_v47, %v1478_v24  ;;  %v1434_v28 = vpack.c.bf16 %v1383_v9, %v1382_v20  ;;  %v4524_v57 = vld [vmem:[#allocation44_spill] sm:$0xff] }
 0x25b   :  { %v1258_v54 = vadd.f32 1e-05, %v1194_v4  ;;  %v4525_v47 = vld [vmem:[#allocation24_spill] sm:$0xff] }
 0x25c   :  { %2813 = vrsqrt.f32 %v1259_v21  ;;  %2547 = vmatprep.mubr.bf16.mxu1 %v1530_v52  ;;  %2627 = vmatprep.mubr.bf16.mxu0 %v1434_v28 }
 0x25d   :  { %2815 = vrsqrt.f32 %v1258_v54  ;;  %v1037_v0 = vpop.xlane.xlu1 %1036 }
 0x25e   :  { %v1035_v58 = vpop.xlane.xlu0 %1034  ;;  %v2810_v63 = vpop.eup %2809  ;;  %v1133_v16 = vadd.f32 %v1037_v0, %v845_v5 }
 0x25f   :  { %v1132_v12 = vadd.f32 %v1035_v58, %v843_v30  ;;  %v2812_v35 = vpop.eup %2811  ;;  %v1481_v10 = vmul.f32 %v2810_v63, %v4522_v49  ;;  %v1385_v45 = vmul.f32 %v2810_v63, %v4523_v7 }
 0x260   :  { %v1197_v46 = vmul.f32 0.00390625, %v1133_v16  ;;  %v1480_v4 = vmul.f32 %v2812_v35, %v4524_v57  ;;  %v1384_v9 = vmul.f32 %v2812_v35, %v4525_v47 }
 0x261   :  { %v1196_v1 = vmul.f32 0.00390625, %v1132_v12  ;;  %v849_v32 = vpop.xlane.xlu1 %848 }
 0x262   :  { %v847_v24 = vpop.xlane.xlu0 %846  ;;  %v1261_v38 = vadd.f32 1e-05, %v1197_v46  ;;  %v1531_v21 = vpack.c.bf16 %v1481_v10, %v1480_v4  ;;  %v1435_v54 = vpack.c.bf16 %v1385_v45, %v1384_v9 }
 0x263   :  { %v1260_v20 = vadd.f32 1e-05, %v1196_v1 }
 0x264   :  { %2817 = vrsqrt.f32 %v1261_v38  ;;  %2548 = vmatmul.mubr.bf16.gmra.mrb[24].mxu1 %v1531_v21  ;;  %2628 = vmatmul.mubr.bf16.gmra.mrb[24].mxu0 %v1435_v54 }
 0x265   :  { %2819 = vrsqrt.f32 %v1260_v20  ;;  %v1041_v5 = vpop.xlane.xlu1 %1040 }
 0x266   :  { %v1039_v30 = vpop.xlane.xlu0 %1038  ;;  %v2814_v52 = vpop.eup %2813  ;;  %v1135_v28 = vadd.f32 %v1041_v5, %v849_v32 }
 0x267   :  { %v1134_v0 = vadd.f32 %v1039_v30, %v847_v24  ;;  %v2816_v58 = vpop.eup %2815  ;;  %v1483_v63 = vmul.f32 %v2814_v52, %v3747_v61  ;;  %v1387_v16 = vmul.f32 %v2814_v52, %v3739_v34 }
 0x268   :  { %v1199_v12 = vmul.f32 0.00390625, %v1135_v28  ;;  %v1482_v49 = vmul.f32 %v2816_v58, %v3749_v55  ;;  %v1386_v10 = vmul.f32 %v2816_v58, %v3741_v56 }
 0x269   :  { %v1198_v35 = vmul.f32 0.00390625, %v1134_v0  ;;  %v853_v7 = vpop.xlane.xlu1 %852 }
 0x26a   :  { %v851_v45 = vpop.xlane.xlu0 %850  ;;  %v1263_v46 = vadd.f32 1e-05, %v1199_v12  ;;  %v1532_v57 = vpack.c.bf16 %v1483_v63, %v1482_v49  ;;  %v1436_v4 = vpack.c.bf16 %v1387_v16, %v1386_v10 }
 0x26b   :  { %v1262_v1 = vadd.f32 1e-05, %v1198_v35 }
 0x26c   :  { %2821 = vrsqrt.f32 %v1263_v46  ;;  %2551 = vmatprep.mubr.bf16.mxu1 %v1532_v57  ;;  %2631 = vmatprep.mubr.bf16.mxu0 %v1436_v4 }
 0x26d   :  { %2823 = vrsqrt.f32 %v1262_v1  ;;  %v1045_v47 = vpop.xlane.xlu1 %1044 }
 0x26e   :  { %v1043_v61 = vpop.xlane.xlu0 %1042  ;;  %v2818_v9 = vpop.eup %2817  ;;  %v1137_v34 = vadd.f32 %v1045_v47, %v853_v7 }
 0x26f   :  { %v1136_v32 = vadd.f32 %v1043_v61, %v851_v45  ;;  %v2820_v24 = vpop.eup %2819  ;;  %v1485_v55 = vmul.f32 %v2818_v9, %v3769_v6  ;;  %v1389_v56 = vmul.f32 %v2818_v9, %v3761_v8 }
 0x270   :  { %v1201_v38 = vmul.f32 0.00390625, %v1137_v34  ;;  %v1484_v21 = vmul.f32 %v2820_v24, %v3771_v29  ;;  %v1388_v54 = vmul.f32 %v2820_v24, %v3763_v26 }
 0x271   :  { %v1200_v20 = vmul.f32 0.00390625, %v1136_v32  ;;  %v857_v5 = vpop.xlane.xlu1 %856 }
 0x272   :  { %v855_v30 = vpop.xlane.xlu0 %854  ;;  %v1265_v52 = vadd.f32 1e-05, %v1201_v38  ;;  %v1533_v0 = vpack.c.bf16 %v1485_v55, %v1484_v21  ;;  %v1437_v58 = vpack.c.bf16 %v1389_v56, %v1388_v54  ;;  %v4526_v55 = vld [vmem:[#allocation28_spill] sm:$0xff]  ;;  %v4527_v56 = vld [vmem:[#allocation27_spill] sm:$0xff]  ;;  %v4528_v21 = vld [vmem:[#allocation26_spill] sm:$0xff] }
 0x273   :  { %v1264_v28 = vadd.f32 1e-05, %v1200_v20 }
 0x274   :  { %2825 = vrsqrt.f32 %v1265_v52  ;;  %2552 = vmatmul.mubr.bf16.gmra.mrb[28].mxu1 %v1533_v0  ;;  %2632 = vmatmul.mubr.bf16.gmra.mrb[28].mxu0 %v1437_v58 }
 0x275   :  { %2827 = vrsqrt.f32 %v1264_v28  ;;  %v1049_v63 = vpop.xlane.xlu1 %1048 }
 0x276   :  { %v1047_v6 = vpop.xlane.xlu0 %1046  ;;  %v2822_v16 = vpop.eup %2821  ;;  %v1139_v8 = vadd.f32 %v1049_v63, %v857_v5  ;;  %v4529_v5 = vld [vmem:[#allocation25_spill] sm:$0xff] }
 0x277   :  { %v1138_v12 = vadd.f32 %v1047_v6, %v855_v30  ;;  %v2824_v35 = vpop.eup %2823  ;;  %v1487_v29 = vmul.f32 %v2822_v16, %v3791_v2  ;;  %v1391_v26 = vmul.f32 %v2822_v16, %v3783_v53 }
 0x278   :  { %v1203_v49 = vmul.f32 0.00390625, %v1139_v8  ;;  %v1486_v7 = vmul.f32 %v2824_v35, %v3793_v48  ;;  %v1390_v45 = vmul.f32 %v2824_v35, %v3785_v50 }
 0x279   :  { %v1202_v10 = vmul.f32 0.00390625, %v1138_v12  ;;  %v861_v46 = vpop.xlane.xlu1 %860 }
 0x27a   :  { %v859_v1 = vpop.xlane.xlu0 %858  ;;  %v1267_v57 = vadd.f32 1e-05, %v1203_v49  ;;  %v1534_v47 = vpack.c.bf16 %v1487_v29, %v1486_v7  ;;  %v1438_v61 = vpack.c.bf16 %v1391_v26, %v1390_v45 }
 0x27b   :  { %v1266_v4 = vadd.f32 1e-05, %v1202_v10  ;;  %v4190_v10 = vld [vmem:[%s4336_s4] ss:$0 sm:$0xff] }
 0x27c   :  { %2829 = vrsqrt.f32 %v1267_v57  ;;  %2555 = vmatprep.mubr.bf16.mxu1 %v1534_v47  ;;  %2635 = vmatprep.mubr.bf16.mxu0 %v1438_v61 }
 0x27d   :  { %2831 = vrsqrt.f32 %v1266_v4  ;;  %v1053_v9 = vpop.xlane.xlu1 %1052 }
 0x27e   :  { %v1051_v2 = vpop.xlane.xlu0 %1050  ;;  %v2826_v34 = vpop.eup %2825  ;;  %v1141_v53 = vadd.f32 %v1053_v9, %v861_v46 }
 0x27f   :  { %v1140_v32 = vadd.f32 %v1051_v2, %v859_v1  ;;  %v2828_v24 = vpop.eup %2827  ;;  %v1489_v48 = vmul.f32 %v2826_v34, %v4526_v55  ;;  %v1393_v50 = vmul.f32 %v2826_v34, %v4527_v56 }
 0x280   :  { %v1205_v38 = vmul.f32 0.00390625, %v1141_v53  ;;  %v1488_v54 = vmul.f32 %v2828_v24, %v4528_v21  ;;  %v1392_v30 = vmul.f32 %v2828_v24, %v4529_v5 }
 0x281   :  { %v1204_v20 = vmul.f32 0.00390625, %v1140_v32  ;;  %v865_v52 = vpop.xlane.xlu1 %864 }
 0x282   :  { %v863_v28 = vpop.xlane.xlu0 %862  ;;  %v1269_v0 = vadd.f32 1e-05, %v1205_v38  ;;  %v1535_v63 = vpack.c.bf16 %v1489_v48, %v1488_v54  ;;  %v1439_v6 = vpack.c.bf16 %v1393_v50, %v1392_v30 }
 0x283   :  { %v1268_v58 = vadd.f32 1e-05, %v1204_v20 }
 0x284   :  { %2833 = vrsqrt.f32 %v1269_v0  ;;  %2556 = vmatmul.mubr.bf16.gmra.mrb[32].mxu1 %v1535_v63  ;;  %2636 = vmatmul.mubr.bf16.gmra.mrb[32].mxu0 %v1439_v6  ;;  %v4530_v6 = vld [vmem:[#allocation47_spill] sm:$0xff] }
 0x285   :  { %2835 = vrsqrt.f32 %v1268_v58  ;;  %v1057_v16 = vpop.xlane.xlu1 %1056 }
 0x286   :  { %v1055_v8 = vpop.xlane.xlu0 %1054  ;;  %v2830_v12 = vpop.eup %2829  ;;  %v1143_v35 = vadd.f32 %v1057_v16, %v865_v52 }
 0x287   :  { %v1142_v29 = vadd.f32 %v1055_v8, %v863_v28  ;;  %v2525_v26 = vpop.f32.mrb[0].mxu1  ;;  %v2605_v49 = vpop.f32.mrb[0].mxu0  ;;  %v1491_v57 = vmul.f32 %v2830_v12, %v3839_v62  ;;  %v1395_v4 = vmul.f32 %v2830_v12, %v3831_v27  ;;  %v4531_v8 = vld [vmem:[#allocation45_spill] sm:$0xff] }
 0x288   :  { %v2832_v7 = vpop.eup %2831  ;;  %v2010_v45 = vadd.f32 %v2605_v49, %v2525_v26  ;;  %v1664_v46 = vpop.f32.mrb[1].mxu1  ;;  %v1207_v47 = vmul.f32 0.00390625, %v1143_v35  ;;  %v4533_v49 = vld [vmem:[#allocation46_spill] sm:$0xff] }
 0x289   :  { %v2001_v1 = vpop.f32.mrb[1].mxu0  ;;  %v1206_v61 = vmul.f32 0.00390625, %v1142_v29  ;;  %v2526_v2 = vpop.f32.mrb[2].mxu1  ;;  %v1490_v53 = vmul.f32 %v2832_v7, %v3841_v39  ;;  %v1394_v56 = vmul.f32 %v2832_v7, %v3833_v59  ;;  %v4532_v29 = vld [vmem:[#allocation48_spill] sm:$0xff] }
 0x28a   :  { %v2002_v9 = vadd.f32 %v2001_v1, %v1664_v46  ;;  %v2606_v34 = vpop.f32.mrb[2].mxu0  ;;  %v2265_v32 = vadd.f32 %v4190_v10, %v2010_v45  ;;  %v869_v55 = vpop.xlane.xlu1 %868  ;;  %v1271_v50 = vadd.f32 1e-05, %v1207_v47 }
 0x28b   :  { %v2013_v24 = vadd.f32 %v2606_v34, %v2526_v2  ;;  %v1667_v48 = vpop.f32.mrb[3].mxu1  ;;  %v1270_v38 = vadd.f32 1e-05, %v1206_v61  ;;  %v2004_v20 = vpop.f32.mrb[3].mxu0  ;;  %v1536_v21 = vpack.c.bf16 %v1491_v57, %v1490_v53  ;;  %v1440_v30 = vpack.c.bf16 %v1395_v4, %v1394_v56 }
 0x28c   :  { %v2263_v62 = vadd.f32 %v4190_v10, %v2002_v9  ;;  %v867_v27 = vpop.xlane.xlu0 %866  ;;  %2329 = vst [vmem:[#allocation10 + $0x10] sm:$0xff] %v2265_v32  ;;  %v2005_v5 = vadd.f32 %v2004_v20, %v1667_v48  ;;  %2837 = vrsqrt.f32 %v1271_v50 }
 0x28d   :  { %v2266_v54 = vadd.f32 %v4190_v10, %v2013_v24  ;;  %2559 = vmatprep.mubr.bf16.mxu1 %v1536_v21  ;;  %2839 = vrsqrt.f32 %v1270_v38  ;;  %2639 = vmatprep.mubr.bf16.mxu0 %v1440_v30  ;;  %v4534_v38 = vld [vmem:[#allocation49_spill] sm:$0xff] }
 0x28e   :  { %2327 = vst [vmem:[#allocation10] sm:$0xff] %v2263_v62  ;;  %v2264_v39 = vadd.f32 %v4190_v10, %v2005_v5  ;;  %v1061_v59 = vpop.xlane.xlu1 %1060  ;;  %v2834_v52 = vpop.eup %2833 }
 0x28f   :  { %2330 = vst [vmem:[#allocation10 + $0x18] sm:$0xff] %v2266_v54  ;;  %v1145_v28 = vadd.f32 %v1061_v59, %v869_v55  ;;  %v2836_v58 = vpop.eup %2835  ;;  %v1493_v16 = vmul.f32 %v2834_v52, %v4530_v6  ;;  %v1397_v12 = vmul.f32 %v2834_v52, %v4531_v8  ;;  %v4537_v8 = vld [vmem:[#allocation53_spill] sm:$0xff] }
 0x290   :  { %v1059_v0 = vpop.xlane.xlu0 %1058  ;;  %2328 = vst [vmem:[#allocation10 + $0x8] sm:$0xff] %v2264_v39  ;;  %v1492_v26 = vmul.f32 %v2836_v58, %v4532_v29  ;;  %v1396_v7 = vmul.f32 %v2836_v58, %v4533_v49 }
 0x291   :  { %v1144_v63 = vadd.f32 %v1059_v0, %v867_v27  ;;  %v1209_v35 = vmul.f32 0.00390625, %v1145_v28 }
 0x292   :  { %v873_v46 = vpop.xlane.xlu1 %872  ;;  %v1537_v4 = vpack.c.bf16 %v1493_v16, %v1492_v26  ;;  %v1441_v47 = vpack.c.bf16 %v1397_v12, %v1396_v7 }
 0x293   :  { %v1208_v45 = vmul.f32 0.00390625, %v1144_v63  ;;  %v1273_v1 = vadd.f32 1e-05, %v1209_v35  ;;  %v4536_v63 = vld [vmem:[#allocation50_spill] sm:$0xff]  ;;  %v4538_v35 = vld [vmem:[#allocation51_spill] sm:$0xff] }
 0x294   :  { %v871_v57 = vpop.xlane.xlu0 %870  ;;  %2560 = vmatmul.mubr.bf16.gmra.mrb[36].mxu1 %v1537_v4  ;;  %2640 = vmatmul.mubr.bf16.gmra.mrb[36].mxu0 %v1441_v47 }
 0x295   :  { %v1272_v61 = vadd.f32 1e-05, %v1208_v45  ;;  %2841 = vrsqrt.f32 %v1273_v1 }
 0x296   :  { %v1065_v9 = vpop.xlane.xlu1 %1064  ;;  %v2838_v2 = vpop.eup %2837 }
 0x297   :  { %2843 = vrsqrt.f32 %v1272_v61  ;;  %v1147_v34 = vadd.f32 %v1065_v9, %v873_v46  ;;  %v2840_v32 = vpop.eup %2839  ;;  %v1495_v55 = vmul.f32 %v2838_v2, %v3887_v41  ;;  %v1399_v48 = vmul.f32 %v2838_v2, %v3879_v31 }
 0x298   :  { %v1063_v53 = vpop.xlane.xlu0 %1062  ;;  %v1494_v50 = vmul.f32 %v2840_v32, %v3889_v40  ;;  %v1398_v62 = vmul.f32 %v2840_v32, %v4534_v38  ;;  %v4535_v40 = vld [vmem:[#allocation52_spill] sm:$0xff] }
 0x299   :  { %v1146_v24 = vadd.f32 %v1063_v53, %v871_v57  ;;  %v1211_v56 = vmul.f32 0.00390625, %v1147_v34 }
 0x29a   :  { %v877_v27 = vpop.xlane.xlu1 %876  ;;  %v1538_v5 = vpack.c.bf16 %v1495_v55, %v1494_v50  ;;  %v1442_v30 = vpack.c.bf16 %v1399_v48, %v1398_v62  ;;  %v4539_v55 = vld [vmem:[#allocation56_spill] sm:$0xff] }
 0x29b   :  { %v1210_v20 = vmul.f32 0.00390625, %v1146_v24  ;;  %v1275_v21 = vadd.f32 1e-05, %v1211_v56  ;;  %v4540_v56 = vld [vmem:[#allocation54_spill] sm:$0xff] }
 0x29c   :  { %v875_v54 = vpop.xlane.xlu0 %874  ;;  %2563 = vmatprep.mubr.bf16.mxu1 %v1538_v5  ;;  %2643 = vmatprep.mubr.bf16.mxu0 %v1442_v30  ;;  %v4542_v5 = vld [vmem:[#allocation55_spill] sm:$0xff] }
 0x29d   :  { %v1274_v39 = vadd.f32 1e-05, %v1210_v20  ;;  %2845 = vrsqrt.f32 %v1275_v21  ;;  %v4541_v21 = vld [vmem:[#allocation57_spill] sm:$0xff] }
 0x29e   :  { %v1069_v59 = vpop.xlane.xlu1 %1068 }
 0x29f   :  { %2847 = vrsqrt.f32 %v1274_v39  ;;  %v2842_v41 = vpop.eup %2841  ;;  %v1149_v52 = vadd.f32 %v1069_v59, %v877_v27 }
 0x2a0   :  { %v1067_v31 = vpop.xlane.xlu0 %1066  ;;  %v1497_v58 = vmul.f32 %v2842_v41, %v4535_v40  ;;  %v1401_v6 = vmul.f32 %v2842_v41, %v4536_v63 }
 0x2a1   :  { %v2844_v28 = vpop.eup %2843  ;;  %v1148_v0 = vadd.f32 %v1067_v31, %v875_v54  ;;  %v1213_v16 = vmul.f32 0.00390625, %v1149_v52 }
 0x2a2   :  { %v1496_v12 = vmul.f32 %v2844_v28, %v4537_v8  ;;  %v1400_v29 = vmul.f32 %v2844_v28, %v4538_v35  ;;  %v881_v49 = vpop.xlane.xlu1 %880 }
 0x2a3   :  { %v1212_v26 = vmul.f32 0.00390625, %v1148_v0  ;;  %v1277_v7 = vadd.f32 1e-05, %v1213_v16 }
 0x2a4   :  { %v879_v45 = vpop.xlane.xlu0 %878  ;;  %v1539_v46 = vpack.c.bf16 %v1497_v58, %v1496_v12  ;;  %v1443_v1 = vpack.c.bf16 %v1401_v6, %v1400_v29 }
 0x2a5   :  { %v1276_v57 = vadd.f32 1e-05, %v1212_v26  ;;  %2849 = vrsqrt.f32 %v1277_v7 }
 0x2a6   :  { %2564 = vmatmul.mubr.bf16.gmra.mrb[40].mxu1 %v1539_v46  ;;  %2644 = vmatmul.mubr.bf16.gmra.mrb[40].mxu0 %v1443_v1  ;;  %v1073_v4 = vpop.xlane.xlu1 %1072  ;;  %v2529_v2 = vpop.f32.mrb[4].mxu1 }
 0x2a7   :  { %2851 = vrsqrt.f32 %v1276_v57  ;;  %v2846_v47 = vpop.eup %2845  ;;  %v1151_v61 = vadd.f32 %v1073_v4, %v881_v49  ;;  %v2609_v32 = vpop.f32.mrb[4].mxu0  ;;  %v4543_v57 = vld [vmem:[#allocation60_spill] sm:$0xff] }
 0x2a8   :  { %v1071_v9 = vpop.xlane.xlu0 %1070  ;;  %v1680_v24 = vpop.f32.mrb[5].mxu1  ;;  %v1499_v48 = vmul.f32 %v2846_v47, %v4539_v55  ;;  %v1403_v50 = vmul.f32 %v2846_v47, %v4540_v56  ;;  %v2026_v62 = vadd.f32 %v2609_v32, %v2529_v2  ;;  %v4544_v47 = vld [vmem:[#allocation58_spill] sm:$0xff]  ;;  %v4546_v32 = vld [vmem:[#allocation59_spill] sm:$0xff] }
 0x2a9   :  { %v2848_v34 = vpop.eup %2847  ;;  %v1150_v53 = vadd.f32 %v1071_v9, %v879_v45  ;;  %v1215_v38 = vmul.f32 0.00390625, %v1151_v61  ;;  %v2017_v20 = vpop.f32.mrb[5].mxu0 }
 0x2aa   :  { %v2530_v27 = vpop.f32.mrb[6].mxu1  ;;  %v1498_v54 = vmul.f32 %v2848_v34, %v4541_v21  ;;  %v1402_v30 = vmul.f32 %v2848_v34, %v4542_v5  ;;  %v2018_v59 = vadd.f32 %v2017_v20, %v1680_v24  ;;  %v2610_v41 = vpop.f32.mrb[6].mxu0  ;;  %v2269_v28 = vadd.f32 %v4190_v10, %v2026_v62  ;;  %v4545_v34 = vld [vmem:[#allocation61_spill] sm:$0xff] }
 0x2ab   :  { %v1214_v39 = vmul.f32 0.00390625, %v1150_v53  ;;  %v885_v52 = vpop.xlane.xlu1 %884  ;;  %v1279_v31 = vadd.f32 1e-05, %v1215_v38  ;;  %v2029_v0 = vadd.f32 %v2610_v41, %v2530_v27  ;;  %v1683_v40 = vpop.f32.mrb[7].mxu1 }
 0x2ac   :  { %v2020_v58 = vpop.f32.mrb[7].mxu0  ;;  %v1540_v63 = vpack.c.bf16 %v1499_v48, %v1498_v54  ;;  %v2267_v16 = vadd.f32 %v4190_v10, %v2018_v59  ;;  %v883_v12 = vpop.xlane.xlu0 %882  ;;  %v1444_v35 = vpack.c.bf16 %v1403_v50, %v1402_v30  ;;  %2333 = vst [vmem:[#allocation10 + $0x30] sm:$0xff] %v2269_v28 }
 0x2ad   :  { %v1278_v6 = vadd.f32 1e-05, %v1214_v39  ;;  %v2021_v8 = vadd.f32 %v2020_v58, %v1683_v40  ;;  %2853 = vrsqrt.f32 %v1279_v31  ;;  %v2270_v29 = vadd.f32 %v4190_v10, %v2029_v0 }
 0x2ae   :  { %2567 = vmatprep.mubr.bf16.mxu1 %v1540_v63  ;;  %2331 = vst [vmem:[#allocation10 + $0x20] sm:$0xff] %v2267_v16  ;;  %2647 = vmatprep.mubr.bf16.mxu0 %v1444_v35 }
 0x2af   :  { %2855 = vrsqrt.f32 %v1278_v6  ;;  %v2268_v26 = vadd.f32 %v4190_v10, %v2021_v8  ;;  %v1077_v49 = vpop.xlane.xlu1 %1076  ;;  %v2850_v7 = vpop.eup %2849  ;;  %2334 = vst [vmem:[#allocation10 + $0x38] sm:$0xff] %v2270_v29  ;;  %v4547_v29 = vld [vmem:[#allocation32_spill] sm:$0xff] }
 0x2b0   :  { %v1153_v45 = vadd.f32 %v1077_v49, %v885_v52  ;;  %v1075_v1 = vpop.xlane.xlu0 %1074  ;;  %v1501_v4 = vmul.f32 %v2850_v7, %v4543_v57  ;;  %v1405_v61 = vmul.f32 %v2850_v7, %v4544_v47 }
 0x2b1   :  { %v2852_v46 = vpop.eup %2851  ;;  %2332 = vst [vmem:[#allocation10 + $0x28] sm:$0xff] %v2268_v26  ;;  %v1152_v2 = vadd.f32 %v1075_v1, %v883_v12  ;;  %v4549_v1 = vld [vmem:[#allocation30_spill] sm:$0xff] }
 0x2b2   :  { %v1217_v9 = vmul.f32 0.00390625, %v1153_v45  ;;  %v1500_v53 = vmul.f32 %v2852_v46, %v4545_v34  ;;  %v1404_v24 = vmul.f32 %v2852_v46, %v4546_v32 }
 0x2b3   :  { %v889_v55 = vpop.xlane.xlu1 %888  ;;  %v1216_v56 = vmul.f32 0.00390625, %v1152_v2 }
 0x2b4   :  { %v1281_v48 = vadd.f32 1e-05, %v1217_v9  ;;  %v1541_v50 = vpack.c.bf16 %v1501_v4, %v1500_v53  ;;  %v1445_v38 = vpack.c.bf16 %v1405_v61, %v1404_v24  ;;  %v887_v62 = vpop.xlane.xlu0 %886  ;;  %v4550_v4 = vld [vmem:[#allocation29_spill] sm:$0xff] }
 0x2b5   :  { %v1280_v20 = vadd.f32 1e-05, %v1216_v56 }
 0x2b6   :  { %2857 = vrsqrt.f32 %v1281_v48  ;;  %2568 = vmatmul.mubr.bf16.gmra.mrb[44].mxu1 %v1541_v50  ;;  %2648 = vmatmul.mubr.bf16.gmra.mrb[44].mxu0 %v1445_v38 }
 0x2b7   :  { %v1081_v27 = vpop.xlane.xlu1 %1080  ;;  %v2854_v21 = vpop.eup %2853  ;;  %2859 = vrsqrt.f32 %v1280_v20 }
 0x2b8   :  { %v1155_v54 = vadd.f32 %v1081_v27, %v889_v55  ;;  %v1079_v30 = vpop.xlane.xlu0 %1078  ;;  %v1503_v39 = vmul.f32 %v2854_v21, %v3987_v15  ;;  %v1407_v59 = vmul.f32 %v2854_v21, %v3975_v19 }
 0x2b9   :  { %v2856_v5 = vpop.eup %2855  ;;  %v1154_v52 = vadd.f32 %v1079_v30, %v887_v62 }
 0x2ba   :  { %v1219_v41 = vmul.f32 0.00390625, %v1155_v54  ;;  %v1502_v31 = vmul.f32 %v2856_v5, %v3989_v22  ;;  %v1406_v28 = vmul.f32 %v2856_v5, %v3977_v11  ;;  %v4548_v22 = vld [vmem:[#allocation31_spill] sm:$0xff] }
 0x2bb   :  { %v893_v0 = vpop.xlane.xlu1 %892  ;;  %v1218_v58 = vmul.f32 0.00390625, %v1154_v52 }
 0x2bc   :  { %v1283_v40 = vadd.f32 1e-05, %v1219_v41  ;;  %v1542_v63 = vpack.c.bf16 %v1503_v39, %v1502_v31  ;;  %v1446_v6 = vpack.c.bf16 %v1407_v59, %v1406_v28  ;;  %v891_v16 = vpop.xlane.xlu0 %890 }
 0x2bd   :  { %v1282_v8 = vadd.f32 1e-05, %v1218_v58 }
 0x2be   :  { %2861 = vrsqrt.f32 %v1283_v40  ;;  %2571 = vmatprep.mubr.bf16.mxu1 %v1542_v63  ;;  %2651 = vmatprep.mubr.bf16.mxu0 %v1446_v6 }
 0x2bf   :  { %v1085_v12 = vpop.xlane.xlu1 %1084  ;;  %2863 = vrsqrt.f32 %v1282_v8 }
 0x2c0   :  { %v2858_v15 = vpop.eup %2857  ;;  %v1157_v19 = vadd.f32 %v1085_v12, %v893_v0  ;;  %v1083_v35 = vpop.xlane.xlu0 %1082 }
 0x2c1   :  { %v1505_v26 = vmul.f32 %v2858_v15, %v4547_v29  ;;  %v1409_v49 = vmul.f32 %v2858_v15, %v4548_v22  ;;  %v2860_v11 = vpop.eup %2859  ;;  %v1156_v45 = vadd.f32 %v1083_v35, %v891_v16 }
 0x2c2   :  { %v1221_v7 = vmul.f32 0.00390625, %v1157_v19  ;;  %v1504_v57 = vmul.f32 %v2860_v11, %v4549_v1  ;;  %v1408_v47 = vmul.f32 %v2860_v11, %v4550_v4  ;;  %v4551_v11 = vld [vmem:[#allocation36_spill] sm:$0xff] }
 0x2c3   :  { %v897_v46 = vpop.xlane.xlu1 %896  ;;  %v1220_v9 = vmul.f32 0.00390625, %v1156_v45  ;;  %v4552_v45 = vld [vmem:[#allocation35_spill] sm:$0xff] }
 0x2c4   :  { %v1285_v61 = vadd.f32 1e-05, %v1221_v7  ;;  %v895_v2 = vpop.xlane.xlu0 %894  ;;  %v1543_v34 = vpack.c.bf16 %v1505_v26, %v1504_v57  ;;  %v1447_v53 = vpack.c.bf16 %v1409_v49, %v1408_v47 }
 0x2c5   :  { %v1284_v32 = vadd.f32 1e-05, %v1220_v9 }
 0x2c6   :  { %2865 = vrsqrt.f32 %v1285_v61  ;;  %2572 = vmatmul.mubr.bf16.gmra.mrb[48].mxu1 %v1543_v34  ;;  %2652 = vmatmul.mubr.bf16.gmra.mrb[48].mxu0 %v1447_v53  ;;  %v2533_v56 = vpop.f32.mrb[8].mxu1  ;;  %v2613_v50 = vpop.f32.mrb[8].mxu0  ;;  %v4553_v61 = vld [vmem:[#allocation34_spill] sm:$0xff] }
 0x2c7   :  { %v1089_v24 = vpop.xlane.xlu1 %1088  ;;  %2867 = vrsqrt.f32 %v1284_v32  ;;  %v2042_v62 = vadd.f32 %v2613_v50, %v2533_v56  ;;  %v1696_v20 = vpop.f32.mrb[9].mxu1 }
 0x2c8   :  { %v2862_v55 = vpop.eup %2861  ;;  %v1159_v48 = vadd.f32 %v1089_v24, %v897_v46  ;;  %v1087_v38 = vpop.xlane.xlu0 %1086 }
 0x2c9   :  { %v1507_v27 = vmul.f32 %v2862_v55, %v4039_v25  ;;  %v1411_v21 = vmul.f32 %v2862_v55, %v4027_v14  ;;  %v2864_v54 = vpop.eup %2863  ;;  %v1158_v30 = vadd.f32 %v1087_v38, %v895_v2  ;;  %v2033_v39 = vpop.f32.mrb[9].mxu0  ;;  %v2273_v41 = vadd.f32 %v4190_v10, %v2042_v62  ;;  %v4554_v2 = vld [vmem:[#allocation33_spill] sm:$0xff] }
 0x2ca   :  { %v1223_v5 = vmul.f32 0.00390625, %v1159_v48  ;;  %v2534_v59 = vpop.f32.mrb[10].mxu1  ;;  %v2034_v52 = vadd.f32 %v2033_v39, %v1696_v20  ;;  %v2614_v31 = vpop.f32.mrb[10].mxu0  ;;  %v1506_v0 = vmul.f32 %v2864_v54, %v4041_v33  ;;  %v1410_v40 = vmul.f32 %v2864_v54, %v4029_v37 }
 0x2cb   :  { %v901_v28 = vpop.xlane.xlu1 %900  ;;  %v1222_v63 = vmul.f32 0.00390625, %v1158_v30  ;;  %v2045_v6 = vadd.f32 %v2614_v31, %v2534_v59  ;;  %v1699_v25 = vpop.f32.mrb[11].mxu1  ;;  %2337 = vst [vmem:[#allocation10 + $0x50] sm:$0xff] %v2273_v41  ;;  %v4555_v41 = vld [vmem:[#allocation62_spill] sm:$0xff] }
 0x2cc   :  { %v1287_v58 = vadd.f32 1e-05, %v1223_v5  ;;  %v2036_v16 = vpop.f32.mrb[11].mxu0  ;;  %v2271_v14 = vadd.f32 %v4190_v10, %v2034_v52  ;;  %v899_v12 = vpop.xlane.xlu0 %898  ;;  %v1544_v15 = vpack.c.bf16 %v1507_v27, %v1506_v0  ;;  %v1448_v19 = vpack.c.bf16 %v1411_v21, %v1410_v40 }
 0x2cd   :  { %v2037_v8 = vadd.f32 %v2036_v16, %v1699_v25  ;;  %v1286_v35 = vadd.f32 1e-05, %v1222_v63  ;;  %v2274_v29 = vadd.f32 %v4190_v10, %v2045_v6  ;;  %v4556_v16 = vld [vmem:[#allocation40_spill] sm:$0xff] }
 0x2ce   :  { %2869 = vrsqrt.f32 %v1287_v58  ;;  %2335 = vst [vmem:[#allocation10 + $0x40] sm:$0xff] %v2271_v14  ;;  %2575 = vmatprep.mubr.bf16.mxu1 %v1544_v15  ;;  %2655 = vmatprep.mubr.bf16.mxu0 %v1448_v19 }
 0x2cf   :  { %v2272_v33 = vadd.f32 %v4190_v10, %v2037_v8  ;;  %v1093_v37 = vpop.xlane.xlu1 %1092  ;;  %2871 = vrsqrt.f32 %v1286_v35  ;;  %2338 = vst [vmem:[#allocation10 + $0x58] sm:$0xff] %v2274_v29  ;;  %v4557_v8 = vld [vmem:[#allocation39_spill] sm:$0xff]  ;;  %v4558_v35 = vld [vmem:[#allocation38_spill] sm:$0xff] }
 0x2d0   :  { %v2866_v26 = vpop.eup %2865  ;;  %v1161_v22 = vadd.f32 %v1093_v37, %v901_v28  ;;  %v1091_v49 = vpop.xlane.xlu0 %1090 }
 0x2d1   :  { %2336 = vst [vmem:[#allocation10 + $0x48] sm:$0xff] %v2272_v33  ;;  %v1509_v7 = vmul.f32 %v2866_v26, %v4551_v11  ;;  %v1413_v46 = vmul.f32 %v2866_v26, %v4552_v45  ;;  %v2868_v1 = vpop.eup %2867  ;;  %v1160_v4 = vadd.f32 %v1091_v49, %v899_v12  ;;  %v4559_v33 = vld [vmem:[#allocation37_spill] sm:$0xff] }
 0x2d2   :  { %v1225_v57 = vmul.f32 0.00390625, %v1161_v22  ;;  %v1508_v9 = vmul.f32 %v2868_v1, %v4553_v61  ;;  %v1412_v34 = vmul.f32 %v2868_v1, %v4554_v2 }
 0x2d3   :  { %v905_v47 = vpop.xlane.xlu1 %904  ;;  %v1224_v32 = vmul.f32 0.00390625, %v1160_v4 }
 0x2d4   :  { %v1289_v53 = vadd.f32 1e-05, %v1225_v57  ;;  %v903_v24 = vpop.xlane.xlu0 %902  ;;  %v1545_v55 = vpack.c.bf16 %v1509_v7, %v1508_v9  ;;  %v1449_v48 = vpack.c.bf16 %v1413_v46, %v1412_v34 }
 0x2d5   :  { %v1288_v56 = vadd.f32 1e-05, %v1224_v32 }
 0x2d6   :  { %2873 = vrsqrt.f32 %v1289_v53  ;;  %2576 = vmatmul.mubr.bf16.gmra.mrb[52].mxu1 %v1545_v55  ;;  %2656 = vmatmul.mubr.bf16.gmra.mrb[52].mxu0 %v1449_v48 }
 0x2d7   :  { %v1097_v50 = vpop.xlane.xlu1 %1096  ;;  %2875 = vrsqrt.f32 %v1288_v56 }
 0x2d8   :  { %v2870_v38 = vpop.eup %2869  ;;  %v1163_v62 = vadd.f32 %v1097_v50, %v905_v47  ;;  %v1095_v20 = vpop.xlane.xlu0 %1094 }
 0x2d9   :  { %v1511_v27 = vmul.f32 %v2870_v38, %v4091_v18  ;;  %v1415_v21 = vmul.f32 %v2870_v38, %v4079_v42  ;;  %v2872_v54 = vpop.eup %2871  ;;  %v1162_v30 = vadd.f32 %v1095_v20, %v903_v24 }
 0x2da   :  { %v1227_v5 = vmul.f32 0.00390625, %v1163_v62  ;;  %v1510_v59 = vmul.f32 %v2872_v54, %v4093_v60  ;;  %v1414_v52 = vmul.f32 %v2872_v54, %v4555_v41 }
 0x2db   :  { %v909_v39 = vpop.xlane.xlu1 %908  ;;  %v1226_v28 = vmul.f32 0.00390625, %v1162_v30 }
 0x2dc   :  { %v1291_v31 = vadd.f32 1e-05, %v1227_v5  ;;  %v907_v0 = vpop.xlane.xlu0 %906  ;;  %v1546_v40 = vpack.c.bf16 %v1511_v27, %v1510_v59  ;;  %v1450_v58 = vpack.c.bf16 %v1415_v21, %v1414_v52 }
 0x2dd   :  { %v1290_v63 = vadd.f32 1e-05, %v1226_v28 }
 0x2de   :  { %2877 = vrsqrt.f32 %v1291_v31  ;;  %2579 = vmatprep.mubr.bf16.mxu1 %v1546_v40  ;;  %2659 = vmatprep.mubr.bf16.mxu0 %v1450_v58 }
 0x2df   :  { %v1101_v18 = vpop.xlane.xlu1 %1100  ;;  %2879 = vrsqrt.f32 %v1290_v63 }
 0x2e0   :  { %v2874_v6 = vpop.eup %2873  ;;  %v1165_v42 = vadd.f32 %v1101_v18, %v909_v39  ;;  %v1099_v25 = vpop.xlane.xlu0 %1098 }
 0x2e1   :  { %v1513_v14 = vmul.f32 %v2874_v6, %v4556_v16  ;;  %v1417_v60 = vmul.f32 %v2874_v6, %v4557_v8  ;;  %v2876_v12 = vpop.eup %2875  ;;  %v1164_v19 = vadd.f32 %v1099_v25, %v907_v0 }
 0x2e2   :  { %v1229_v15 = vmul.f32 0.00390625, %v1165_v42  ;;  %v1512_v29 = vmul.f32 %v2876_v12, %v4558_v35  ;;  %v1416_v37 = vmul.f32 %v2876_v12, %v4559_v33 }
 0x2e3   :  { %v1228_v22 = vmul.f32 0.00390625, %v1164_v19 }
 0x2e4   :  { %v1293_v26 = vadd.f32 1e-05, %v1229_v15  ;;  %v1547_v49 = vpack.c.bf16 %v1513_v14, %v1512_v29  ;;  %v1451_v11 = vpack.c.bf16 %v1417_v60, %v1416_v37 }
 0x2e5   :  { %v1292_v7 = vadd.f32 1e-05, %v1228_v22 }
 0x2e6   :  { %2881 = vrsqrt.f32 %v1293_v26  ;;  %2580 = vmatmul.mubr.bf16.gmra.mrb[56].mxu1 %v1547_v49  ;;  %2660 = vmatmul.mubr.bf16.gmra.mrb[56].mxu0 %v1451_v11  ;;  %v2537_v46 = vpop.f32.mrb[12].mxu1  ;;  %v2617_v1 = vpop.f32.mrb[12].mxu0 }
 0x2e7   :  { %2883 = vrsqrt.f32 %v1292_v7  ;;  %v2058_v57 = vadd.f32 %v2617_v1, %v2537_v46  ;;  %v1712_v4 = vpop.f32.mrb[13].mxu1  ;;  %v2049_v47 = vpop.f32.mrb[13].mxu0 }
 0x2e8   :  { %v2878_v45 = vpop.eup %2877  ;;  %v2050_v34 = vadd.f32 %v2049_v47, %v1712_v4  ;;  %v2538_v53 = vpop.f32.mrb[14].mxu1 }
 0x2e9   :  { %v1515_v61 = vmul.f32 %v2878_v45, %v4131_v17  ;;  %v1419_v9 = vmul.f32 %v2878_v45, %v4123_v3  ;;  %v2880_v2 = vpop.eup %2879  ;;  %v2618_v32 = vpop.f32.mrb[14].mxu0  ;;  %v2277_v24 = vadd.f32 %v4190_v10, %v2058_v57 }
 0x2ea   :  { %v2061_v55 = vadd.f32 %v2618_v32, %v2538_v53  ;;  %v1715_v48 = vpop.f32.mrb[15].mxu1  ;;  %v2052_v56 = vpop.f32.mrb[15].mxu0  ;;  %v1514_v50 = vmul.f32 %v2880_v2, %v4133_v23  ;;  %v1418_v38 = vmul.f32 %v2880_v2, %v4125_v36  ;;  %v2275_v62 = vadd.f32 %v4190_v10, %v2050_v34 }
 0x2eb   :  { %v2053_v20 = vadd.f32 %v2052_v56, %v1715_v48  ;;  %2341 = vst [vmem:[#allocation10 + $0x70] sm:$0xff] %v2277_v24 }
 0x2ec   :  { %v2278_v17 = vadd.f32 %v4190_v10, %v2061_v55  ;;  %v1548_v3 = vpack.c.bf16 %v1515_v61, %v1514_v50  ;;  %v1452_v27 = vpack.c.bf16 %v1419_v9, %v1418_v38  ;;  %2339 = vst [vmem:[#allocation10 + $0x60] sm:$0xff] %v2275_v62 }
 0x2ed   :  { %v2276_v21 = vadd.f32 %v4190_v10, %v2053_v20 }
 0x2ee   :  { %2342 = vst [vmem:[#allocation10 + $0x78] sm:$0xff] %v2278_v17  ;;  %2583 = vmatprep.mubr.bf16.mxu1 %v1548_v3  ;;  %2663 = vmatprep.mubr.bf16.mxu0 %v1452_v27 }
 0x2ef   :  { %2340 = vst [vmem:[#allocation10 + $0x68] sm:$0xff] %v2276_v21 }
 0x2f0   :  { %v2882_v54 = vpop.eup %2881 }
 0x2f1   :  { %v1517_v23 = vmul.f32 %v2882_v54, %v4147_v51  ;;  %v1421_v36 = vmul.f32 %v2882_v54, %v4143_v13  ;;  %v2884_v5 = vpop.eup %2883 }
 0x2f2   :  { %v1516_v30 = vmul.f32 %v2884_v5, %v4149_v43  ;;  %v1420_v39 = vmul.f32 %v2884_v5, %v4145_v44 }
 0x2f4   :  { %v1549_v59 = vpack.c.bf16 %v1517_v23, %v1516_v30  ;;  %v1453_v41 = vpack.c.bf16 %v1421_v36, %v1420_v39 }
 0x2f6   :  { %2584 = vmatmul.mubr.bf16.gmra.mrb[60].mxu1 %v1549_v59  ;;  %2664 = vmatmul.mubr.bf16.gmra.mrb[60].mxu0 %v1453_v41 }
 0x306   :  { %v2541_v52 = vpop.f32.mrb[16].mxu1  ;;  %v2621_v31 = vpop.f32.mrb[16].mxu0 }
 0x307   :  { %v2074_v28 = vadd.f32 %v2621_v31, %v2541_v52  ;;  %v1728_v0 = vpop.f32.mrb[17].mxu1  ;;  %v2065_v40 = vpop.f32.mrb[17].mxu0 }
 0x308   :  { %v2066_v58 = vadd.f32 %v2065_v40, %v1728_v0  ;;  %v2542_v63 = vpop.f32.mrb[18].mxu1  ;;  %v2622_v18 = vpop.f32.mrb[18].mxu0 }
 0x309   :  { %v2281_v51 = vadd.f32 %v4190_v10, %v2074_v28  ;;  %v2077_v13 = vadd.f32 %v2622_v18, %v2542_v63  ;;  %v1731_v6 = vpop.f32.mrb[19].mxu1  ;;  %v2068_v42 = vpop.f32.mrb[19].mxu0 }
 0x30a   :  { %v2279_v43 = vadd.f32 %v4190_v10, %v2066_v58  ;;  %v2069_v44 = vadd.f32 %v2068_v42, %v1731_v6 }
 0x30b   :  { %2345 = vst [vmem:[#allocation10 + $0x90] sm:$0xff] %v2281_v51  ;;  %v2282_v25 = vadd.f32 %v4190_v10, %v2077_v13 }
 0x30c   :  { %2343 = vst [vmem:[#allocation10 + $0x80] sm:$0xff] %v2279_v43  ;;  %v2280_v16 = vadd.f32 %v4190_v10, %v2069_v44 }
 0x30d   :  { %2346 = vst [vmem:[#allocation10 + $0x98] sm:$0xff] %v2282_v25 }
 0x30e   :  { %2344 = vst [vmem:[#allocation10 + $0x88] sm:$0xff] %v2280_v16 }
 0x327   :  { %v2545_v14 = vpop.f32.mrb[20].mxu1  ;;  %v2625_v8 = vpop.f32.mrb[20].mxu0 }
 0x328   :  { %v2090_v60 = vadd.f32 %v2625_v8, %v2545_v14  ;;  %v1744_v12 = vpop.f32.mrb[21].mxu1  ;;  %v2081_v15 = vpop.f32.mrb[21].mxu0 }
 0x329   :  { %v2082_v19 = vadd.f32 %v2081_v15, %v1744_v12  ;;  %v2546_v35 = vpop.f32.mrb[22].mxu1  ;;  %v2626_v29 = vpop.f32.mrb[22].mxu0 }
 0x32a   :  { %v2285_v33 = vadd.f32 %v4190_v10, %v2090_v60  ;;  %v2093_v37 = vadd.f32 %v2626_v29, %v2546_v35  ;;  %v1747_v26 = vpop.f32.mrb[23].mxu1  ;;  %v2084_v22 = vpop.f32.mrb[23].mxu0 }
 0x32b   :  { %v2283_v49 = vadd.f32 %v4190_v10, %v2082_v19  ;;  %v2085_v11 = vadd.f32 %v2084_v22, %v1747_v26 }
 0x32c   :  { %2349 = vst [vmem:[#allocation10 + $0xb0] sm:$0xff] %v2285_v33  ;;  %v2286_v7 = vadd.f32 %v4190_v10, %v2093_v37 }
 0x32d   :  { %2347 = vst [vmem:[#allocation10 + $0xa0] sm:$0xff] %v2283_v49  ;;  %v2284_v45 = vadd.f32 %v4190_v10, %v2085_v11 }
 0x32e   :  { %2350 = vst [vmem:[#allocation10 + $0xb8] sm:$0xff] %v2286_v7 }
 0x32f   :  { %2348 = vst [vmem:[#allocation10 + $0xa8] sm:$0xff] %v2284_v45 }
 0x337   :  { %v2549_v46 = vpop.f32.mrb[24].mxu1  ;;  %v2629_v1 = vpop.f32.mrb[24].mxu0 }
 0x338   :  { %v2106_v57 = vadd.f32 %v2629_v1, %v2549_v46  ;;  %v1760_v4 = vpop.f32.mrb[25].mxu1  ;;  %v2097_v47 = vpop.f32.mrb[25].mxu0 }
 0x339   :  { %v2098_v61 = vadd.f32 %v2097_v47, %v1760_v4  ;;  %v2550_v9 = vpop.f32.mrb[26].mxu1  ;;  %v2630_v2 = vpop.f32.mrb[26].mxu0 }
 0x33a   :  { %v2289_v34 = vadd.f32 %v4190_v10, %v2106_v57  ;;  %v2109_v53 = vadd.f32 %v2630_v2, %v2550_v9  ;;  %v1763_v32 = vpop.f32.mrb[27].mxu1  ;;  %v2100_v24 = vpop.f32.mrb[27].mxu0 }
 0x33b   :  { %v2287_v55 = vadd.f32 %v4190_v10, %v2098_v61  ;;  %v2101_v48 = vadd.f32 %v2100_v24, %v1763_v32 }
 0x33c   :  { %2353 = vst [vmem:[#allocation10 + $0xd0] sm:$0xff] %v2289_v34  ;;  %v2290_v56 = vadd.f32 %v4190_v10, %v2109_v53 }
 0x33d   :  { %2351 = vst [vmem:[#allocation10 + $0xc0] sm:$0xff] %v2287_v55  ;;  %v2288_v50 = vadd.f32 %v4190_v10, %v2101_v48 }
 0x33e   :  { %2354 = vst [vmem:[#allocation10 + $0xd8] sm:$0xff] %v2290_v56 }
 0x33f   :  { %2352 = vst [vmem:[#allocation10 + $0xc8] sm:$0xff] %v2288_v50 }
 0x347   :  { %v2553_v38 = vpop.f32.mrb[28].mxu1  ;;  %v2633_v62 = vpop.f32.mrb[28].mxu0 }
 0x348   :  { %v2122_v20 = vadd.f32 %v2633_v62, %v2553_v38  ;;  %v1776_v17 = vpop.f32.mrb[29].mxu1  ;;  %v2113_v3 = vpop.f32.mrb[29].mxu0 }
 0x349   :  { %v2114_v27 = vadd.f32 %v2113_v3, %v1776_v17  ;;  %v2554_v21 = vpop.f32.mrb[30].mxu1  ;;  %v2634_v54 = vpop.f32.mrb[30].mxu0 }
 0x34a   :  { %v2293_v23 = vadd.f32 %v4190_v10, %v2122_v20  ;;  %v2125_v36 = vadd.f32 %v2634_v54, %v2554_v21  ;;  %v1779_v5 = vpop.f32.mrb[31].mxu1  ;;  %v2116_v30 = vpop.f32.mrb[31].mxu0 }
 0x34b   :  { %v2291_v39 = vadd.f32 %v4190_v10, %v2114_v27  ;;  %v2117_v59 = vadd.f32 %v2116_v30, %v1779_v5 }
 0x34c   :  { %2357 = vst [vmem:[#allocation10 + $0xf0] sm:$0xff] %v2293_v23  ;;  %v2294_v41 = vadd.f32 %v4190_v10, %v2125_v36 }
 0x34d   :  { %2355 = vst [vmem:[#allocation10 + $0xe0] sm:$0xff] %v2291_v39  ;;  %v2292_v52 = vadd.f32 %v4190_v10, %v2117_v59 }
 0x34e   :  { %2358 = vst [vmem:[#allocation10 + $0xf8] sm:$0xff] %v2294_v41 }
 0x34f   :  { %2356 = vst [vmem:[#allocation10 + $0xe8] sm:$0xff] %v2292_v52 }
 0x357   :  { %v2557_v31 = vpop.f32.mrb[32].mxu1  ;;  %v2637_v28 = vpop.f32.mrb[32].mxu0 }
 0x358   :  { %v2138_v0 = vadd.f32 %v2637_v28, %v2557_v31  ;;  %v1792_v40 = vpop.f32.mrb[33].mxu1  ;;  %v2129_v58 = vpop.f32.mrb[33].mxu0  ;;  %v4298_v31 = vld [vmem:[%s4336_s4] ss:$0 sm:$0xff]  ;;  %s3100_s4 = smov [#allocation10]  }
 0x359   :  { %v2130_v63 = vadd.f32 %v2129_v58, %v1792_v40  ;;  %v2558_v18 = vpop.f32.mrb[34].mxu1  ;;  %v2638_v51 = vpop.f32.mrb[34].mxu0  ;;  %s2396_s28 = sshll.u32 %s3100_s4, 4  ;;  %s2397_s28 = int_to_ptr.vmem [resolvable:$true] %s2396_s28 }
 0x35a   :  { %v2297_v13 = vadd.f32 %v4190_v10, %v2138_v0  ;;  %v2141_v6 = vadd.f32 %v2638_v51, %v2558_v18  ;;  %v1795_v42 = vpop.f32.mrb[35].mxu1  ;;  %v2132_v43 = vpop.f32.mrb[35].mxu0  ;;  %s3061_s29 = scalar_lea.vmem %s2397_s28, 8192  ;;  %p3066_p11 = scmp.lt.s32.totalorder %s2397_s28, %s2397_s28 }
 0x35b   :  { %v2295_v44 = vadd.f32 %v4190_v10, %v2130_v63  ;;  %v2133_v25 = vadd.f32 %v2132_v43, %v1795_v42  ;;  %p3062_p10 = scmp.ne.s32.totalorder %s2397_s28, %s3061_s29  ;;  %p3067_p12 = scmp.lt.s32.totalorder %s3061_s29, %s3061_s29 }
 0x35c   :  { %2361 = vst [vmem:[#allocation10 + $0x110] sm:$0xff] %v2297_v13  ;;  %v2298_v16 = vadd.f32 %v4190_v10, %v2141_v6 }
 0x35d   :  { %2359 = vst [vmem:[#allocation10 + $0x100] sm:$0xff] %v2295_v44  ;;  %v2296_v14 = vadd.f32 %v4190_v10, %v2133_v25  ;;  %p3068_p13 = por %p3067_p12, %p3066_p11 }
 0x35e   :  { %2362 = vst [vmem:[#allocation10 + $0x118] sm:$0xff] %v2298_v16 }
 0x35f   :  { %2360 = vst [vmem:[#allocation10 + $0x108] sm:$0xff] %v2296_v14  ;;  %p3069_p0 = pnand %p3068_p13, %p3062_p10 }
 0x367   :  { %v2561_v8 = vpop.f32.mrb[36].mxu1  ;;  %v2641_v60 = vpop.f32.mrb[36].mxu0 }
 0x368   :  { %v2154_v12 = vadd.f32 %v2641_v60, %v2561_v8  ;;  %v1808_v15 = vpop.f32.mrb[37].mxu1  ;;  %v2145_v19 = vpop.f32.mrb[37].mxu0 }
 0x369   :  { %v2146_v35 = vadd.f32 %v2145_v19, %v1808_v15  ;;  %v2562_v29 = vpop.f32.mrb[38].mxu1  ;;  %v2642_v33 = vpop.f32.mrb[38].mxu0 }
 0x36a   :  { %v2301_v37 = vadd.f32 %v4190_v10, %v2154_v12  ;;  %v2157_v26 = vadd.f32 %v2642_v33, %v2562_v29  ;;  %v1811_v22 = vpop.f32.mrb[39].mxu1  ;;  %v2148_v49 = vpop.f32.mrb[39].mxu0 }
 0x36b   :  { %v2299_v11 = vadd.f32 %v4190_v10, %v2146_v35  ;;  %v2149_v7 = vadd.f32 %v2148_v49, %v1811_v22 }
 0x36c   :  { %2365 = vst [vmem:[#allocation10 + $0x130] sm:$0xff] %v2301_v37  ;;  %v2302_v45 = vadd.f32 %v4190_v10, %v2157_v26 }
 0x36d   :  { %2363 = vst [vmem:[#allocation10 + $0x120] sm:$0xff] %v2299_v11  ;;  %v2300_v46 = vadd.f32 %v4190_v10, %v2149_v7 }
 0x36e   :  { %2366 = vst [vmem:[#allocation10 + $0x138] sm:$0xff] %v2302_v45 }
 0x36f   :  { %2364 = vst [vmem:[#allocation10 + $0x128] sm:$0xff] %v2300_v46 }
 0x379   :  { %v2565_v1 = vpop.f32.mrb[40].mxu1  ;;  %v2645_v57 = vpop.f32.mrb[40].mxu0 }
 0x37a   :  { %v2170_v4 = vadd.f32 %v2645_v57, %v2565_v1  ;;  %v1824_v47 = vpop.f32.mrb[41].mxu1  ;;  %v2161_v61 = vpop.f32.mrb[41].mxu0 }
 0x37b   :  { %v2162_v9 = vadd.f32 %v2161_v61, %v1824_v47  ;;  %v2566_v2 = vpop.f32.mrb[42].mxu1  ;;  %v2646_v34 = vpop.f32.mrb[42].mxu0 }
 0x37c   :  { %v2305_v53 = vadd.f32 %v4190_v10, %v2170_v4  ;;  %v2173_v32 = vadd.f32 %v2646_v34, %v2566_v2  ;;  %v1827_v24 = vpop.f32.mrb[43].mxu1  ;;  %v2164_v55 = vpop.f32.mrb[43].mxu0 }
 0x37d   :  { %v2303_v48 = vadd.f32 %v4190_v10, %v2162_v9  ;;  %v2165_v56 = vadd.f32 %v2164_v55, %v1827_v24 }
 0x37e   :  { %2369 = vst [vmem:[#allocation10 + $0x150] sm:$0xff] %v2305_v53  ;;  %v2306_v50 = vadd.f32 %v4190_v10, %v2173_v32 }
 0x37f   :  { %2367 = vst [vmem:[#allocation10 + $0x140] sm:$0xff] %v2303_v48  ;;  %v2304_v38 = vadd.f32 %v4190_v10, %v2165_v56 }
 0x380   :  { %2370 = vst [vmem:[#allocation10 + $0x158] sm:$0xff] %v2306_v50 }
 0x381   :  { %2368 = vst [vmem:[#allocation10 + $0x148] sm:$0xff] %v2304_v38 }
 0x389   :  { %v2569_v62 = vpop.f32.mrb[44].mxu1  ;;  %v2649_v20 = vpop.f32.mrb[44].mxu0 }
 0x38a   :  { %v2186_v17 = vadd.f32 %v2649_v20, %v2569_v62  ;;  %v1840_v3 = vpop.f32.mrb[45].mxu1  ;;  %v2177_v27 = vpop.f32.mrb[45].mxu0 }
 0x38b   :  { %v2178_v21 = vadd.f32 %v2177_v27, %v1840_v3  ;;  %v2570_v54 = vpop.f32.mrb[46].mxu1  ;;  %v2650_v23 = vpop.f32.mrb[46].mxu0 }
 0x38c   :  { %v2309_v36 = vadd.f32 %v4190_v10, %v2186_v17  ;;  %v2189_v5 = vadd.f32 %v2650_v23, %v2570_v54  ;;  %v1843_v30 = vpop.f32.mrb[47].mxu1  ;;  %v2180_v39 = vpop.f32.mrb[47].mxu0 }
 0x38d   :  { %v2307_v59 = vadd.f32 %v4190_v10, %v2178_v21  ;;  %v2181_v41 = vadd.f32 %v2180_v39, %v1843_v30 }
 0x38e   :  { %2373 = vst [vmem:[#allocation10 + $0x170] sm:$0xff] %v2309_v36  ;;  %v2310_v52 = vadd.f32 %v4190_v10, %v2189_v5 }
 0x38f   :  { %2371 = vst [vmem:[#allocation10 + $0x160] sm:$0xff] %v2307_v59  ;;  %v2308_v28 = vadd.f32 %v4298_v31, %v2181_v41 }
 0x390   :  { %2374 = vst [vmem:[#allocation10 + $0x178] sm:$0xff] %v2310_v52 }
 0x391   :  { %2372 = vst [vmem:[#allocation10 + $0x168] sm:$0xff] %v2308_v28 }
 0x399   :  { %v2573_v0 = vpop.f32.mrb[48].mxu1  ;;  %v2653_v40 = vpop.f32.mrb[48].mxu0 }
 0x39a   :  { %v2202_v58 = vadd.f32 %v2653_v40, %v2573_v0  ;;  %v1856_v63 = vpop.f32.mrb[49].mxu1  ;;  %v2193_v18 = vpop.f32.mrb[49].mxu0 }
 0x39b   :  { %v2194_v51 = vadd.f32 %v2193_v18, %v1856_v63  ;;  %v2574_v13 = vpop.f32.mrb[50].mxu1  ;;  %v2654_v6 = vpop.f32.mrb[50].mxu0 }
 0x39c   :  { %v2313_v10 = vadd.f32 %v4298_v31, %v2202_v58  ;;  %v2205_v42 = vadd.f32 %v2654_v6, %v2574_v13  ;;  %v1859_v43 = vpop.f32.mrb[51].mxu1  ;;  %v2196_v44 = vpop.f32.mrb[51].mxu0 }
 0x39d   :  { %v2311_v25 = vadd.f32 %v4298_v31, %v2194_v51  ;;  %v2197_v16 = vadd.f32 %v2196_v44, %v1859_v43 }
 0x39e   :  { %2377 = vst [vmem:[#allocation10 + $0x190] sm:$0xff] %v2313_v10  ;;  %v2314_v14 = vadd.f32 %v4298_v31, %v2205_v42 }
 0x39f   :  { %2375 = vst [vmem:[#allocation10 + $0x180] sm:$0xff] %v2311_v25  ;;  %v2312_v8 = vadd.f32 %v4298_v31, %v2197_v16 }
 0x3a0   :  { %2378 = vst [vmem:[#allocation10 + $0x198] sm:$0xff] %v2314_v14 }
 0x3a1   :  { %2376 = vst [vmem:[#allocation10 + $0x188] sm:$0xff] %v2312_v8 }
 0x3a9   :  { %v2577_v60 = vpop.f32.mrb[52].mxu1  ;;  %v2657_v12 = vpop.f32.mrb[52].mxu0 }
 0x3aa   :  { %v2218_v15 = vadd.f32 %v2657_v12, %v2577_v60  ;;  %v1872_v19 = vpop.f32.mrb[53].mxu1  ;;  %v2209_v35 = vpop.f32.mrb[53].mxu0 }
 0x3ab   :  { %v2210_v29 = vadd.f32 %v2209_v35, %v1872_v19  ;;  %v2578_v33 = vpop.f32.mrb[54].mxu1  ;;  %v2658_v37 = vpop.f32.mrb[54].mxu0 }
 0x3ac   :  { %v2317_v26 = vadd.f32 %v4298_v31, %v2218_v15  ;;  %v2221_v22 = vadd.f32 %v2658_v37, %v2578_v33  ;;  %v1875_v49 = vpop.f32.mrb[55].mxu1  ;;  %v2212_v11 = vpop.f32.mrb[55].mxu0 }
 0x3ad   :  { %v2315_v7 = vadd.f32 %v4298_v31, %v2210_v29  ;;  %v2213_v45 = vadd.f32 %v2212_v11, %v1875_v49 }
 0x3ae   :  { %2381 = vst [vmem:[#allocation10 + $0x1b0] sm:$0xff] %v2317_v26  ;;  %v2318_v46 = vadd.f32 %v4298_v31, %v2221_v22 }
 0x3af   :  { %2379 = vst [vmem:[#allocation10 + $0x1a0] sm:$0xff] %v2315_v7  ;;  %v2316_v1 = vadd.f32 %v4298_v31, %v2213_v45 }
 0x3b0   :  { %2382 = vst [vmem:[#allocation10 + $0x1b8] sm:$0xff] %v2318_v46 }
 0x3b1   :  { %2380 = vst [vmem:[#allocation10 + $0x1a8] sm:$0xff] %v2316_v1 }
 0x3b9   :  { %v2581_v57 = vpop.f32.mrb[56].mxu1  ;;  %v2661_v4 = vpop.f32.mrb[56].mxu0 }
 0x3ba   :  { %v2234_v47 = vadd.f32 %v2661_v4, %v2581_v57  ;;  %v1888_v61 = vpop.f32.mrb[57].mxu1  ;;  %v2225_v9 = vpop.f32.mrb[57].mxu0 }
 0x3bb   :  { %v2226_v2 = vadd.f32 %v2225_v9, %v1888_v61  ;;  %v2582_v34 = vpop.f32.mrb[58].mxu1  ;;  %v2662_v53 = vpop.f32.mrb[58].mxu0 }
 0x3bc   :  { %v2321_v32 = vadd.f32 %v4298_v31, %v2234_v47  ;;  %v2237_v24 = vadd.f32 %v2662_v53, %v2582_v34  ;;  %v1891_v55 = vpop.f32.mrb[59].mxu1  ;;  %v2228_v48 = vpop.f32.mrb[59].mxu0 }
 0x3bd   :  { %v2319_v56 = vadd.f32 %v4298_v31, %v2226_v2  ;;  %v2229_v50 = vadd.f32 %v2228_v48, %v1891_v55 }
 0x3be   :  { %2385 = vst [vmem:[#allocation10 + $0x1d0] sm:$0xff] %v2321_v32  ;;  %v2322_v38 = vadd.f32 %v4298_v31, %v2237_v24 }
 0x3bf   :  { %2383 = vst [vmem:[#allocation10 + $0x1c0] sm:$0xff] %v2319_v56  ;;  %v2320_v62 = vadd.f32 %v4298_v31, %v2229_v50 }
 0x3c0   :  { %2386 = vst [vmem:[#allocation10 + $0x1d8] sm:$0xff] %v2322_v38 }
 0x3c1   :  { %2384 = vst [vmem:[#allocation10 + $0x1c8] sm:$0xff] %v2320_v62 }
 0x3c9   :  { %v2585_v20 = vpop.f32.mrb[60].mxu1  ;;  %v2665_v17 = vpop.f32.mrb[60].mxu0 }
 0x3ca   :  { %v2250_v3 = vadd.f32 %v2665_v17, %v2585_v20  ;;  %v1904_v27 = vpop.f32.mrb[61].mxu1  ;;  %v2241_v21 = vpop.f32.mrb[61].mxu0 }
 0x3cb   :  { %v2242_v54 = vadd.f32 %v2241_v21, %v1904_v27  ;;  %v2586_v23 = vpop.f32.mrb[62].mxu1  ;;  %v2666_v36 = vpop.f32.mrb[62].mxu0 }
 0x3cc   :  { %v2325_v5 = vadd.f32 %v4298_v31, %v2250_v3  ;;  %v2253_v30 = vadd.f32 %v2666_v36, %v2586_v23  ;;  %v1907_v39 = vpop.f32.mrb[63].mxu1  ;;  %v2244_v59 = vpop.f32.mrb[63].mxu0 }
 0x3cd   :  { %v2323_v41 = vadd.f32 %v4298_v31, %v2242_v54  ;;  %v2245_v52 = vadd.f32 %v2244_v59, %v1907_v39 }
 0x3ce   :  { %2389 = vst [vmem:[#allocation10 + $0x1f0] sm:$0xff] %v2325_v5  ;;  %v2326_v28 = vadd.f32 %v4298_v31, %v2253_v30 }
 0x3cf   :  { %2387 = vst [vmem:[#allocation10 + $0x1e0] sm:$0xff] %v2323_v41  ;;  %v2324_v0 = vadd.f32 %v4298_v31, %v2245_v52 }
 0x3d0   :  { %2390 = vst [vmem:[#allocation10 + $0x1f8] sm:$0xff] %v2326_v28 }
 0x3d1   :  { %2388 = vst [vmem:[#allocation10 + $0x1e8] sm:$0xff] %v2324_v0 }
 0x3d2   :  { %3072 = shalt.err (!%p3069_p0)
}
 0x3d3   :  { %s3073_s7 = scalar_lea.hbm %s4337_s5, 8192 }
 0x3d4   :  { %p3074_p1 = scmp.ne.s32.totalorder %s4337_s5, %s3073_s7  ;;  %p3077_p2 = scmp.lt.u32.totalorder %s3073_s7, %s4337_s5 }
 0x3d6   :  { %p3079_p3 = pnand %p3077_p2, %p3074_p1 }
 0x3d8   :  { %3082 = shalt.err (!%p3079_p3)
}
 0x3d9   :  { %2402 = dma.vmem_to_hbm [thread:$0]  %s2397_s28, 8192, %s4337_s5, [#allocation4], %s3094_s10, %s3094_s10, %s3095_s11  }
 0x3da   :  { %3089 = dma.done.wait [#allocation4], 8192  }
 0x3db   :  { %3090 = vsyncadd [#allocation4], 4294959104 }
 0x3dc   :  { %2406 = vsyncpa [#allocation3], 1 }
 0x3dd   :  { %2407 = vsyncpa [#allocation6], 1 }
 0x3de   :  { %2408 = vsyncpa [#allocation9], 1 }
 0x3df   :  { %2409 = vsyncpa [#allocation4], 1 }

</bundles_post_ra>
